<compile_context>
chip_gen: v5e
topology: v5e:2x2
jax: 0.10.0
libtpu: 0.0.40
codegen_flags: <defaults>
</compile_context>

<pallas_src>
import numpy as np
import jax
import jax.numpy as jnp
from jax.experimental import pallas as pl
from jax.experimental.pallas import tpu as pltpu

EPS = 1e-5  # nn.InstanceNorm2d default eps


# ----------------------------------------------------------------------------
# in-kernel helper
# ----------------------------------------------------------------------------
def _inorm_relu(x):
    """x: (C, HW) for one sample. InstanceNorm2d (biased var, no affine) + ReLU."""
    mean = jnp.mean(x, axis=1, keepdims=True)                   # (C, 1)
    var = jnp.mean((x - mean) * (x - mean), axis=1, keepdims=True)
    return jnp.maximum((x - mean) * jax.lax.rsqrt(var + EPS), 0.0)


# ----------------------------------------------------------------------------
# fused kernel body (one batch sample per grid step)
# ----------------------------------------------------------------------------
def _make_fused_kernel(H, W):
    HW = H * W

    def kernel(x_ref, s_ref, w1_ref, b1_ref, wf_ref, b2_ref,
               w3_ref, b3_ref, wres_ref, bres_ref, o_ref):
        f32 = jnp.float32
        x = x_ref[0].astype(f32)                                # (Cin, HW)

        # residual path: res_layer = (nearest x2 upsample) o (1x1 conv)
        # == (1x1 conv at low res) o (nearest x2 upsample)  -> do it at low res.
        res = (jnp.dot(wres_ref[...], x, preferred_element_type=f32)
               + bres_ref[...])                                 # (C4, HW)

        # in_1 -> relu -> conv_1 (1x1)
        a1 = _inorm_relu(x)
        y = (jnp.dot(w1_ref[...], a1, preferred_element_type=f32)
             + b1_ref[...])                                     # (outc, HW)

        # in_2 -> relu
        a2 = _inorm_relu(y)                                     # (outc, HW)

        # nine edge-clamped (+/-1 row, +/-1 col) shifted copies of the low-res
        # map via 0/1 gather matmuls; G[3*r + s] has source offset (r-1, s-1).
        G = [jnp.dot(a2, s_ref[t], preferred_element_type=f32) for t in range(9)]

        # conv_2 == nearest x2 upsample + reflect pad(1) + 3x3 conv, computed
        # as 4 sub-pixel phases; each phase is a 2x2 conv with folded weights.
        zs = []
        for a in range(2):
            for b in range(2):
                p = 2 * a + b
                acc = b2_ref[...]                               # (outc, 1) broadcasts
                for u in range(2):
                    for v in range(2):
                        acc = acc + jnp.dot(
                            wf_ref[p * 4 + 2 * u + v],
                            G[(a + u) * 3 + (b + v)],
                            preferred_element_type=f32)
                zs.append(acc)                                  # (outc, HW)

        # in_3: InstanceNorm statistics over the full 2H x 2W map
        # == over all 4 phases jointly.
        inv_n = 1.0 / (4.0 * HW)
        mean = sum(jnp.sum(z, axis=1, keepdims=True) for z in zs) * inv_n
        ds = [z - mean for z in zs]
        var = sum(jnp.sum(d * d, axis=1, keepdims=True) for d in ds) * inv_n
        inv_std = jax.lax.rsqrt(var + EPS)

        # relu -> conv_3 (1x1) -> + residual (nearest-upsampled residual is the
        # same low-res value in every phase, so the add is free).
        for p in range(4):
            a3 = jnp.maximum(ds[p] * inv_std, 0.0)              # (outc, HW)
            out = (jnp.dot(w3_ref[...], a3, preferred_element_type=f32)
                   + b3_ref[...] + res)                         # (C4, HW)
            o_ref[0, p] = out.astype(o_ref.dtype)

    return kernel


# ----------------------------------------------------------------------------
# host-side constant builders (run once, outside the kernel)
# ----------------------------------------------------------------------------
def _build_gather_mats(H, W):
    """S[3*r+s] is (HW, HW):  (a2 @ S)[c, i*W+j] = a2[c, clip(i+r-1), clip(j+s-1)]."""
    HW = H * W
    ii = np.arange(H)
    jj = np.arange(W)
    mats = np.zeros((9, HW, HW), np.float32)
    for r in range(3):
        for s in range(3):
            si = np.clip(ii + r - 1, 0, H - 1)
            sj = np.clip(jj + s - 1, 0, W - 1)
            src = (si[:, None] * W + sj[None, :]).reshape(-1)
            mats[3 * r + s, src, np.arange(HW)] = 1.0
    return jnp.asarray(mats)


# phase map: for output phase 0 (even row/col), 3x3 taps {0,1,2} fold onto the
# 2x2 slots {0,1,1}; for phase 1 (odd row/col) they fold onto {0,0,1}.
_PHASE_MAP = np.array([[0, 1, 1],
                       [0, 0, 1]])


def _fold_conv2_weights(w2_hwio):
    """Fold the 3x3 HWIO weight into 4 per-phase 2x2 weights, flattened to
    (16, Cout, Cin): index = (2a+b)*4 + 2u+v multiplies the low-res map shifted
    by (a+u-1, b+v-1) (edge-clamped)."""
    w2 = np.asarray(w2_hwio, np.float32)                        # (3, 3, Cin, Cout)
    _, _, cin, cout = w2.shape
    wf = np.zeros((16, cout, cin), np.float32)
    for a in range(2):
        for b in range(2):
            for dy in range(3):
                for dx in range(3):
                    u = _PHASE_MAP[a, dy]
                    v = _PHASE_MAP[b, dx]
                    wf[(2 * a + b) * 4 + 2 * u + v] += w2[dy, dx].T
    return jnp.asarray(wf)


# ----------------------------------------------------------------------------
# forward pass wrapper
# ----------------------------------------------------------------------------
def upsample_residual_block(x_nchw, params):
    """Forward of UpSampleResidualBlock; input/output NCHW (PyTorch order)."""
    N, Cin, H, W = x_nchw.shape
    HW = H * W
    outc = params["w1"].shape[0]
    C4 = params["w_res"].shape[0]

    x = x_nchw.reshape(N, Cin, HW).astype(jnp.float32)          # NCHW is native
    smats = _build_gather_mats(H, W)                            # (9, HW, HW)
    wf = _fold_conv2_weights(params["w2_hwio"])                 # (16, outc, outc)
    col = lambda v: v.reshape(-1, 1).astype(jnp.float32)

    out = pl.pallas_call(
        _make_fused_kernel(H, W),
        out_shape=jax.ShapeDtypeStruct((N, 4, C4, HW), jnp.float32),
        grid=(N,),
        in_specs=[
            pl.BlockSpec((1, Cin, HW), lambda i: (i, 0, 0)),        # x
            pl.BlockSpec((9, HW, HW), lambda i: (0, 0, 0)),         # gather mats
            pl.BlockSpec((outc, Cin), lambda i: (0, 0)),            # w1
            pl.BlockSpec((outc, 1), lambda i: (0, 0)),              # b1
            pl.BlockSpec((16, outc, outc), lambda i: (0, 0, 0)),    # folded conv_2
            pl.BlockSpec((outc, 1), lambda i: (0, 0)),              # b2
            pl.BlockSpec((C4, outc), lambda i: (0, 0)),             # w3
            pl.BlockSpec((C4, 1), lambda i: (0, 0)),                # b3
            pl.BlockSpec((C4, Cin), lambda i: (0, 0)),              # w_res
            pl.BlockSpec((C4, 1), lambda i: (0, 0)),                # b_res
        ],
        out_specs=pl.BlockSpec((1, 4, C4, HW), lambda i: (i, 0, 0, 0)),
        compiler_params=pltpu.CompilerParams(
            dimension_semantics=("parallel",),          # v7x: shard batch on 2 TCs
            vmem_limit_bytes=32 * 1024 * 1024),
    )(x, smats, params["w1"], col(params["b1"]), wf, col(params["b2"]),
      params["w3"], col(params["b3"]), params["w_res"], col(params["b_res"]))

    # de-interleave the 4 sub-pixel phases into the (2H, 2W) map (output-layout
    # fixup only; all math ran inside the single kernel above).
    out = out.reshape(N, 2, 2, C4, H, W)                        # (n, a, b, c, i, j)
    out = jnp.transpose(out, (0, 3, 4, 1, 5, 2))                # (n, c, i, a, j, b)
    return out.reshape(N, C4, 2 * H, 2 * W)


def init_params(key, in_channels, outc):
    ks = jax.random.split(key, 8)
    rnd = lambda k, s: 0.1 * jax.random.normal(k, s, jnp.float32)
    return dict(
        w_res=rnd(ks[0], (4 * outc, in_channels)), b_res=rnd(ks[1], (4 * outc,)),
        w1=rnd(ks[2], (outc, in_channels)),        b1=rnd(ks[3], (outc,)),
        w2_hwio=rnd(ks[4], (3, 3, outc, outc)),    b2=rnd(ks[5], (outc,)),
        w3=rnd(ks[6], (4 * outc, outc)),           b3=rnd(ks[7], (4 * outc,)),
    )


# ----------------------------------------------------------------------------
# pure-JAX reference (literal upsample + reflect pad + conv) for correctness
# ----------------------------------------------------------------------------
def ref_forward(x_nchw, params):
    x = jnp.transpose(x_nchw, (0, 2, 3, 1)).astype(jnp.float32)

    def conv(xx, w_hwio, b):
        y = jax.lax.conv_general_dilated(
            xx, w_hwio, (1, 1), "VALID",
            dimension_numbers=("NHWC", "HWIO", "NHWC"),
            precision=jax.lax.Precision.HIGHEST)
        return y + b.reshape(1, 1, 1, -1)

    def inr(xx):
        m = jnp.mean(xx, axis=(1, 2), keepdims=True)
        v = jnp.mean((xx - m) ** 2, axis=(1, 2), keepdims=True)
        return jnp.maximum((xx - m) * jax.lax.rsqrt(v + EPS), 0.0)

    def up2(xx):
        n, h, w, c = xx.shape
        xx = jnp.broadcast_to(xx[:, :, None, :, None, :], (n, h, 2, w, 2, c))
        return xx.reshape(n, 2 * h, 2 * w, c)

    def to_hwio(w_oc):  # (OC, IC) -> (1, 1, IC, OC)
        return w_oc.T.reshape(1, 1, w_oc.shape[1], w_oc.shape[0])

    res = conv(up2(x), to_hwio(params["w_res"]), params["b_res"])
    y = conv(inr(x), to_hwio(params["w1"]), params["b1"])
    y = jnp.pad(up2(inr(y)), ((0, 0), (1, 1), (1, 1), (0, 0)), mode="reflect")
    y = conv(y, params["w2_hwio"], params["b2"])
    y = conv(inr(y), to_hwio(params["w3"]), params["b3"])
    return jnp.transpose(y + res, (0, 3, 1, 2))


if __name__ == "__main__":
    key = jax.random.PRNGKey(0)
    kx, kp = jax.random.split(key)

    N, Cin, H, W = 2, 4, 16, 16          # input [N, C, H, W]
    outc = 4                             # out_block_channels -> output = 4*outc
    x = jax.random.normal(kx, (N, Cin, H, W), jnp.float32)
    params = init_params(kp, Cin, outc)

    out = jax.block_until_ready(upsample_residual_block(x, params))
    assert out.shape == (N, 4 * outc, 2 * H, 2 * W), out.shape

    ref = jax.block_until_ready(ref_forward(x, params))
    np.testing.assert_allclose(np.asarray(out), np.asarray(ref), rtol=2e-2, atol=2e-2)

    print("KERNEL_OK")
</pallas_src>

<mosaic_0001>
module attributes {stable_mosaic.version = 11 : i64} {
  func.func @kernel(%arg0: i32, %arg1: memref<1x4x256xf32, #tpu.memory_space<vmem>>, %arg2: memref<9x256x256xf32, #tpu.memory_space<vmem>>, %arg3: memref<4x4xf32, #tpu.memory_space<vmem>>, %arg4: memref<4x1xf32, #tpu.memory_space<vmem>>, %arg5: memref<16x4x4xf32, #tpu.memory_space<vmem>>, %arg6: memref<4x1xf32, #tpu.memory_space<vmem>>, %arg7: memref<16x4xf32, #tpu.memory_space<vmem>>, %arg8: memref<16x1xf32, #tpu.memory_space<vmem>>, %arg9: memref<16x4xf32, #tpu.memory_space<vmem>>, %arg10: memref<16x1xf32, #tpu.memory_space<vmem>>, %arg11: memref<1x4x16x256xf32, #tpu.memory_space<vmem>>) attributes {dimension_semantics = [#tpu.dimension_semantics<parallel>], iteration_bounds = array<i64: 2>, scalar_prefetch = 0 : i64, scratch_operands = 0 : i64, tpu.core_type = #tpu.core_type<tc>, window_params = [{transform_indices = @transform_0, window_bounds = array<i64: 1, 4, 256>}, {pipeline_mode = #tpu.pipeline_mode<synchronous>, transform_indices = @transform_1, window_bounds = array<i64: 9, 256, 256>}, {pipeline_mode = #tpu.pipeline_mode<synchronous>, transform_indices = @transform_2, window_bounds = array<i64: 4, 4>}, {pipeline_mode = #tpu.pipeline_mode<synchronous>, transform_indices = @transform_3, window_bounds = array<i64: 4, 1>}, {pipeline_mode = #tpu.pipeline_mode<synchronous>, transform_indices = @transform_4, window_bounds = array<i64: 16, 4, 4>}, {pipeline_mode = #tpu.pipeline_mode<synchronous>, transform_indices = @transform_5, window_bounds = array<i64: 4, 1>}, {pipeline_mode = #tpu.pipeline_mode<synchronous>, transform_indices = @transform_6, window_bounds = array<i64: 16, 4>}, {pipeline_mode = #tpu.pipeline_mode<synchronous>, transform_indices = @transform_7, window_bounds = array<i64: 16, 1>}, {pipeline_mode = #tpu.pipeline_mode<synchronous>, transform_indices = @transform_8, window_bounds = array<i64: 16, 4>}, {pipeline_mode = #tpu.pipeline_mode<synchronous>, transform_indices = @transform_9, window_bounds = array<i64: 16, 1>}, {transform_indices = @transform_10, window_bounds = array<i64: 1, 4, 16, 256>}]} {
    %c0 = arith.constant 0 : index
    %c0_0 = arith.constant 0 : index
    %c0_1 = arith.constant 0 : index
    %0 = vector.load %arg1[%c0, %c0_0, %c0_1] : memref<1x4x256xf32, #tpu.memory_space<vmem>>, vector<1x4x256xf32>
    %1 = vector.shape_cast %0 : vector<1x4x256xf32> to vector<4x256xf32>
    %c0_2 = arith.constant 0 : index
    %c0_3 = arith.constant 0 : index
    %2 = vector.load %arg9[%c0_2, %c0_3] : memref<16x4xf32, #tpu.memory_space<vmem>>, vector<16x4xf32>
    %cst = arith.constant dense<0.000000e+00> : vector<16x256xf32>
    %3 = tpu.matmul %2, %1, %cst {dimension_numbers = #tpu.dot_dimension_numbers<[1], [0], [0], [1], [0, 0, 1, 1], [], []>} : vector<16x4xf32>, vector<4x256xf32>, vector<16x256xf32> -> vector<16x256xf32>
    %c0_4 = arith.constant 0 : index
    %c0_5 = arith.constant 0 : index
    %4 = vector.load %arg10[%c0_4, %c0_5] : memref<16x1xf32, #tpu.memory_space<vmem>>, vector<16x1xf32>
    %5 = vector.broadcast %4 : vector<16x1xf32> to vector<16x256xf32>
    %6 = arith.addf %3, %5 : vector<16x256xf32>
    %cst_6 = arith.constant dense<0.000000e+00> : vector<4xf32>
    %7 = vector.multi_reduction <add>, %1, %cst_6 [1] : vector<4x256xf32> to vector<4xf32>
    %8 = vector.shape_cast %7 : vector<4xf32> to vector<4x1xf32>
    %cst_7 = arith.constant 2.560000e+02 : f32
    %9 = vector.broadcast %cst_7 : f32 to vector<4x1xf32>
    %10 = arith.divf %8, %9 : vector<4x1xf32>
    %11 = vector.broadcast %10 : vector<4x1xf32> to vector<4x256xf32>
    %12 = arith.subf %1, %11 : vector<4x256xf32>
    %13 = vector.broadcast %10 : vector<4x1xf32> to vector<4x256xf32>
    %14 = arith.subf %1, %13 : vector<4x256xf32>
    %15 = arith.mulf %12, %14 : vector<4x256xf32>
    %cst_8 = arith.constant dense<0.000000e+00> : vector<4xf32>
    %16 = vector.multi_reduction <add>, %15, %cst_8 [1] : vector<4x256xf32> to vector<4xf32>
    %17 = vector.shape_cast %16 : vector<4xf32> to vector<4x1xf32>
    %cst_9 = arith.constant 2.560000e+02 : f32
    %18 = vector.broadcast %cst_9 : f32 to vector<4x1xf32>
    %19 = arith.divf %17, %18 : vector<4x1xf32>
    %20 = vector.broadcast %10 : vector<4x1xf32> to vector<4x256xf32>
    %21 = arith.subf %1, %20 : vector<4x256xf32>
    %cst_10 = arith.constant 9.99999974E-6 : f32
    %22 = vector.broadcast %cst_10 : f32 to vector<4x1xf32>
    %23 = arith.addf %19, %22 : vector<4x1xf32>
    %24 = math.rsqrt %23 : vector<4x1xf32>
    %25 = vector.broadcast %24 : vector<4x1xf32> to vector<4x256xf32>
    %26 = arith.mulf %21, %25 : vector<4x256xf32>
    %cst_11 = arith.constant 0.000000e+00 : f32
    %27 = vector.broadcast %cst_11 : f32 to vector<4x256xf32>
    %28 = arith.maximumf %26, %27 : vector<4x256xf32>
    %c0_12 = arith.constant 0 : index
    %c0_13 = arith.constant 0 : index
    %29 = vector.load %arg3[%c0_12, %c0_13] : memref<4x4xf32, #tpu.memory_space<vmem>>, vector<4x4xf32>
    %cst_14 = arith.constant dense<0.000000e+00> : vector<4x256xf32>
    %30 = tpu.matmul %29, %28, %cst_14 {dimension_numbers = #tpu.dot_dimension_numbers<[1], [0], [0], [1], [0, 0, 1, 1], [], []>} : vector<4x4xf32>, vector<4x256xf32>, vector<4x256xf32> -> vector<4x256xf32>
    %c0_15 = arith.constant 0 : index
    %c0_16 = arith.constant 0 : index
    %31 = vector.load %arg4[%c0_15, %c0_16] : memref<4x1xf32, #tpu.memory_space<vmem>>, vector<4x1xf32>
    %32 = vector.broadcast %31 : vector<4x1xf32> to vector<4x256xf32>
    %33 = arith.addf %30, %32 : vector<4x256xf32>
    %cst_17 = arith.constant dense<0.000000e+00> : vector<4xf32>
    %34 = vector.multi_reduction <add>, %33, %cst_17 [1] : vector<4x256xf32> to vector<4xf32>
    %35 = vector.shape_cast %34 : vector<4xf32> to vector<4x1xf32>
    %cst_18 = arith.constant 2.560000e+02 : f32
    %36 = vector.broadcast %cst_18 : f32 to vector<4x1xf32>
    %37 = arith.divf %35, %36 : vector<4x1xf32>
    %38 = vector.broadcast %37 : vector<4x1xf32> to vector<4x256xf32>
    %39 = arith.subf %33, %38 : vector<4x256xf32>
    %40 = vector.broadcast %37 : vector<4x1xf32> to vector<4x256xf32>
    %41 = arith.subf %33, %40 : vector<4x256xf32>
    %42 = arith.mulf %39, %41 : vector<4x256xf32>
    %cst_19 = arith.constant dense<0.000000e+00> : vector<4xf32>
    %43 = vector.multi_reduction <add>, %42, %cst_19 [1] : vector<4x256xf32> to vector<4xf32>
    %44 = vector.shape_cast %43 : vector<4xf32> to vector<4x1xf32>
    %cst_20 = arith.constant 2.560000e+02 : f32
    %45 = vector.broadcast %cst_20 : f32 to vector<4x1xf32>
    %46 = arith.divf %44, %45 : vector<4x1xf32>
    %47 = vector.broadcast %37 : vector<4x1xf32> to vector<4x256xf32>
    %48 = arith.subf %33, %47 : vector<4x256xf32>
    %cst_21 = arith.constant 9.99999974E-6 : f32
    %49 = vector.broadcast %cst_21 : f32 to vector<4x1xf32>
    %50 = arith.addf %46, %49 : vector<4x1xf32>
    %51 = math.rsqrt %50 : vector<4x1xf32>
    %52 = vector.broadcast %51 : vector<4x1xf32> to vector<4x256xf32>
    %53 = arith.mulf %48, %52 : vector<4x256xf32>
    %cst_22 = arith.constant 0.000000e+00 : f32
    %54 = vector.broadcast %cst_22 : f32 to vector<4x256xf32>
    %55 = arith.maximumf %53, %54 : vector<4x256xf32>
    %c0_23 = arith.constant 0 : index
    %c0_24 = arith.constant 0 : index
    %c0_25 = arith.constant 0 : index
    %56 = vector.load %arg2[%c0_23, %c0_24, %c0_25] : memref<9x256x256xf32, #tpu.memory_space<vmem>>, vector<1x256x256xf32>
    %57 = vector.shape_cast %56 : vector<1x256x256xf32> to vector<256x256xf32>
    %cst_26 = arith.constant dense<0.000000e+00> : vector<4x256xf32>
    %58 = tpu.matmul %55, %57, %cst_26 {dimension_numbers = #tpu.dot_dimension_numbers<[1], [0], [0], [1], [0, 0, 1, 1], [], []>} : vector<4x256xf32>, vector<256x256xf32>, vector<4x256xf32> -> vector<4x256xf32>
    %c1 = arith.constant 1 : index
    %c0_27 = arith.constant 0 : index
    %c0_28 = arith.constant 0 : index
    %59 = vector.load %arg2[%c1, %c0_27, %c0_28] : memref<9x256x256xf32, #tpu.memory_space<vmem>>, vector<1x256x256xf32>
    %60 = vector.shape_cast %59 : vector<1x256x256xf32> to vector<256x256xf32>
    %cst_29 = arith.constant dense<0.000000e+00> : vector<4x256xf32>
    %61 = tpu.matmul %55, %60, %cst_29 {dimension_numbers = #tpu.dot_dimension_numbers<[1], [0], [0], [1], [0, 0, 1, 1], [], []>} : vector<4x256xf32>, vector<256x256xf32>, vector<4x256xf32> -> vector<4x256xf32>
    %c2 = arith.constant 2 : index
    %c0_30 = arith.constant 0 : index
    %c0_31 = arith.constant 0 : index
    %62 = vector.load %arg2[%c2, %c0_30, %c0_31] : memref<9x256x256xf32, #tpu.memory_space<vmem>>, vector<1x256x256xf32>
    %63 = vector.shape_cast %62 : vector<1x256x256xf32> to vector<256x256xf32>
    %cst_32 = arith.constant dense<0.000000e+00> : vector<4x256xf32>
    %64 = tpu.matmul %55, %63, %cst_32 {dimension_numbers = #tpu.dot_dimension_numbers<[1], [0], [0], [1], [0, 0, 1, 1], [], []>} : vector<4x256xf32>, vector<256x256xf32>, vector<4x256xf32> -> vector<4x256xf32>
    %c3 = arith.constant 3 : index
    %c0_33 = arith.constant 0 : index
    %c0_34 = arith.constant 0 : index
    %65 = vector.load %arg2[%c3, %c0_33, %c0_34] : memref<9x256x256xf32, #tpu.memory_space<vmem>>, vector<1x256x256xf32>
    %66 = vector.shape_cast %65 : vector<1x256x256xf32> to vector<256x256xf32>
    %cst_35 = arith.constant dense<0.000000e+00> : vector<4x256xf32>
    %67 = tpu.matmul %55, %66, %cst_35 {dimension_numbers = #tpu.dot_dimension_numbers<[1], [0], [0], [1], [0, 0, 1, 1], [], []>} : vector<4x256xf32>, vector<256x256xf32>, vector<4x256xf32> -> vector<4x256xf32>
    %c4 = arith.constant 4 : index
    %c0_36 = arith.constant 0 : index
    %c0_37 = arith.constant 0 : index
    %68 = vector.load %arg2[%c4, %c0_36, %c0_37] : memref<9x256x256xf32, #tpu.memory_space<vmem>>, vector<1x256x256xf32>
    %69 = vector.shape_cast %68 : vector<1x256x256xf32> to vector<256x256xf32>
    %cst_38 = arith.constant dense<0.000000e+00> : vector<4x256xf32>
    %70 = tpu.matmul %55, %69, %cst_38 {dimension_numbers = #tpu.dot_dimension_numbers<[1], [0], [0], [1], [0, 0, 1, 1], [], []>} : vector<4x256xf32>, vector<256x256xf32>, vector<4x256xf32> -> vector<4x256xf32>
    %c5 = arith.constant 5 : index
    %c0_39 = arith.constant 0 : index
    %c0_40 = arith.constant 0 : index
    %71 = vector.load %arg2[%c5, %c0_39, %c0_40] : memref<9x256x256xf32, #tpu.memory_space<vmem>>, vector<1x256x256xf32>
    %72 = vector.shape_cast %71 : vector<1x256x256xf32> to vector<256x256xf32>
    %cst_41 = arith.constant dense<0.000000e+00> : vector<4x256xf32>
    %73 = tpu.matmul %55, %72, %cst_41 {dimension_numbers = #tpu.dot_dimension_numbers<[1], [0], [0], [1], [0, 0, 1, 1], [], []>} : vector<4x256xf32>, vector<256x256xf32>, vector<4x256xf32> -> vector<4x256xf32>
    %c6 = arith.constant 6 : index
    %c0_42 = arith.constant 0 : index
    %c0_43 = arith.constant 0 : index
    %74 = vector.load %arg2[%c6, %c0_42, %c0_43] : memref<9x256x256xf32, #tpu.memory_space<vmem>>, vector<1x256x256xf32>
    %75 = vector.shape_cast %74 : vector<1x256x256xf32> to vector<256x256xf32>
    %cst_44 = arith.constant dense<0.000000e+00> : vector<4x256xf32>
    %76 = tpu.matmul %55, %75, %cst_44 {dimension_numbers = #tpu.dot_dimension_numbers<[1], [0], [0], [1], [0, 0, 1, 1], [], []>} : vector<4x256xf32>, vector<256x256xf32>, vector<4x256xf32> -> vector<4x256xf32>
    %c7 = arith.constant 7 : index
    %c0_45 = arith.constant 0 : index
    %c0_46 = arith.constant 0 : index
    %77 = vector.load %arg2[%c7, %c0_45, %c0_46] : memref<9x256x256xf32, #tpu.memory_space<vmem>>, vector<1x256x256xf32>
    %78 = vector.shape_cast %77 : vector<1x256x256xf32> to vector<256x256xf32>
    %cst_47 = arith.constant dense<0.000000e+00> : vector<4x256xf32>
    %79 = tpu.matmul %55, %78, %cst_47 {dimension_numbers = #tpu.dot_dimension_numbers<[1], [0], [0], [1], [0, 0, 1, 1], [], []>} : vector<4x256xf32>, vector<256x256xf32>, vector<4x256xf32> -> vector<4x256xf32>
    %c8 = arith.constant 8 : index
    %c0_48 = arith.constant 0 : index
    %c0_49 = arith.constant 0 : index
    %80 = vector.load %arg2[%c8, %c0_48, %c0_49] : memref<9x256x256xf32, #tpu.memory_space<vmem>>, vector<1x256x256xf32>
    %81 = vector.shape_cast %80 : vector<1x256x256xf32> to vector<256x256xf32>
    %cst_50 = arith.constant dense<0.000000e+00> : vector<4x256xf32>
    %82 = tpu.matmul %55, %81, %cst_50 {dimension_numbers = #tpu.dot_dimension_numbers<[1], [0], [0], [1], [0, 0, 1, 1], [], []>} : vector<4x256xf32>, vector<256x256xf32>, vector<4x256xf32> -> vector<4x256xf32>
    %c0_51 = arith.constant 0 : index
    %c0_52 = arith.constant 0 : index
    %83 = vector.load %arg6[%c0_51, %c0_52] : memref<4x1xf32, #tpu.memory_space<vmem>>, vector<4x1xf32>
    %c0_53 = arith.constant 0 : index
    %c0_54 = arith.constant 0 : index
    %c0_55 = arith.constant 0 : index
    %84 = vector.load %arg5[%c0_53, %c0_54, %c0_55] : memref<16x4x4xf32, #tpu.memory_space<vmem>>, vector<1x4x4xf32>
    %85 = vector.shape_cast %84 : vector<1x4x4xf32> to vector<4x4xf32>
    %cst_56 = arith.constant dense<0.000000e+00> : vector<4x256xf32>
    %86 = tpu.matmul %85, %58, %cst_56 {dimension_numbers = #tpu.dot_dimension_numbers<[1], [0], [0], [1], [0, 0, 1, 1], [], []>} : vector<4x4xf32>, vector<4x256xf32>, vector<4x256xf32> -> vector<4x256xf32>
    %87 = vector.broadcast %83 : vector<4x1xf32> to vector<4x256xf32>
    %88 = arith.addf %87, %86 : vector<4x256xf32>
    %c1_57 = arith.constant 1 : index
    %c0_58 = arith.constant 0 : index
    %c0_59 = arith.constant 0 : index
    %89 = vector.load %arg5[%c1_57, %c0_58, %c0_59] : memref<16x4x4xf32, #tpu.memory_space<vmem>>, vector<1x4x4xf32>
    %90 = vector.shape_cast %89 : vector<1x4x4xf32> to vector<4x4xf32>
    %cst_60 = arith.constant dense<0.000000e+00> : vector<4x256xf32>
    %91 = tpu.matmul %90, %61, %cst_60 {dimension_numbers = #tpu.dot_dimension_numbers<[1], [0], [0], [1], [0, 0, 1, 1], [], []>} : vector<4x4xf32>, vector<4x256xf32>, vector<4x256xf32> -> vector<4x256xf32>
    %92 = arith.addf %88, %91 : vector<4x256xf32>
    %c2_61 = arith.constant 2 : index
    %c0_62 = arith.constant 0 : index
    %c0_63 = arith.constant 0 : index
    %93 = vector.load %arg5[%c2_61, %c0_62, %c0_63] : memref<16x4x4xf32, #tpu.memory_space<vmem>>, vector<1x4x4xf32>
    %94 = vector.shape_cast %93 : vector<1x4x4xf32> to vector<4x4xf32>
    %cst_64 = arith.constant dense<0.000000e+00> : vector<4x256xf32>
    %95 = tpu.matmul %94, %67, %cst_64 {dimension_numbers = #tpu.dot_dimension_numbers<[1], [0], [0], [1], [0, 0, 1, 1], [], []>} : vector<4x4xf32>, vector<4x256xf32>, vector<4x256xf32> -> vector<4x256xf32>
    %96 = arith.addf %92, %95 : vector<4x256xf32>
    %c3_65 = arith.constant 3 : index
    %c0_66 = arith.constant 0 : index
    %c0_67 = arith.constant 0 : index
    %97 = vector.load %arg5[%c3_65, %c0_66, %c0_67] : memref<16x4x4xf32, #tpu.memory_space<vmem>>, vector<1x4x4xf32>
    %98 = vector.shape_cast %97 : vector<1x4x4xf32> to vector<4x4xf32>
    %cst_68 = arith.constant dense<0.000000e+00> : vector<4x256xf32>
    %99 = tpu.matmul %98, %70, %cst_68 {dimension_numbers = #tpu.dot_dimension_numbers<[1], [0], [0], [1], [0, 0, 1, 1], [], []>} : vector<4x4xf32>, vector<4x256xf32>, vector<4x256xf32> -> vector<4x256xf32>
    %100 = arith.addf %96, %99 : vector<4x256xf32>
    %c0_69 = arith.constant 0 : index
    %c0_70 = arith.constant 0 : index
    %101 = vector.load %arg6[%c0_69, %c0_70] : memref<4x1xf32, #tpu.memory_space<vmem>>, vector<4x1xf32>
    %c4_71 = arith.constant 4 : index
    %c0_72 = arith.constant 0 : index
    %c0_73 = arith.constant 0 : index
    %102 = vector.load %arg5[%c4_71, %c0_72, %c0_73] : memref<16x4x4xf32, #tpu.memory_space<vmem>>, vector<1x4x4xf32>
    %103 = vector.shape_cast %102 : vector<1x4x4xf32> to vector<4x4xf32>
    %cst_74 = arith.constant dense<0.000000e+00> : vector<4x256xf32>
    %104 = tpu.matmul %103, %61, %cst_74 {dimension_numbers = #tpu.dot_dimension_numbers<[1], [0], [0], [1], [0, 0, 1, 1], [], []>} : vector<4x4xf32>, vector<4x256xf32>, vector<4x256xf32> -> vector<4x256xf32>
    %105 = vector.broadcast %101 : vector<4x1xf32> to vector<4x256xf32>
    %106 = arith.addf %105, %104 : vector<4x256xf32>
    %c5_75 = arith.constant 5 : index
    %c0_76 = arith.constant 0 : index
    %c0_77 = arith.constant 0 : index
    %107 = vector.load %arg5[%c5_75, %c0_76, %c0_77] : memref<16x4x4xf32, #tpu.memory_space<vmem>>, vector<1x4x4xf32>
    %108 = vector.shape_cast %107 : vector<1x4x4xf32> to vector<4x4xf32>
    %cst_78 = arith.constant dense<0.000000e+00> : vector<4x256xf32>
    %109 = tpu.matmul %108, %64, %cst_78 {dimension_numbers = #tpu.dot_dimension_numbers<[1], [0], [0], [1], [0, 0, 1, 1], [], []>} : vector<4x4xf32>, vector<4x256xf32>, vector<4x256xf32> -> vector<4x256xf32>
    %110 = arith.addf %106, %109 : vector<4x256xf32>
    %c6_79 = arith.constant 6 : index
    %c0_80 = arith.constant 0 : index
    %c0_81 = arith.constant 0 : index
    %111 = vector.load %arg5[%c6_79, %c0_80, %c0_81] : memref<16x4x4xf32, #tpu.memory_space<vmem>>, vector<1x4x4xf32>
    %112 = vector.shape_cast %111 : vector<1x4x4xf32> to vector<4x4xf32>
    %cst_82 = arith.constant dense<0.000000e+00> : vector<4x256xf32>
    %113 = tpu.matmul %112, %70, %cst_82 {dimension_numbers = #tpu.dot_dimension_numbers<[1], [0], [0], [1], [0, 0, 1, 1], [], []>} : vector<4x4xf32>, vector<4x256xf32>, vector<4x256xf32> -> vector<4x256xf32>
    %114 = arith.addf %110, %113 : vector<4x256xf32>
    %c7_83 = arith.constant 7 : index
    %c0_84 = arith.constant 0 : index
    %c0_85 = arith.constant 0 : index
    %115 = vector.load %arg5[%c7_83, %c0_84, %c0_85] : memref<16x4x4xf32, #tpu.memory_space<vmem>>, vector<1x4x4xf32>
    %116 = vector.shape_cast %115 : vector<1x4x4xf32> to vector<4x4xf32>
    %cst_86 = arith.constant dense<0.000000e+00> : vector<4x256xf32>
    %117 = tpu.matmul %116, %73, %cst_86 {dimension_numbers = #tpu.dot_dimension_numbers<[1], [0], [0], [1], [0, 0, 1, 1], [], []>} : vector<4x4xf32>, vector<4x256xf32>, vector<4x256xf32> -> vector<4x256xf32>
    %118 = arith.addf %114, %117 : vector<4x256xf32>
    %c0_87 = arith.constant 0 : index
    %c0_88 = arith.constant 0 : index
    %119 = vector.load %arg6[%c0_87, %c0_88] : memref<4x1xf32, #tpu.memory_space<vmem>>, vector<4x1xf32>
    %c8_89 = arith.constant 8 : index
    %c0_90 = arith.constant 0 : index
    %c0_91 = arith.constant 0 : index
    %120 = vector.load %arg5[%c8_89, %c0_90, %c0_91] : memref<16x4x4xf32, #tpu.memory_space<vmem>>, vector<1x4x4xf32>
    %121 = vector.shape_cast %120 : vector<1x4x4xf32> to vector<4x4xf32>
    %cst_92 = arith.constant dense<0.000000e+00> : vector<4x256xf32>
    %122 = tpu.matmul %121, %67, %cst_92 {dimension_numbers = #tpu.dot_dimension_numbers<[1], [0], [0], [1], [0, 0, 1, 1], [], []>} : vector<4x4xf32>, vector<4x256xf32>, vector<4x256xf32> -> vector<4x256xf32>
    %123 = vector.broadcast %119 : vector<4x1xf32> to vector<4x256xf32>
    %124 = arith.addf %123, %122 : vector<4x256xf32>
    %c9 = arith.constant 9 : index
    %c0_93 = arith.constant 0 : index
    %c0_94 = arith.constant 0 : index
    %125 = vector.load %arg5[%c9, %c0_93, %c0_94] : memref<16x4x4xf32, #tpu.memory_space<vmem>>, vector<1x4x4xf32>
    %126 = vector.shape_cast %125 : vector<1x4x4xf32> to vector<4x4xf32>
    %cst_95 = arith.constant dense<0.000000e+00> : vector<4x256xf32>
    %127 = tpu.matmul %126, %70, %cst_95 {dimension_numbers = #tpu.dot_dimension_numbers<[1], [0], [0], [1], [0, 0, 1, 1], [], []>} : vector<4x4xf32>, vector<4x256xf32>, vector<4x256xf32> -> vector<4x256xf32>
    %128 = arith.addf %124, %127 : vector<4x256xf32>
    %c10 = arith.constant 10 : index
    %c0_96 = arith.constant 0 : index
    %c0_97 = arith.constant 0 : index
    %129 = vector.load %arg5[%c10, %c0_96, %c0_97] : memref<16x4x4xf32, #tpu.memory_space<vmem>>, vector<1x4x4xf32>
    %130 = vector.shape_cast %129 : vector<1x4x4xf32> to vector<4x4xf32>
    %cst_98 = arith.constant dense<0.000000e+00> : vector<4x256xf32>
    %131 = tpu.matmul %130, %76, %cst_98 {dimension_numbers = #tpu.dot_dimension_numbers<[1], [0], [0], [1], [0, 0, 1, 1], [], []>} : vector<4x4xf32>, vector<4x256xf32>, vector<4x256xf32> -> vector<4x256xf32>
    %132 = arith.addf %128, %131 : vector<4x256xf32>
    %c11 = arith.constant 11 : index
    %c0_99 = arith.constant 0 : index
    %c0_100 = arith.constant 0 : index
    %133 = vector.load %arg5[%c11, %c0_99, %c0_100] : memref<16x4x4xf32, #tpu.memory_space<vmem>>, vector<1x4x4xf32>
    %134 = vector.shape_cast %133 : vector<1x4x4xf32> to vector<4x4xf32>
    %cst_101 = arith.constant dense<0.000000e+00> : vector<4x256xf32>
    %135 = tpu.matmul %134, %79, %cst_101 {dimension_numbers = #tpu.dot_dimension_numbers<[1], [0], [0], [1], [0, 0, 1, 1], [], []>} : vector<4x4xf32>, vector<4x256xf32>, vector<4x256xf32> -> vector<4x256xf32>
    %136 = arith.addf %132, %135 : vector<4x256xf32>
    %c0_102 = arith.constant 0 : index
    %c0_103 = arith.constant 0 : index
    %137 = vector.load %arg6[%c0_102, %c0_103] : memref<4x1xf32, #tpu.memory_space<vmem>>, vector<4x1xf32>
    %c12 = arith.constant 12 : index
    %c0_104 = arith.constant 0 : index
    %c0_105 = arith.constant 0 : index
    %138 = vector.load %arg5[%c12, %c0_104, %c0_105] : memref<16x4x4xf32, #tpu.memory_space<vmem>>, vector<1x4x4xf32>
    %139 = vector.shape_cast %138 : vector<1x4x4xf32> to vector<4x4xf32>
    %cst_106 = arith.constant dense<0.000000e+00> : vector<4x256xf32>
    %140 = tpu.matmul %139, %70, %cst_106 {dimension_numbers = #tpu.dot_dimension_numbers<[1], [0], [0], [1], [0, 0, 1, 1], [], []>} : vector<4x4xf32>, vector<4x256xf32>, vector<4x256xf32> -> vector<4x256xf32>
    %141 = vector.broadcast %137 : vector<4x1xf32> to vector<4x256xf32>
    %142 = arith.addf %141, %140 : vector<4x256xf32>
    %c13 = arith.constant 13 : index
    %c0_107 = arith.constant 0 : index
    %c0_108 = arith.constant 0 : index
    %143 = vector.load %arg5[%c13, %c0_107, %c0_108] : memref<16x4x4xf32, #tpu.memory_space<vmem>>, vector<1x4x4xf32>
    %144 = vector.shape_cast %143 : vector<1x4x4xf32> to vector<4x4xf32>
    %cst_109 = arith.constant dense<0.000000e+00> : vector<4x256xf32>
    %145 = tpu.matmul %144, %73, %cst_109 {dimension_numbers = #tpu.dot_dimension_numbers<[1], [0], [0], [1], [0, 0, 1, 1], [], []>} : vector<4x4xf32>, vector<4x256xf32>, vector<4x256xf32> -> vector<4x256xf32>
    %146 = arith.addf %142, %145 : vector<4x256xf32>
    %c14 = arith.constant 14 : index
    %c0_110 = arith.constant 0 : index
    %c0_111 = arith.constant 0 : index
    %147 = vector.load %arg5[%c14, %c0_110, %c0_111] : memref<16x4x4xf32, #tpu.memory_space<vmem>>, vector<1x4x4xf32>
    %148 = vector.shape_cast %147 : vector<1x4x4xf32> to vector<4x4xf32>
    %cst_112 = arith.constant dense<0.000000e+00> : vector<4x256xf32>
    %149 = tpu.matmul %148, %79, %cst_112 {dimension_numbers = #tpu.dot_dimension_numbers<[1], [0], [0], [1], [0, 0, 1, 1], [], []>} : vector<4x4xf32>, vector<4x256xf32>, vector<4x256xf32> -> vector<4x256xf32>
    %150 = arith.addf %146, %149 : vector<4x256xf32>
    %c15 = arith.constant 15 : index
    %c0_113 = arith.constant 0 : index
    %c0_114 = arith.constant 0 : index
    %151 = vector.load %arg5[%c15, %c0_113, %c0_114] : memref<16x4x4xf32, #tpu.memory_space<vmem>>, vector<1x4x4xf32>
    %152 = vector.shape_cast %151 : vector<1x4x4xf32> to vector<4x4xf32>
    %cst_115 = arith.constant dense<0.000000e+00> : vector<4x256xf32>
    %153 = tpu.matmul %152, %82, %cst_115 {dimension_numbers = #tpu.dot_dimension_numbers<[1], [0], [0], [1], [0, 0, 1, 1], [], []>} : vector<4x4xf32>, vector<4x256xf32>, vector<4x256xf32> -> vector<4x256xf32>
    %154 = arith.addf %150, %153 : vector<4x256xf32>
    %cst_116 = arith.constant dense<0.000000e+00> : vector<4xf32>
    %155 = vector.multi_reduction <add>, %100, %cst_116 [1] : vector<4x256xf32> to vector<4xf32>
    %156 = vector.shape_cast %155 : vector<4xf32> to vector<4x1xf32>
    %cst_117 = arith.constant 0.000000e+00 : f32
    %157 = vector.broadcast %cst_117 : f32 to vector<4x1xf32>
    %158 = arith.addf %157, %156 : vector<4x1xf32>
    %cst_118 = arith.constant dense<0.000000e+00> : vector<4xf32>
    %159 = vector.multi_reduction <add>, %118, %cst_118 [1] : vector<4x256xf32> to vector<4xf32>
    %160 = vector.shape_cast %159 : vector<4xf32> to vector<4x1xf32>
    %161 = arith.addf %158, %160 : vector<4x1xf32>
    %cst_119 = arith.constant dense<0.000000e+00> : vector<4xf32>
    %162 = vector.multi_reduction <add>, %136, %cst_119 [1] : vector<4x256xf32> to vector<4xf32>
    %163 = vector.shape_cast %162 : vector<4xf32> to vector<4x1xf32>
    %164 = arith.addf %161, %163 : vector<4x1xf32>
    %cst_120 = arith.constant dense<0.000000e+00> : vector<4xf32>
    %165 = vector.multi_reduction <add>, %154, %cst_120 [1] : vector<4x256xf32> to vector<4xf32>
    %166 = vector.shape_cast %165 : vector<4xf32> to vector<4x1xf32>
    %167 = arith.addf %164, %166 : vector<4x1xf32>
    %cst_121 = arith.constant 9.765625E-4 : f32
    %168 = vector.broadcast %cst_121 : f32 to vector<4x1xf32>
    %169 = arith.mulf %167, %168 : vector<4x1xf32>
    %170 = vector.broadcast %169 : vector<4x1xf32> to vector<4x256xf32>
    %171 = arith.subf %100, %170 : vector<4x256xf32>
    %172 = vector.broadcast %169 : vector<4x1xf32> to vector<4x256xf32>
    %173 = arith.subf %118, %172 : vector<4x256xf32>
    %174 = vector.broadcast %169 : vector<4x1xf32> to vector<4x256xf32>
    %175 = arith.subf %136, %174 : vector<4x256xf32>
    %176 = vector.broadcast %169 : vector<4x1xf32> to vector<4x256xf32>
    %177 = arith.subf %154, %176 : vector<4x256xf32>
    %178 = arith.mulf %171, %171 : vector<4x256xf32>
    %cst_122 = arith.constant dense<0.000000e+00> : vector<4xf32>
    %179 = vector.multi_reduction <add>, %178, %cst_122 [1] : vector<4x256xf32> to vector<4xf32>
    %180 = vector.shape_cast %179 : vector<4xf32> to vector<4x1xf32>
    %cst_123 = arith.constant 0.000000e+00 : f32
    %181 = vector.broadcast %cst_123 : f32 to vector<4x1xf32>
    %182 = arith.addf %181, %180 : vector<4x1xf32>
    %183 = arith.mulf %173, %173 : vector<4x256xf32>
    %cst_124 = arith.constant dense<0.000000e+00> : vector<4xf32>
    %184 = vector.multi_reduction <add>, %183, %cst_124 [1] : vector<4x256xf32> to vector<4xf32>
    %185 = vector.shape_cast %184 : vector<4xf32> to vector<4x1xf32>
    %186 = arith.addf %182, %185 : vector<4x1xf32>
    %187 = arith.mulf %175, %175 : vector<4x256xf32>
    %cst_125 = arith.constant dense<0.000000e+00> : vector<4xf32>
    %188 = vector.multi_reduction <add>, %187, %cst_125 [1] : vector<4x256xf32> to vector<4xf32>
    %189 = vector.shape_cast %188 : vector<4xf32> to vector<4x1xf32>
    %190 = arith.addf %186, %189 : vector<4x1xf32>
    %191 = arith.mulf %177, %177 : vector<4x256xf32>
    %cst_126 = arith.constant dense<0.000000e+00> : vector<4xf32>
    %192 = vector.multi_reduction <add>, %191, %cst_126 [1] : vector<4x256xf32> to vector<4xf32>
    %193 = vector.shape_cast %192 : vector<4xf32> to vector<4x1xf32>
    %194 = arith.addf %190, %193 : vector<4x1xf32>
    %cst_127 = arith.constant 9.765625E-4 : f32
    %195 = vector.broadcast %cst_127 : f32 to vector<4x1xf32>
    %196 = arith.mulf %194, %195 : vector<4x1xf32>
    %cst_128 = arith.constant 9.99999974E-6 : f32
    %197 = vector.broadcast %cst_128 : f32 to vector<4x1xf32>
    %198 = arith.addf %196, %197 : vector<4x1xf32>
    %199 = math.rsqrt %198 : vector<4x1xf32>
    %200 = vector.broadcast %199 : vector<4x1xf32> to vector<4x256xf32>
    %201 = arith.mulf %171, %200 : vector<4x256xf32>
    %cst_129 = arith.constant 0.000000e+00 : f32
    %202 = vector.broadcast %cst_129 : f32 to vector<4x256xf32>
    %203 = arith.maximumf %201, %202 : vector<4x256xf32>
    %c0_130 = arith.constant 0 : index
    %c0_131 = arith.constant 0 : index
    %204 = vector.load %arg7[%c0_130, %c0_131] : memref<16x4xf32, #tpu.memory_space<vmem>>, vector<16x4xf32>
    %cst_132 = arith.constant dense<0.000000e+00> : vector<16x256xf32>
    %205 = tpu.matmul %204, %203, %cst_132 {dimension_numbers = #tpu.dot_dimension_numbers<[1], [0], [0], [1], [0, 0, 1, 1], [], []>} : vector<16x4xf32>, vector<4x256xf32>, vector<16x256xf32> -> vector<16x256xf32>
    %c0_133 = arith.constant 0 : index
    %c0_134 = arith.constant 0 : index
    %206 = vector.load %arg8[%c0_133, %c0_134] : memref<16x1xf32, #tpu.memory_space<vmem>>, vector<16x1xf32>
    %207 = vector.broadcast %206 : vector<16x1xf32> to vector<16x256xf32>
    %208 = arith.addf %205, %207 : vector<16x256xf32>
    %209 = arith.addf %208, %6 : vector<16x256xf32>
    %c0_135 = arith.constant 0 : index
    %c0_136 = arith.constant 0 : index
    %c0_137 = arith.constant 0 : index
    %c0_138 = arith.constant 0 : index
    %210 = vector.load %arg11[%c0_135, %c0_136, %c0_137, %c0_138] : memref<1x4x16x256xf32, #tpu.memory_space<vmem>>, vector<1x1x16x256xf32>
    %211 = vector.shape_cast %210 : vector<1x1x16x256xf32> to vector<16x256xf32>
    %212 = vector.shape_cast %209 : vector<16x256xf32> to vector<1x1x16x256xf32>
    tpu.vector_store %arg11[%c0_135, %c0_136, %c0_137, %c0_138], %212 {strides = array<i32>} : memref<1x4x16x256xf32, #tpu.memory_space<vmem>>, vector<1x1x16x256xf32>,
    %213 = vector.broadcast %199 : vector<4x1xf32> to vector<4x256xf32>
    %214 = arith.mulf %173, %213 : vector<4x256xf32>
    %cst_139 = arith.constant 0.000000e+00 : f32
    %215 = vector.broadcast %cst_139 : f32 to vector<4x256xf32>
    %216 = arith.maximumf %214, %215 : vector<4x256xf32>
    %c0_140 = arith.constant 0 : index
    %c0_141 = arith.constant 0 : index
    %217 = vector.load %arg7[%c0_140, %c0_141] : memref<16x4xf32, #tpu.memory_space<vmem>>, vector<16x4xf32>
    %cst_142 = arith.constant dense<0.000000e+00> : vector<16x256xf32>
    %218 = tpu.matmul %217, %216, %cst_142 {dimension_numbers = #tpu.dot_dimension_numbers<[1], [0], [0], [1], [0, 0, 1, 1], [], []>} : vector<16x4xf32>, vector<4x256xf32>, vector<16x256xf32> -> vector<16x256xf32>
    %c0_143 = arith.constant 0 : index
    %c0_144 = arith.constant 0 : index
    %219 = vector.load %arg8[%c0_143, %c0_144] : memref<16x1xf32, #tpu.memory_space<vmem>>, vector<16x1xf32>
    %220 = vector.broadcast %219 : vector<16x1xf32> to vector<16x256xf32>
    %221 = arith.addf %218, %220 : vector<16x256xf32>
    %222 = arith.addf %221, %6 : vector<16x256xf32>
    %c0_145 = arith.constant 0 : index
    %c1_146 = arith.constant 1 : index
    %c0_147 = arith.constant 0 : index
    %c0_148 = arith.constant 0 : index
    %223 = vector.load %arg11[%c0_145, %c1_146, %c0_147, %c0_148] : memref<1x4x16x256xf32, #tpu.memory_space<vmem>>, vector<1x1x16x256xf32>
    %224 = vector.shape_cast %223 : vector<1x1x16x256xf32> to vector<16x256xf32>
    %225 = vector.shape_cast %222 : vector<16x256xf32> to vector<1x1x16x256xf32>
    tpu.vector_store %arg11[%c0_145, %c1_146, %c0_147, %c0_148], %225 {strides = array<i32>} : memref<1x4x16x256xf32, #tpu.memory_space<vmem>>, vector<1x1x16x256xf32>,
    %226 = vector.broadcast %199 : vector<4x1xf32> to vector<4x256xf32>
    %227 = arith.mulf %175, %226 : vector<4x256xf32>
    %cst_149 = arith.constant 0.000000e+00 : f32
    %228 = vector.broadcast %cst_149 : f32 to vector<4x256xf32>
    %229 = arith.maximumf %227, %228 : vector<4x256xf32>
    %c0_150 = arith.constant 0 : index
    %c0_151 = arith.constant 0 : index
    %230 = vector.load %arg7[%c0_150, %c0_151] : memref<16x4xf32, #tpu.memory_space<vmem>>, vector<16x4xf32>
    %cst_152 = arith.constant dense<0.000000e+00> : vector<16x256xf32>
    %231 = tpu.matmul %230, %229, %cst_152 {dimension_numbers = #tpu.dot_dimension_numbers<[1], [0], [0], [1], [0, 0, 1, 1], [], []>} : vector<16x4xf32>, vector<4x256xf32>, vector<16x256xf32> -> vector<16x256xf32>
    %c0_153 = arith.constant 0 : index
    %c0_154 = arith.constant 0 : index
    %232 = vector.load %arg8[%c0_153, %c0_154] : memref<16x1xf32, #tpu.memory_space<vmem>>, vector<16x1xf32>
    %233 = vector.broadcast %232 : vector<16x1xf32> to vector<16x256xf32>
    %234 = arith.addf %231, %233 : vector<16x256xf32>
    %235 = arith.addf %234, %6 : vector<16x256xf32>
    %c0_155 = arith.constant 0 : index
    %c2_156 = arith.constant 2 : index
    %c0_157 = arith.constant 0 : index
    %c0_158 = arith.constant 0 : index
    %236 = vector.load %arg11[%c0_155, %c2_156, %c0_157, %c0_158] : memref<1x4x16x256xf32, #tpu.memory_space<vmem>>, vector<1x1x16x256xf32>
    %237 = vector.shape_cast %236 : vector<1x1x16x256xf32> to vector<16x256xf32>
    %238 = vector.shape_cast %235 : vector<16x256xf32> to vector<1x1x16x256xf32>
    tpu.vector_store %arg11[%c0_155, %c2_156, %c0_157, %c0_158], %238 {strides = array<i32>} : memref<1x4x16x256xf32, #tpu.memory_space<vmem>>, vector<1x1x16x256xf32>,
    %239 = vector.broadcast %199 : vector<4x1xf32> to vector<4x256xf32>
    %240 = arith.mulf %177, %239 : vector<4x256xf32>
    %cst_159 = arith.constant 0.000000e+00 : f32
    %241 = vector.broadcast %cst_159 : f32 to vector<4x256xf32>
    %242 = arith.maximumf %240, %241 : vector<4x256xf32>
    %c0_160 = arith.constant 0 : index
    %c0_161 = arith.constant 0 : index
    %243 = vector.load %arg7[%c0_160, %c0_161] : memref<16x4xf32, #tpu.memory_space<vmem>>, vector<16x4xf32>
    %cst_162 = arith.constant dense<0.000000e+00> : vector<16x256xf32>
    %244 = tpu.matmul %243, %242, %cst_162 {dimension_numbers = #tpu.dot_dimension_numbers<[1], [0], [0], [1], [0, 0, 1, 1], [], []>} : vector<16x4xf32>, vector<4x256xf32>, vector<16x256xf32> -> vector<16x256xf32>
    %c0_163 = arith.constant 0 : index
    %c0_164 = arith.constant 0 : index
    %245 = vector.load %arg8[%c0_163, %c0_164] : memref<16x1xf32, #tpu.memory_space<vmem>>, vector<16x1xf32>
    %246 = vector.broadcast %245 : vector<16x1xf32> to vector<16x256xf32>
    %247 = arith.addf %244, %246 : vector<16x256xf32>
    %248 = arith.addf %247, %6 : vector<16x256xf32>
    %c0_165 = arith.constant 0 : index
    %c3_166 = arith.constant 3 : index
    %c0_167 = arith.constant 0 : index
    %c0_168 = arith.constant 0 : index
    %249 = vector.load %arg11[%c0_165, %c3_166, %c0_167, %c0_168] : memref<1x4x16x256xf32, #tpu.memory_space<vmem>>, vector<1x1x16x256xf32>
    %250 = vector.shape_cast %249 : vector<1x1x16x256xf32> to vector<16x256xf32>
    %251 = vector.shape_cast %248 : vector<16x256xf32> to vector<1x1x16x256xf32>
    tpu.vector_store %arg11[%c0_165, %c3_166, %c0_167, %c0_168], %251 {strides = array<i32>} : memref<1x4x16x256xf32, #tpu.memory_space<vmem>>, vector<1x1x16x256xf32>,
    return
  }
  func.func @transform_0(%arg0: i32) -> (i32, i32, i32) {
    %c0_i32 = arith.constant 0 : i32
    %c0_i32_0 = arith.constant 0 : i32
    %c0_i32_1 = arith.constant 0 : i32
    return %arg0, %c0_i32, %c0_i32_0 : i32, i32, i32
  }
  func.func @transform_1(%arg0: i32) -> (i32, i32, i32) {
    %c0_i32 = arith.constant 0 : i32
    %c0_i32_0 = arith.constant 0 : i32
    %c0_i32_1 = arith.constant 0 : i32
    %c0_i32_2 = arith.constant 0 : i32
    return %c0_i32, %c0_i32_0, %c0_i32_1 : i32, i32, i32
  }
  func.func @transform_2(%arg0: i32) -> (i32, i32) {
    %c0_i32 = arith.constant 0 : i32
    %c0_i32_0 = arith.constant 0 : i32
    %c0_i32_1 = arith.constant 0 : i32
    return %c0_i32, %c0_i32_0 : i32, i32
  }
  func.func @transform_3(%arg0: i32) -> (i32, i32) {
    %c0_i32 = arith.constant 0 : i32
    %c0_i32_0 = arith.constant 0 : i32
    %c0_i32_1 = arith.constant 0 : i32
    return %c0_i32, %c0_i32_0 : i32, i32
  }
  func.func @transform_4(%arg0: i32) -> (i32, i32, i32) {
    %c0_i32 = arith.constant 0 : i32
    %c0_i32_0 = arith.constant 0 : i32
    %c0_i32_1 = arith.constant 0 : i32
    %c0_i32_2 = arith.constant 0 : i32
    return %c0_i32, %c0_i32_0, %c0_i32_1 : i32, i32, i32
  }
  func.func @transform_5(%arg0: i32) -> (i32, i32) {
    %c0_i32 = arith.constant 0 : i32
    %c0_i32_0 = arith.constant 0 : i32
    %c0_i32_1 = arith.constant 0 : i32
    return %c0_i32, %c0_i32_0 : i32, i32
  }
  func.func @transform_6(%arg0: i32) -> (i32, i32) {
    %c0_i32 = arith.constant 0 : i32
    %c0_i32_0 = arith.constant 0 : i32
    %c0_i32_1 = arith.constant 0 : i32
    return %c0_i32, %c0_i32_0 : i32, i32
  }
  func.func @transform_7(%arg0: i32) -> (i32, i32) {
    %c0_i32 = arith.constant 0 : i32
    %c0_i32_0 = arith.constant 0 : i32
    %c0_i32_1 = arith.constant 0 : i32
    return %c0_i32, %c0_i32_0 : i32, i32
  }
  func.func @transform_8(%arg0: i32) -> (i32, i32) {
    %c0_i32 = arith.constant 0 : i32
    %c0_i32_0 = arith.constant 0 : i32
    %c0_i32_1 = arith.constant 0 : i32
    return %c0_i32, %c0_i32_0 : i32, i32
  }
  func.func @transform_9(%arg0: i32) -> (i32, i32) {
    %c0_i32 = arith.constant 0 : i32
    %c0_i32_0 = arith.constant 0 : i32
    %c0_i32_1 = arith.constant 0 : i32
    return %c0_i32, %c0_i32_0 : i32, i32
  }
  func.func @transform_10(%arg0: i32) -> (i32, i32, i32, i32) {
    %c0_i32 = arith.constant 0 : i32
    %c0_i32_0 = arith.constant 0 : i32
    %c0_i32_1 = arith.constant 0 : i32
    %c0_i32_2 = arith.constant 0 : i32
    return %arg0, %c0_i32, %c0_i32_0, %c0_i32_1 : i32, i32, i32, i32
  }
}

</mosaic_0001>

<bundles_post_ra>
// kernel: tpu_custom_call.1
= control target key start
LH: loop header
LB: loop body
LE: loop exit
PB: predicated region body
PF: predicated region fallthrough
CT: control target
= control target key end

     0   :  { %s4242_s0 = inlined_call_operand.hbm [shape: f32[2,4,256], index: 0, kind: input, shape index: {}]   ;;  %s4243_s1 = inlined_call_operand.hbm [shape: f32[9,256,256], index: 1, kind: input, shape index: {}]   ;;  %s4244_s2 = inlined_call_operand.hbm [shape: f32[4,4], index: 2, kind: input, shape index: {}]   ;;  %s4245_s3 = inlined_call_operand.vmem [shape: f32[4,1], index: 3, kind: input, shape index: {}]   ;;  %s4246_s4 = inlined_call_operand.vmem [shape: f32[16,4,4], index: 4, kind: input, shape index: {}]   ;;  %s4247_s5 = inlined_call_operand.vmem [shape: f32[4,1], index: 5, kind: input, shape index: {}]   ;;  %s4248_s6 = inlined_call_operand.vmem [shape: f32[16,4], index: 6, kind: input, shape index: {}]   ;;  %s4249_s7 = inlined_call_operand.vmem [shape: f32[16,1], index: 7, kind: input, shape index: {}]   ;;  %s4250_s8 = inlined_call_operand.vmem [shape: f32[16,4], index: 8, kind: input, shape index: {}]   ;;  %s4251_s9 = inlined_call_operand.vmem [shape: f32[16,1], index: 9, kind: input, shape index: {}]   ;;  %s4252_s10 = inlined_call_operand.hbm [shape: f32[2,4,16,256], index: 10, kind: output, shape index: {}]  }
   0x1   :  { %4256 = sst [smem:[#allocation15_spill]] %s4243_s1 }
   0x2   :  { %4257 = sst [smem:[#allocation16_spill]] %s4244_s2 }
   0x3   :  { %15 = vsyncpa [#allocation3], 0 }
   0x4   :  { %17 = vsyncpa [#allocation3 + $0x1], 0 }
   0x5   :  { %18 = vsyncpa [#allocation6], 0 }
   0x6   :  { %19 = vsyncpa [#allocation4], 0 }
   0x7   :  { %21 = vsyncpa [#allocation4 + $0x1], 0  ;;  %s3727_s13 = smov 0   ;;  %s3729_s14 = smov 0  }
   0x8   :  { %s3731_s15 = smov 0   ;;  %s3733_s16 = smov 0  }
   0x9 LB: > { %4258 = sst [smem:[#allocation12_spill]] %s3657_s15  ;;  %s3751_s20 = sadd.s32 4294967295, %s3661_s16   ;;  %s3661_s16 = sphi %s3733_s16, %s4270_s16   ;;  %s3657_s15 = sphi %s3731_s15, %s4272_s15   ;;  %s3653_s14 = sphi %s3729_s14, %s4274_s14   ;;  %s3649_s13 = sphi %s3727_s13, %s4273_s13  }
   0xa   : > { %s4259_s1 = sld [smem:[#allocation15_spill]]  ;;  %p3272_p0 = scmp.ge.s32.totalorder %s3661_s16, 1 }
   0xb   : > { %p48_p1 = scmp.eq.s32.totalorder %s3751_s20, 0  ;;  %p273_p2 = scmp.lt.s32.totalorder %s3661_s16, 3 }
   0xc   : > { %s3663_s22 = smov [#allocation5]   ;;  %s4261_s2 = sld [smem:[#allocation16_spill]] }
   0xd   : > { %p3756_p3 = pnand %p3272_p0, %p273_p2  ;;  %s286_s23 = sshll.u32 %s3663_s22, 4  ;;  %s287_s23 = int_to_ptr.vmem [resolvable:$true] %s286_s23 }
   0xe   : > { %s3664_s27 = smov [#allocation7]   ;;  %s3665_s29 = smov 256  }
   0xf   : > { %p3428_p4 = pneg %p3756_p3  ;;  %s301_s28 = sshll.u32 %s3664_s27, 4  ;;  %s302_s28 = int_to_ptr.vmem [resolvable:$true] %s301_s28 }
  0x10   : > { %s284_s19 = sshll.u32 %s4259_s1, 4  ;;  %s3666_s30 = smov 16   ;;  %s285_s19 = int_to_ptr.hbm [resolvable:$true] %s284_s19 }
  0x11   : > { %p3429_p6 = pnand %p3428_p4, %p48_p1  ;;  %s3271_s11 = sadd.s32 4294967294, %s3661_s16  }
  0x12   : > { %s299_s26 = sshll.u32 %s4261_s2, 4  ;;  %s3770_s12 = sadd.s32 1, %s3661_s16   ;;  %s300_s26 = int_to_ptr.hbm [resolvable:$true] %s299_s26 }
  0x13   : > { %3431 = dma.hbm_to_vmem [thread:$0]  (!%p3429_p6), %s285_s19, 73728, %s287_s23, [#allocation6], %s3665_s29, %s3665_s29, %s3666_s30  }
  0x14   : > { %3434 = dma.hbm_to_vmem [thread:$0]  (!%p3429_p6), %s300_s26, 64, %s302_s28, [#allocation6]  }
  0x15   : > { %4262 = sst [smem:[#allocation13_spill]] %s3770_s12  ;;  %s31_s17 = ssub.s32 %s3661_s16, %s3770_s12 }
  0x16   : > { %s34_s18 = sadd.s32 1, %s3657_s15  ;;  %p32_p7 = scmp.eq.s32.totalorder %s31_s17, 0 }
  0x17   : > { %p41_p8 = scmp.ne.s32.totalorder %s3657_s15, %s3653_s14  ;;  %p42_p9 = scmp.eq.s32.totalorder %s3661_s16, 0 }
  0x18   : > { %p47_p10 = scmp.ne.s32.totalorder %s3653_s14, %s3649_s13  ;;  %p260_p13 = scmp.eq.s32.totalorder %s3751_s20, 1 }
  0x19   : > { %s3781_s22 = scalar_select %p32_p7, %s3657_s15, %s34_s18  }
  0x1a   : > { %p3783_p11 = por %p42_p9, %p41_p8  ;;  %p3789_p12 = por %p48_p1, %p47_p10 }
  0x1b   : > { %4263 = sst [smem:[#allocation14_spill]] %s3781_s22  ;;  %p266_p0 = scmp.eq.s32.totalorder %s3271_s11, 1 }
  0x1c   : > { %p3445_p2 = scmp.lt.s32.totalorder %s3661_s16, 2  ;;  %s333_s23 = sand.u32 1, %s3657_s15  }
  0x1d   : > { %p3796_p4 = por %p260_p13, %p41_p8  ;;  %p3800_p6 = por %p266_p0, %p47_p10 }
  0x1e   : > { %s3276_s27 = sshll.u32 %s333_s23, 3  ;;  %s3414_s28 = sshll.u32 %s3661_s16, 3 }
  0x1f   : > { %s342_s17 = scalar_lea.hbm %s4242_s0, %s3414_s28  ;;  %s337_s18 = scalar_lea.vmem [#allocation2], %s3276_s27 }
  0x20   : > { %s346_s1 = sshll.u32 %s337_s18, 4  ;;  %s344_s2 = sshll.u32 %s342_s17, 4  ;;  %s347_s1 = int_to_ptr.vmem [resolvable:$true] %s346_s1  ;;  %s345_s2 = int_to_ptr.hbm [resolvable:$true] %s344_s2 }
  0x21   : > { %p3810_p7 = pnand %p3445_p2, %p3783_p11  ;;  %s334_s22 = scalar_lea.sflag [#allocation3], %s333_s23 }
  0x22   : > { %s3561_s15 = sshra.s32 %s345_s2, 4  ;;  %s3568_s29 = scalar_lea.hbm %s4242_s0, 16  ;;  %s3562_s15 = int_to_ptr.hbm [resolvable:$true] %s3561_s15 }
  0x23   : > { %s3563_s12 = scalar_lea.hbm %s3562_s15, 8  ;;  %p3565_p9 = pneg %p3810_p7 }
  0x24   : > { %p3564_p8 = scmp.ne.s32.totalorder %s3562_s15, %s3563_s12  ;;  %p3569_p11 = scmp.lt.s32.totalorder %s3562_s15, %s4242_s0 }
  0x25   : > { %p3570_p0 = scmp.lt.s32.totalorder %s3568_s29, %s3563_s12 }
  0x26   : > { %p3566_p10 = pnand %p3565_p9, %p3564_p8 }
  0x27   : > { %p3571_p2 = por %p3570_p0, %p3569_p11 }
  0x28   : > { %p3567_p13 = pneg %p3566_p10 }
  0x2a   : > { %p3572_p5 = pnand %p3571_p2, %p3567_p13 }
  0x2c   : > { %3575 = shalt.err (!%p3572_p5)
}
  0x2d   : > { %3438 = dma.hbm_to_vmem [thread:$0]  (!%p3810_p7), %s345_s2, 128, %s347_s1, %s334_s22  }
  0x2e   : > { %355 = sbr.rel (%p3756_p3) target bundleno = 1734 (0x6c6), region = 60  ;;  %s3827_s23 = sand.u32 (!%p3756_p3), 1, %s3653_s14  }
  0x2f   : > { %s3280_s17 = sshll.u32 (!%p3756_p3), %s3827_s23, 3  ;;  %s358_s18 = scalar_lea.sflag (!%p3756_p3), [#allocation3], %s3827_s23 }
  0x30   : > { %s361_s27 = scalar_lea.vmem (!%p3756_p3), [#allocation2], %s3280_s17 }
  0x33   : > { %3636 = dma.done.wait (%p3789_p12), %s358_s18, 128  }
  0x34   : > { %3638 = vsyncadd (%p3789_p12), %s358_s18, 4294967168 }
  0x35   : > { %3640 = dma.done.wait (%p48_p1), [#allocation6], 73792  }
  0x36   : > { %3642 = vsyncadd (%p48_p1), [#allocation6], 4294893504  ;;  %v409_v0 = vld [vmem:[%s361_s27] sm:$0xff]  ;;  %vm435_vm0 = vcmask 1043456   ;;  %v3667_v8 = vmov 256.0   ;;  %v3669_v32 = vmov 0  }
  0x37   : > { %425 = vst [vmem:[#allocation1] ss:$2 sm:$0xff] %v409_v0  ;;  %3493 = vrcp.f32 %v3667_v8  ;;  %v3668_v14 = vmov 839922192   ;;  %v544_v31 = vld [vmem:[%s4245_s3] sm:$0xf]  ;;  %3490 = vset.pattern.permute.xlu1 %v3669_v32  ;;  %3491 = vset.pattern.permute.xlu2 %v3669_v32 }
  0x38   : > { %v506_v15 = vunpack.c.l.s4 %v3668_v14  ;;  %547 = vperm.xlu1 %3490, %v544_v31   ;;  %3492 = vset.pattern.permute.xlu0 %v3669_v32  ;;  %vm428_vm5 = vcmask 31744   ;;  %v543_v43 = vld [vmem:[#allocation7] sm:$0xf]  ;;  %v662_v54 = vld [vmem:[#allocation5 + $0xf0] sm:$0xff]  ;;  %v663_v56 = vld [vmem:[#allocation5 + $0xf8] sm:$0xff]  ;;  %s3283_s11 = sshll.u32 %s3827_s23, 7 }
  0x39   : > { %v694_v55 = vld [vmem:[#allocation5 + $0x1f0] sm:$0xff]  ;;  %v695_v57 = vld [vmem:[#allocation5 + $0x1f8] sm:$0xff]  ;;  %v660_v58 = vld [vmem:[#allocation5 + $0xe0] sm:$0xff]  ;;  %s4188_s28 = scalar_lea.vmem [#allocation8], %s3283_s11  ;;  %s3415_s29 = sshll.u32 %s3751_s20, 7 }
  0x3a   : > { %v507_v17 = vunpack.c.0.s8 %v506_v15  ;;  %v692_v59 = vld [vmem:[#allocation5 + $0x1e0] sm:$0xff]  ;;  %v661_v60 = vld [vmem:[#allocation5 + $0xe8] sm:$0xff]  ;;  %v658_v62 = vld [vmem:[#allocation5 + $0xd0] sm:$0xff]  ;;  %s3175_s17 = scalar_lea.hbm %s4252_s10, %s3415_s29  ;;  %s3176_s20 = sshll.u32 %s4188_s28, 4  ;;  %s3177_s20 = int_to_ptr.vmem [resolvable:$true] %s3176_s20 }
  0x3b   : > { %v693_v61 = vld [vmem:[#allocation5 + $0x1e8] sm:$0xff]  ;;  %v690_v63 = vld [vmem:[#allocation5 + $0x1d0] sm:$0xff]  ;;  %v655_v8 = vld [vmem:[#allocation5 + $0xb8] sm:$0xff]  ;;  %s3178_s18 = sshll.u32 %s3175_s17, 4  ;;  %s3164_s27 = scalar_lea.sflag [#allocation4], %s3827_s23  ;;  %s3179_s18 = int_to_ptr.hbm [resolvable:$true] %s3178_s18 }
  0x3c   : > { %v650_v14 = vld [vmem:[#allocation5 + $0x90] sm:$0xff]  ;;  %s3605_s1 = sshra.s32 %s3179_s18, 4  ;;  %s3611_s12 = scalar_lea.hbm %s4252_s10, 256  ;;  %s3606_s1 = int_to_ptr.hbm [resolvable:$true] %s3605_s1 }
  0x3d   : > { %v3494_v9 = vpop.eup %3493  ;;  %v682_v15 = vld [vmem:[#allocation5 + $0x190] sm:$0xff]  ;;  %s3607_s2 = scalar_lea.hbm %s3606_s1, 128  ;;  %p3612_p12 = scmp.lt.s32.totalorder %s3606_s1, %s4252_s10 }
  0x3e   : > { %v426_v1 = vld.sshfl [vmem:[#allocation1] sm:$0xff pattern:$0x75316420]  ;;  %v427_v2 = vld.sshfl [vmem:[#allocation1 + $0x8] sm:$0xff pattern:$0x75316420]  ;;  %vm501_vm1 = vweird.f32 %v3494_v9  ;;  %p3608_p1 = scmp.ne.s32.totalorder %s3606_s1, %s3607_s2  ;;  %p3613_p7 = scmp.lt.s32.totalorder %s3611_s12, %s3607_s2 }
  0x3f   : > { %486 = vst [vmem:[#allocation1] ss:$2 sm:$0xff] %v409_v0  ;;  %3284 = vmatpush.msk.msra.mxu0 %vm435_vm0, %v426_v1  ;;  %3287 = vmatpush.msk.msra.mxu1 %vm435_vm0, %v427_v2  ;;  %v497_v10 = vmul.f32 256.0, %v3494_v9  ;;  %v691_v1 = vld [vmem:[#allocation5 + $0x1d8] sm:$0xff]  ;;  %v656_v2 = vld [vmem:[#allocation5 + $0xc0] sm:$0xff]  ;;  %v642_v31 = vld [vmem:[#allocation5 + $0x50] sm:$0xff] }
  0x40   : > { %v674_v32 = vld [vmem:[#allocation5 + $0x150] sm:$0xff]  ;;  %p3609_p3 = pnand %p3608_p1, %p3796_p4  ;;  %p3614_p8 = por %p3613_p7, %p3612_p12 }
  0x41   : > { %v498_v11 = vsub.f32 1.0, %v497_v10  ;;  %696 = vmatpush.msrb.mxu0 %v662_v54  ;;  %716 = vmatpush.msrb.mxu1 %v694_v55  ;;  %v652_v10 = vld [vmem:[#allocation5 + $0xa0] sm:$0xff]  ;;  %v666_v54 = vld [vmem:[#allocation5 + $0x110] sm:$0xff] }
  0x42   : > { %p3610_p5 = pneg %p3609_p3 }
  0x43   : > { %v499_v12 = vmul.f32 %v3494_v9, %v498_v11  ;;  %697 = vmatpush.msrb.mxu0 %v660_v58  ;;  %717 = vmatpush.msrb.mxu1 %v692_v59  ;;  %v684_v11 = vld [vmem:[#allocation5 + $0x1a0] sm:$0xff] }
  0x44   : > { %v664_v58 = vld [vmem:[#allocation5 + $0x100] sm:$0xff]  ;;  %p3615_p9 = pnand %p3614_p8, %p3610_p5 }
  0x45   : > { %v500_v13 = vadd.f32 %v3494_v9, %v499_v12  ;;  %698 = vmatpush.msrb.mxu0 %v658_v62  ;;  %718 = vmatpush.msrb.mxu1 %v690_v63  ;;  %v653_v12 = vld [vmem:[#allocation5 + $0xa8] sm:$0xff] }
  0x46   : > { %v487_v3 = vld.sshfl [vmem:[#allocation1] sm:$0xff pattern:$0x75316420]  ;;  %v488_v4 = vld.sshfl [vmem:[#allocation1 + $0x8] sm:$0xff pattern:$0x75316420] }
  0x47   : > { %v491_v5 = vsel %vm435_vm0, %v487_v3, 0.0  ;;  %v492_v6 = vsel %vm435_vm0, %v488_v4, 0.0  ;;  %v3843_v16 = vsel %vm501_vm1, %v3494_v9, %v500_v13  ;;  %v688_v3 = vld [vmem:[#allocation5 + $0x1c0] sm:$0xff]  ;;  %v657_v4 = vld [vmem:[#allocation5 + $0xc8] sm:$0xff]  ;;  %699 = vmatpush.msrb.mxu0 %v656_v2  ;;  %v687_v9 = vld [vmem:[#allocation5 + $0x1b8] sm:$0xff] }
  0x48   : > { %v493_v7 = vadd.f32 %v492_v6, %v491_v5  ;;  %v689_v5 = vld [vmem:[#allocation5 + $0x1c8] sm:$0xff]  ;;  %v654_v6 = vld [vmem:[#allocation5 + $0xb0] sm:$0xff]  ;;  %719 = vmatpush.msrb.mxu1 %v688_v3  ;;  %v808_v3 = vld [vmem:[#allocation5 + $0x2f8] sm:$0xff] }
  0x49   : > { %700 = vmatpush.msrb.mxu0 %v654_v6  ;;  %v685_v13 = vld [vmem:[#allocation5 + $0x1a8] sm:$0xff]  ;;  %v839_v2 = vld [vmem:[#allocation5 + $0x3f0] sm:$0xff]  ;;  %v837_v6 = vld [vmem:[#allocation5 + $0x3e0] sm:$0xff] }
  0x4a   : > { %494 = vadd.xlane.f32.xlu0 %v493_v7  ;;  %v686_v7 = vld [vmem:[#allocation5 + $0x1b0] sm:$0xff]  ;;  %v665_v63 = vld [vmem:[#allocation5 + $0x108] sm:$0xff] }
  0x4b   : > { %720 = vmatpush.msrb.mxu1 %v686_v7  ;;  %701 = vmatpush.msrb.mxu0 %v652_v10  ;;  %v806_v7 = vld [vmem:[#allocation5 + $0x2e8] sm:$0xff]  ;;  %v804_v10 = vld [vmem:[#allocation5 + $0x2d8] sm:$0xff] }
  0x4d   : > { %721 = vmatpush.msrb.mxu1 %v684_v11  ;;  %702 = vmatpush.msrb.mxu0 %v650_v14  ;;  %v836_v11 = vld [vmem:[#allocation5 + $0x3d8] sm:$0xff]  ;;  %v833_v14 = vld [vmem:[#allocation5 + $0x3c0] sm:$0xff] }
  0x4f   : > { %722 = vmatpush.msrb.mxu1 %v682_v15  ;;  %v802_v15 = vld [vmem:[#allocation5 + $0x2c8] sm:$0xff] }
  0xaa   : > { %v548_v46 = vpop.permute.xlu1 %547 }
  0xbd   : > { %v495_v18 = vpop.xlane.xlu0 %494 }
  0xbe   : > { %v503_v19 = vmul.f32 %v3843_v16, %v495_v18  ;;  %v683_v18 = vld [vmem:[#allocation5 + $0x198] sm:$0xff] }
  0xc0   : > { %v508_v20 = vperm.slane %v503_v19, %v507_v17  ;;  %v648_v19 = vld [vmem:[#allocation5 + $0x80] sm:$0xff] }
  0xc1   : > { %703 = vmatpush.msrb.mxu0 %v648_v19  ;;  %v831_v19 = vld [vmem:[#allocation5 + $0x3b0] sm:$0xff] }
  0xc2   : > { %v510_v21 = vsub.f32 %v409_v0, %v508_v20  ;;  %v659_v0 = vld [vmem:[#allocation5 + $0xd8] sm:$0xff]  ;;  %v680_v20 = vld [vmem:[#allocation5 + $0x180] sm:$0xff] }
  0xc3   : > { %723 = vmatpush.msrb.mxu1 %v680_v20  ;;  %v800_v20 = vld [vmem:[#allocation5 + $0x2b8] sm:$0xff] }
  0xc4   : > { %v511_v22 = vmul.f32 %v510_v21, %v510_v21 }
  0xc6   : > { %513 = vst [vmem:[#allocation1] ss:$2 sm:$0xff] %v511_v22  ;;  %v681_v22 = vld [vmem:[#allocation5 + $0x188] sm:$0xff] }
  0xcd   : > { %v514_v23 = vld.sshfl [vmem:[#allocation1] sm:$0xff pattern:$0x75316420]  ;;  %v515_v24 = vld.sshfl [vmem:[#allocation1 + $0x8] sm:$0xff pattern:$0x75316420] }
  0xce   : > { %v518_v25 = vsel %vm435_vm0, %v514_v23, 0.0  ;;  %v519_v26 = vsel %vm435_vm0, %v515_v24, 0.0  ;;  %v646_v23 = vld [vmem:[#allocation5 + $0x70] sm:$0xff] }
  0xcf   : > { %v520_v27 = vadd.f32 %v519_v26, %v518_v25  ;;  %v678_v24 = vld [vmem:[#allocation5 + $0x170] sm:$0xff]  ;;  %v647_v25 = vld [vmem:[#allocation5 + $0x78] sm:$0xff]  ;;  %704 = vmatpush.msrb.mxu0 %v646_v23  ;;  %v829_v23 = vld [vmem:[#allocation5 + $0x3a0] sm:$0xff] }
  0xd0   : > { %v679_v26 = vld [vmem:[#allocation5 + $0x178] sm:$0xff]  ;;  %724 = vmatpush.msrb.mxu1 %v678_v24  ;;  %v798_v24 = vld [vmem:[#allocation5 + $0x2a8] sm:$0xff] }
  0xd1   : > { %521 = vadd.xlane.f32.xlu0 %v520_v27  ;;  %v644_v27 = vld [vmem:[#allocation5 + $0x60] sm:$0xff] }
  0xd2   : > { %705 = vmatpush.msrb.mxu0 %v644_v27  ;;  %v827_v27 = vld [vmem:[#allocation5 + $0x390] sm:$0xff] }
  0xd4   : > { %706 = vmatpush.msrb.mxu0 %v642_v31  ;;  %v825_v31 = vld [vmem:[#allocation5 + $0x380] sm:$0xff] }
 0x144   : > { %v522_v28 = vpop.xlane.xlu0 %521 }
 0x145   : > { %v523_v29 = vmul.f32 %v522_v28, %v3843_v16  ;;  %v676_v28 = vld [vmem:[#allocation5 + $0x160] sm:$0xff] }
 0x146   : > { %725 = vmatpush.msrb.mxu1 %v676_v28  ;;  %v796_v28 = vld [vmem:[#allocation5 + $0x298] sm:$0xff] }
 0x147   : > { %v524_v30 = vadd.f32 1e-05, %v523_v29  ;;  %v645_v29 = vld [vmem:[#allocation5 + $0x68] sm:$0xff] }
 0x148   : > { %726 = vmatpush.msrb.mxu1 %v674_v32  ;;  %v794_v32 = vld [vmem:[#allocation5 + $0x288] sm:$0xff] }
 0x149   : > { %3495 = vrsqrt.f32 %v524_v30  ;;  %vm531_vm3 = vweird.f32 %v524_v30 }
 0x14f   : > { %v3496_v33 = vpop.eup %3495 }
 0x150   : > { %v526_v34 = vmul.f32 %v3496_v33, %v524_v30  ;;  %vm532_vm2 = vweird.f32 %v3496_v33  ;;  %v677_v30 = vld [vmem:[#allocation5 + $0x168] sm:$0xff] }
 0x151   : > { %vm533_vm4 = vmor %vm531_vm3, %vm532_vm2 }
 0x152   : > { %v527_v35 = vmul.f32 %v3496_v33, %v526_v34  ;;  %v675_v34 = vld [vmem:[#allocation5 + $0x158] sm:$0xff] }
 0x154   : > { %v528_v36 = vmul.f32 0.5, %v527_v35  ;;  %v640_v35 = vld [vmem:[#allocation5 + $0x40] sm:$0xff] }
 0x155   : > { %707 = vmatpush.msrb.mxu0 %v640_v35  ;;  %v823_v35 = vld [vmem:[#allocation5 + $0x370] sm:$0xff] }
 0x156   : > { %v529_v37 = vsub.f32 1.5, %v528_v36  ;;  %v672_v36 = vld [vmem:[#allocation5 + $0x140] sm:$0xff] }
 0x157   : > { %727 = vmatpush.msrb.mxu1 %v672_v36  ;;  %v792_v36 = vld [vmem:[#allocation5 + $0x278] sm:$0xff] }
 0x158   : > { %v530_v38 = vmul.f32 %v3496_v33, %v529_v37  ;;  %v641_v37 = vld [vmem:[#allocation5 + $0x48] sm:$0xff] }
 0x15a   : > { %v534_v39 = vsel %vm533_vm4, %v3496_v33, %v530_v38  ;;  %v643_v33 = vld [vmem:[#allocation5 + $0x58] sm:$0xff]  ;;  %v673_v38 = vld [vmem:[#allocation5 + $0x148] sm:$0xff] }
 0x15b   : > { %v539_v40 = vperm.slane %v534_v39, %v507_v17  ;;  %v651_v17 = vld [vmem:[#allocation5 + $0x98] sm:$0xff] }
 0x15d   : > { %v541_v41 = vmul.f32 %v539_v40, %v510_v21  ;;  %v649_v21 = vld [vmem:[#allocation5 + $0x88] sm:$0xff]  ;;  %v638_v40 = vld [vmem:[#allocation5 + $0x30] sm:$0xff] }
 0x15e   : > { %708 = vmatpush.msrb.mxu0 %v638_v40  ;;  %v790_v40 = vld [vmem:[#allocation5 + $0x268] sm:$0xff] }
 0x15f   : > { %v542_v42 = vmax.f32 %v541_v41, 0.0  ;;  %v670_v41 = vld [vmem:[#allocation5 + $0x130] sm:$0xff] }
 0x160   : > { %728 = vmatpush.msrb.mxu1 %v670_v41  ;;  %v822_v41 = vld [vmem:[#allocation5 + $0x368] sm:$0xff] }
 0x161   : > { %551 = vst [vmem:[#allocation1] ss:$2 sm:$0xff] %v542_v42 }
 0x168   : > { %v552_v44 = vld.sshfl [vmem:[#allocation1] sm:$0xff pattern:$0x75316420]  ;;  %v553_v45 = vld.sshfl [vmem:[#allocation1 + $0x8] sm:$0xff pattern:$0x75316420] }
 0x169   : > { %3290 = vmatpush.msk.msra.mxu2 %vm435_vm0, %v552_v44  ;;  %3292 = vmatpush.msk.msra.mxu3 %vm435_vm0, %v553_v45  ;;  %v671_v44 = vld [vmem:[#allocation5 + $0x138] sm:$0xff]  ;;  %v636_v45 = vld [vmem:[#allocation5 + $0x20] sm:$0xff] }
 0x16a   : > { %3291 = vmatmul.msk.f32.vlgmr.msra.gmra.mxu2 %vm428_vm5, %v543_v43  ;;  %3293 = vmatmul.msk.f32.vlgmr.msra.gmra.mxu3 %vm428_vm5, %v543_v43  ;;  %v639_v43 = vld [vmem:[#allocation5 + $0x38] sm:$0xff] }
 0x16b   : > { %736 = vmatpush.msrb.mxu2 %v663_v56  ;;  %756 = vmatpush.msrb.mxu3 %v695_v57  ;;  %v667_v57 = vld [vmem:[#allocation5 + $0x118] sm:$0xff] }
 0x16c   : > { %709 = vmatpush.msrb.mxu0 %v636_v45  ;;  %v820_v45 = vld [vmem:[#allocation5 + $0x358] sm:$0xff] }
 0x16d   : > { %737 = vmatpush.msrb.mxu2 %v661_v60  ;;  %757 = vmatpush.msrb.mxu3 %v693_v61  ;;  %v633_v61 = vld [vmem:[#allocation5 + $0x8] sm:$0xff] }
 0x16f   : > { %738 = vmatpush.msrb.mxu2 %v659_v0  ;;  %758 = vmatpush.msrb.mxu3 %v691_v1  ;;  %v410_v0 = vld [vmem:[%s4250_s8] sm:$0xff]  ;;  %v807_v1 = vld [vmem:[#allocation5 + $0x2f0] sm:$0xff] }
 0x170   : > { %3285 = vmatmul.msk.f32.vlgmr.msra.gmra.mxu0 %vm428_vm5, %v410_v0  ;;  %3288 = vmatmul.msk.f32.vlgmr.msra.gmra.mxu1 %vm428_vm5, %v410_v0  ;;  %v812_v0 = vld [vmem:[#allocation5 + $0x318] sm:$0xff] }
 0x171   : > { %739 = vmatpush.msrb.mxu2 %v657_v4  ;;  %759 = vmatpush.msrb.mxu3 %v689_v5  ;;  %v840_v4 = vld [vmem:[#allocation5 + $0x3f8] sm:$0xff]  ;;  %v805_v5 = vld [vmem:[#allocation5 + $0x2e0] sm:$0xff] }
 0x173   : > { %740 = vmatpush.msrb.mxu2 %v655_v8  ;;  %760 = vmatpush.msrb.mxu3 %v687_v9  ;;  %v838_v8 = vld [vmem:[#allocation5 + $0x3e8] sm:$0xff]  ;;  %v835_v9 = vld [vmem:[#allocation5 + $0x3d0] sm:$0xff] }
 0x175   : > { %741 = vmatpush.msrb.mxu2 %v653_v12  ;;  %761 = vmatpush.msrb.mxu3 %v685_v13  ;;  %v803_v12 = vld [vmem:[#allocation5 + $0x2d0] sm:$0xff]  ;;  %v801_v13 = vld [vmem:[#allocation5 + $0x2c0] sm:$0xff] }
 0x177   : > { %742 = vmatpush.msrb.mxu2 %v651_v17  ;;  %762 = vmatpush.msrb.mxu3 %v683_v18  ;;  %v834_v17 = vld [vmem:[#allocation5 + $0x3c8] sm:$0xff]  ;;  %v799_v18 = vld [vmem:[#allocation5 + $0x2b0] sm:$0xff] }
 0x179   : > { %743 = vmatpush.msrb.mxu2 %v649_v21  ;;  %763 = vmatpush.msrb.mxu3 %v681_v22  ;;  %v832_v21 = vld [vmem:[#allocation5 + $0x3b8] sm:$0xff]  ;;  %v797_v22 = vld [vmem:[#allocation5 + $0x2a0] sm:$0xff] }
 0x17b   : > { %744 = vmatpush.msrb.mxu2 %v647_v25  ;;  %764 = vmatpush.msrb.mxu3 %v679_v26  ;;  %v830_v25 = vld [vmem:[#allocation5 + $0x3a8] sm:$0xff]  ;;  %v795_v26 = vld [vmem:[#allocation5 + $0x290] sm:$0xff] }
 0x17d   : > { %745 = vmatpush.msrb.mxu2 %v645_v29  ;;  %765 = vmatpush.msrb.mxu3 %v677_v30  ;;  %v828_v29 = vld [vmem:[#allocation5 + $0x398] sm:$0xff]  ;;  %v793_v30 = vld [vmem:[#allocation5 + $0x280] sm:$0xff] }
 0x17f   : > { %746 = vmatpush.msrb.mxu2 %v643_v33  ;;  %766 = vmatpush.msrb.mxu3 %v675_v34  ;;  %v826_v33 = vld [vmem:[#allocation5 + $0x388] sm:$0xff]  ;;  %v791_v34 = vld [vmem:[#allocation5 + $0x270] sm:$0xff] }
 0x181   : > { %747 = vmatpush.msrb.mxu2 %v641_v37  ;;  %767 = vmatpush.msrb.mxu3 %v673_v38  ;;  %v824_v37 = vld [vmem:[#allocation5 + $0x378] sm:$0xff]  ;;  %v789_v38 = vld [vmem:[#allocation5 + $0x260] sm:$0xff] }
 0x183   : > { %748 = vmatpush.msrb.mxu2 %v639_v43  ;;  %768 = vmatpush.msrb.mxu3 %v671_v44  ;;  %v819_v43 = vld [vmem:[#allocation5 + $0x350] sm:$0xff]  ;;  %v788_v44 = vld [vmem:[#allocation5 + $0x258] sm:$0xff] }
 0x1ed   : > { %v578_v47 = vpop.f32.mrf.mxu2  ;;  %v598_v48 = vpop.f32.mrf.mxu3 }
 0x1ee   : > { %v3856_v49 = vadd.f32 %v578_v47, %v548_v46  ;;  %v3858_v50 = vadd.f32 %v598_v48, %v548_v46  ;;  %v668_v46 = vld [vmem:[#allocation5 + $0x120] sm:$0xff] }
 0x1ef   : > { %729 = vmatpush.msrb.mxu1 %v668_v46  ;;  %v785_v46 = vld [vmem:[#allocation5 + $0x240] sm:$0xff] }
 0x1f0   : > { %v601_v51 = vsel %vm435_vm0, %v3856_v49, 0.0  ;;  %v602_v52 = vsel %vm435_vm0, %v3858_v50, 0.0 }
 0x1f1   : > { %v603_v53 = vadd.f32 %v602_v52, %v601_v51  ;;  %v637_v51 = vld [vmem:[#allocation5 + $0x28] sm:$0xff]  ;;  %730 = vmatpush.msrb.mxu1 %v666_v54  ;;  %v411_v54 = vld [vmem:[%s4250_s8 + $0x8] sm:$0xff] }
 0x1f2   : > { %v669_v52 = vld [vmem:[#allocation5 + $0x128] sm:$0xff]  ;;  %749 = vmatpush.msrb.mxu2 %v637_v51  ;;  %v817_v51 = vld [vmem:[#allocation5 + $0x340] sm:$0xff]  ;;  %3286 = vmatmul.msk.f32.gmra.mxu0 %vm428_vm5, %v411_v54 }
 0x1f3   : > { %604 = vadd.xlane.f32.xlu1 %v603_v53  ;;  %v634_v53 = vld [vmem:[#allocation5 + $0x10] sm:$0xff]  ;;  %769 = vmatpush.msrb.mxu3 %v669_v52  ;;  %v786_v52 = vld [vmem:[#allocation5 + $0x248] sm:$0xff] }
 0x1f4   : > { %710 = vmatpush.msrb.mxu0 %v634_v53  ;;  %731 = vmatpush.msrb.mxu1 %v664_v58  ;;  %v818_v53 = vld [vmem:[#allocation5 + $0x348] sm:$0xff]  ;;  %v813_v58 = vld [vmem:[#allocation5 + $0x320] sm:$0xff] }
 0x1f5   : > { %770 = vmatpush.msrb.mxu3 %v667_v57  ;;  %3289 = vmatmul.msk.f32.gmra.mxu1 %vm428_vm5, %v411_v54  ;;  %v816_v57 = vld [vmem:[#allocation5 + $0x338] sm:$0xff]  ;;  %v968_v54 = vld [vmem:[#allocation5 + $0x570] sm:$0xff] }
 0x1f6   : > { %861 = vmatpush.msra.mxu1 %v839_v2  ;;  %v809_v2 = vld [vmem:[#allocation5 + $0x300] sm:$0xff] }
 0x1f7   : > { %771 = vmatpush.msrb.mxu3 %v665_v63  ;;  %v780_v63 = vld [vmem:[#allocation5 + $0x218] sm:$0xff] }
 0x1f8   : > { %862 = vmatpush.msra.mxu1 %v837_v6 }
 0x1f9   : > { %901 = vmatpush.msra.mxu3 %v840_v4  ;;  %v810_v4 = vld [vmem:[#allocation5 + $0x308] sm:$0xff] }
 0x1fa   : > { %863 = vmatpush.msra.mxu1 %v835_v9 }
 0x1fb   : > { %902 = vmatpush.msra.mxu3 %v838_v8 }
 0x1fc   : > { %864 = vmatpush.msra.mxu1 %v833_v14 }
 0x1fd   : > { %903 = vmatpush.msra.mxu3 %v836_v11 }
 0x1fe   : > { %865 = vmatpush.msra.mxu1 %v831_v19 }
 0x1ff   : > { %904 = vmatpush.msra.mxu3 %v834_v17 }
 0x200   : > { %866 = vmatpush.msra.mxu1 %v829_v23  ;;  %v950_v23 = vld [vmem:[#allocation5 + $0x4e0] sm:$0xff] }
 0x201   : > { %905 = vmatpush.msra.mxu3 %v832_v21  ;;  %v953_v21 = vld [vmem:[#allocation5 + $0x4f8] sm:$0xff] }
 0x202   : > { %867 = vmatpush.msra.mxu1 %v827_v27  ;;  %v949_v27 = vld [vmem:[#allocation5 + $0x4d8] sm:$0xff] }
 0x203   : > { %906 = vmatpush.msra.mxu3 %v830_v25  ;;  %v948_v25 = vld [vmem:[#allocation5 + $0x4d0] sm:$0xff] }
 0x204   : > { %868 = vmatpush.msra.mxu1 %v825_v31  ;;  %v947_v31 = vld [vmem:[#allocation5 + $0x4c8] sm:$0xff] }
 0x205   : > { %907 = vmatpush.msra.mxu3 %v828_v29  ;;  %v946_v29 = vld [vmem:[#allocation5 + $0x4c0] sm:$0xff] }
 0x206   : > { %869 = vmatpush.msra.mxu1 %v823_v35  ;;  %v945_v35 = vld [vmem:[#allocation5 + $0x4b8] sm:$0xff] }
 0x207   : > { %908 = vmatpush.msra.mxu3 %v826_v33  ;;  %v944_v33 = vld [vmem:[#allocation5 + $0x4b0] sm:$0xff] }
 0x209   : > { %909 = vmatpush.msra.mxu3 %v824_v37  ;;  %v942_v37 = vld [vmem:[#allocation5 + $0x4a0] sm:$0xff] }
 0x20b   : > { %910 = vmatpush.msra.mxu3 %v822_v41  ;;  %v940_v41 = vld [vmem:[#allocation5 + $0x490] sm:$0xff] }
 0x20d   : > { %911 = vmatpush.msra.mxu3 %v820_v45  ;;  %v938_v45 = vld [vmem:[#allocation5 + $0x480] sm:$0xff] }
 0x20f   : > { %912 = vmatpush.msra.mxu3 %v818_v53  ;;  %v936_v53 = vld [vmem:[#allocation5 + $0x470] sm:$0xff] }
 0x211   : > { %913 = vmatpush.msra.mxu3 %v816_v57  ;;  %v966_v57 = vld [vmem:[#allocation5 + $0x560] sm:$0xff] }
 0x266   : > { %v605_v39 = vpop.xlane.xlu1 %604 }
 0x267   : > { %v606_v42 = vmul.f32 %v605_v39, %v3843_v16  ;;  %v821_v39 = vld [vmem:[#allocation5 + $0x360] sm:$0xff] }
 0x268   : > { %870 = vmatpush.msra.mxu1 %v821_v39  ;;  %v943_v39 = vld [vmem:[#allocation5 + $0x4a8] sm:$0xff] }
 0x269   : > { %v3866_v47 = vsub.f32 %v3856_v49, %v606_v42  ;;  %v3869_v48 = vsub.f32 %v3858_v50, %v606_v42  ;;  %v635_v49 = vld [vmem:[#allocation5 + $0x18] sm:$0xff]  ;;  %v632_v50 = vld [vmem:[#allocation5] sm:$0xff]  ;;  %v787_v42 = vld [vmem:[#allocation5 + $0x250] sm:$0xff] }
 0x26a   : > { %750 = vmatpush.msrb.mxu2 %v635_v49  ;;  %711 = vmatpush.msrb.mxu0 %v632_v50  ;;  %v784_v49 = vld [vmem:[#allocation5 + $0x238] sm:$0xff]  ;;  %v781_v50 = vld [vmem:[#allocation5 + $0x220] sm:$0xff] }
 0x26b   : > { %v609_v55 = vmul.f32 %v3866_v47, %v3866_v47  ;;  %v610_v56 = vmul.f32 %v3869_v48, %v3869_v48  ;;  %871 = vmatpush.msra.mxu1 %v819_v43  ;;  %v941_v43 = vld [vmem:[#allocation5 + $0x498] sm:$0xff] }
 0x26c   : > { %751 = vmatpush.msrb.mxu2 %v633_v61  ;;  %841 = vmatpush.msra.mxu0 %v807_v1  ;;  %v779_v61 = vld [vmem:[#allocation5 + $0x210] sm:$0xff]  ;;  %v777_v1 = vld [vmem:[#allocation5 + $0x200] sm:$0xff] }
 0x26d   : > { %v611_v59 = vsel %vm435_vm0, %v609_v55, 0.0  ;;  %v612_v60 = vsel %vm435_vm0, %v610_v56, 0.0  ;;  %872 = vmatpush.msra.mxu1 %v817_v51  ;;  %v783_v55 = vld [vmem:[#allocation5 + $0x230] sm:$0xff]  ;;  %v939_v51 = vld [vmem:[#allocation5 + $0x488] sm:$0xff] }
 0x26e   : > { %v613_v62 = vadd.f32 %v612_v60, %v611_v59  ;;  %881 = vmatpush.msra.mxu2 %v808_v3  ;;  %842 = vmatpush.msra.mxu0 %v805_v5  ;;  %v815_v56 = vld [vmem:[#allocation5 + $0x330] sm:$0xff]  ;;  %v782_v59 = vld [vmem:[#allocation5 + $0x228] sm:$0xff] }
 0x26f   : > { %873 = vmatpush.msra.mxu1 %v815_v56  ;;  %v814_v60 = vld [vmem:[#allocation5 + $0x328] sm:$0xff]  ;;  %v969_v56 = vld [vmem:[#allocation5 + $0x578] sm:$0xff] }
 0x270   : > { %614 = vadd.xlane.f32.xlu2 %v613_v62  ;;  %882 = vmatpush.msra.mxu2 %v806_v7  ;;  %v811_v62 = vld [vmem:[#allocation5 + $0x310] sm:$0xff]  ;;  %v778_v3 = vld [vmem:[#allocation5 + $0x208] sm:$0xff] }
 0x271   : > { %843 = vmatpush.msra.mxu0 %v803_v12  ;;  %874 = vmatpush.msra.mxu1 %v813_v58  ;;  %v967_v58 = vld [vmem:[#allocation5 + $0x568] sm:$0xff] }
 0x272   : > { %883 = vmatpush.msra.mxu2 %v804_v10  ;;  %914 = vmatpush.msra.mxu3 %v814_v60  ;;  %v964_v60 = vld [vmem:[#allocation5 + $0x550] sm:$0xff] }
 0x273   : > { %844 = vmatpush.msra.mxu0 %v801_v13  ;;  %875 = vmatpush.msra.mxu1 %v811_v62  ;;  %v965_v62 = vld [vmem:[#allocation5 + $0x558] sm:$0xff] }
 0x274   : > { %884 = vmatpush.msra.mxu2 %v802_v15  ;;  %915 = vmatpush.msra.mxu3 %v812_v0  ;;  %v962_v0 = vld [vmem:[#allocation5 + $0x540] sm:$0xff] }
 0x275   : > { %845 = vmatpush.msra.mxu0 %v799_v18  ;;  %876 = vmatpush.msra.mxu1 %v809_v2  ;;  %v963_v2 = vld [vmem:[#allocation5 + $0x548] sm:$0xff] }
 0x276   : > { %885 = vmatpush.msra.mxu2 %v800_v20  ;;  %916 = vmatpush.msra.mxu3 %v810_v4  ;;  %v984_v20 = vld [vmem:[#allocation5 + $0x5f0] sm:$0xff] }
 0x277   : > { %846 = vmatpush.msra.mxu0 %v797_v22  ;;  %v985_v22 = vld [vmem:[#allocation5 + $0x5f8] sm:$0xff]  ;;  %v960_v4 = vld [vmem:[#allocation5 + $0x530] sm:$0xff] }
 0x278   : > { %886 = vmatpush.msra.mxu2 %v798_v24  ;;  %v983_v24 = vld [vmem:[#allocation5 + $0x5e8] sm:$0xff] }
 0x279   : > { %847 = vmatpush.msra.mxu0 %v795_v26  ;;  %v980_v26 = vld [vmem:[#allocation5 + $0x5d0] sm:$0xff] }
 0x27a   : > { %887 = vmatpush.msra.mxu2 %v796_v28  ;;  %v981_v28 = vld [vmem:[#allocation5 + $0x5d8] sm:$0xff] }
 0x27b   : > { %848 = vmatpush.msra.mxu0 %v793_v30  ;;  %v978_v30 = vld [vmem:[#allocation5 + $0x5c0] sm:$0xff] }
 0x27c   : > { %888 = vmatpush.msra.mxu2 %v794_v32  ;;  %v979_v32 = vld [vmem:[#allocation5 + $0x5c8] sm:$0xff] }
 0x27d   : > { %849 = vmatpush.msra.mxu0 %v791_v34  ;;  %v976_v34 = vld [vmem:[#allocation5 + $0x5b0] sm:$0xff] }
 0x27e   : > { %889 = vmatpush.msra.mxu2 %v792_v36  ;;  %v977_v36 = vld [vmem:[#allocation5 + $0x5b8] sm:$0xff] }
 0x27f   : > { %850 = vmatpush.msra.mxu0 %v789_v38  ;;  %v974_v38 = vld [vmem:[#allocation5 + $0x5a0] sm:$0xff] }
 0x280   : > { %890 = vmatpush.msra.mxu2 %v790_v40  ;;  %v975_v40 = vld [vmem:[#allocation5 + $0x5a8] sm:$0xff] }
 0x281   : > { %851 = vmatpush.msra.mxu0 %v787_v42  ;;  %v972_v42 = vld [vmem:[#allocation5 + $0x590] sm:$0xff] }
 0x282   : > { %891 = vmatpush.msra.mxu2 %v788_v44  ;;  %v973_v44 = vld [vmem:[#allocation5 + $0x598] sm:$0xff] }
 0x283   : > { %852 = vmatpush.msra.mxu0 %v785_v46  ;;  %v970_v46 = vld [vmem:[#allocation5 + $0x580] sm:$0xff] }
 0x284   : > { %892 = vmatpush.msra.mxu2 %v786_v52  ;;  %v971_v52 = vld [vmem:[#allocation5 + $0x588] sm:$0xff] }
 0x285   : > { %853 = vmatpush.msra.mxu0 %v783_v55  ;;  %v937_v55 = vld [vmem:[#allocation5 + $0x478] sm:$0xff] }
 0x286   : > { %893 = vmatpush.msra.mxu2 %v784_v49  ;;  %v934_v49 = vld [vmem:[#allocation5 + $0x460] sm:$0xff] }
 0x287   : > { %854 = vmatpush.msra.mxu0 %v781_v50  ;;  %v935_v50 = vld [vmem:[#allocation5 + $0x468] sm:$0xff] }
 0x288   : > { %894 = vmatpush.msra.mxu2 %v782_v59  ;;  %v932_v59 = vld [vmem:[#allocation5 + $0x450] sm:$0xff] }
 0x289   : > { %855 = vmatpush.msra.mxu0 %v779_v61  ;;  %v933_v61 = vld [vmem:[#allocation5 + $0x458] sm:$0xff] }
 0x28a   : > { %895 = vmatpush.msra.mxu2 %v780_v63  ;;  %v930_v63 = vld [vmem:[#allocation5 + $0x440] sm:$0xff] }
 0x28b   : > { %856 = vmatpush.msra.mxu0 %v777_v1  ;;  %v931_v1 = vld [vmem:[#allocation5 + $0x448] sm:$0xff] }
 0x28c   : > { %896 = vmatpush.msra.mxu2 %v778_v3  ;;  %v928_v3 = vld [vmem:[#allocation5 + $0x430] sm:$0xff] }
 0x2e3   : > { %v615_v5 = vpop.xlane.xlu2 %614 }
 0x2e4   : > { %v616_v6 = vmul.f32 %v615_v5, %v3843_v16  ;;  %v952_v16 = vld [vmem:[#allocation5 + $0x4f0] sm:$0xff]  ;;  %v929_v5 = vld [vmem:[#allocation5 + $0x438] sm:$0xff] }
 0x2e6   : > { %v617_v7 = vadd.f32 1e-05, %v616_v6  ;;  %v961_v6 = vld [vmem:[#allocation5 + $0x538] sm:$0xff] }
 0x2e8   : > { %3497 = vrsqrt.f32 %v617_v7  ;;  %vm624_vm7 = vweird.f32 %v617_v7 }
 0x2ee   : > { %v3498_v8 = vpop.eup %3497 }
 0x2ef   : > { %v619_v9 = vmul.f32 %v3498_v8, %v617_v7  ;;  %vm625_vm6 = vweird.f32 %v3498_v8  ;;  %v926_v7 = vld [vmem:[#allocation5 + $0x420] sm:$0xff] }
 0x2f0   : > { %vm626_vm8 = vmor %vm624_vm7, %vm625_vm6 }
 0x2f1   : > { %v620_v10 = vmul.f32 %v3498_v8, %v619_v9  ;;  %v927_v9 = vld [vmem:[#allocation5 + $0x428] sm:$0xff] }
 0x2f3   : > { %v621_v11 = vmul.f32 0.5, %v620_v10  ;;  %v959_v10 = vld [vmem:[#allocation5 + $0x528] sm:$0xff] }
 0x2f5   : > { %v622_v12 = vsub.f32 1.5, %v621_v11  ;;  %v924_v11 = vld [vmem:[#allocation5 + $0x410] sm:$0xff] }
 0x2f7   : > { %v623_v13 = vmul.f32 %v3498_v8, %v622_v12  ;;  %v956_v12 = vld [vmem:[#allocation5 + $0x510] sm:$0xff] }
 0x2f9   : > { %v627_v14 = vsel %vm626_vm8, %v3498_v8, %v623_v13  ;;  %v958_v8 = vld [vmem:[#allocation5 + $0x520] sm:$0xff]  ;;  %v925_v13 = vld [vmem:[#allocation5 + $0x418] sm:$0xff] }
 0x2fa   : > { %v628_v15 = vmul.f32 %v627_v14, %v3866_v47  ;;  %v629_v17 = vmul.f32 %v627_v14, %v3869_v48  ;;  %v982_v47 = vld [vmem:[#allocation5 + $0x5e0] sm:$0xff]  ;;  %v951_v48 = vld [vmem:[#allocation5 + $0x4e8] sm:$0xff]  ;;  %v957_v14 = vld [vmem:[#allocation5 + $0x518] sm:$0xff] }
 0x2fc   : > { %v3890_v18 = vmax.f32 %v628_v15, 0.0  ;;  %v3892_v19 = vmax.f32 %v629_v17, 0.0  ;;  %v922_v15 = vld [vmem:[#allocation5 + $0x400] sm:$0xff] }
 0x2fd   : > { %v954_v17 = vld [vmem:[#allocation5 + $0x500] sm:$0xff] }
 0x2fe   : > { %712 = vmatmul.f32.vlgmr.msrb.gmra.mxu0 %v3890_v18  ;;  %732 = vmatmul.f32.vlgmr.msrb.gmra.mxu1 %v3892_v19 }
 0x2ff   : > { %752 = vmatmul.f32.vlgmr.msrb.gmra.mxu2 %v3890_v18  ;;  %772 = vmatmul.f32.vlgmr.msrb.gmra.mxu3 %v3892_v19 }
 0x300   : > { %986 = vmatpush.msrb.mxu0 %v952_v16  ;;  %1006 = vmatpush.msrb.mxu1 %v984_v20  ;;  %v923_v16 = vld [vmem:[#allocation5 + $0x408] sm:$0xff] }
 0x301   : > { %1026 = vmatpush.msrb.mxu2 %v953_v21  ;;  %1046 = vmatpush.msrb.mxu3 %v985_v22  ;;  %v955_v20 = vld [vmem:[#allocation5 + $0x508] sm:$0xff]  ;;  %v1097_v21 = vld [vmem:[#allocation5 + $0x6f0] sm:$0xff] }
 0x302   : > { %987 = vmatpush.msrb.mxu0 %v950_v23  ;;  %1007 = vmatpush.msrb.mxu1 %v982_v47  ;;  %v1129_v22 = vld [vmem:[#allocation5 + $0x7f0] sm:$0xff]  ;;  %v1098_v23 = vld [vmem:[#allocation5 + $0x6f8] sm:$0xff] }
 0x303   : > { %1027 = vmatpush.msrb.mxu2 %v951_v48  ;;  %1047 = vmatpush.msrb.mxu3 %v983_v24  ;;  %v1130_v47 = vld [vmem:[#allocation5 + $0x7f8] sm:$0xff]  ;;  %v1095_v48 = vld [vmem:[#allocation5 + $0x6e0] sm:$0xff] }
 0x304   : > { %988 = vmatpush.msrb.mxu0 %v948_v25  ;;  %1008 = vmatpush.msrb.mxu1 %v980_v26  ;;  %v1127_v24 = vld [vmem:[#allocation5 + $0x7e0] sm:$0xff]  ;;  %v1096_v25 = vld [vmem:[#allocation5 + $0x6e8] sm:$0xff] }
 0x305   : > { %1028 = vmatpush.msrb.mxu2 %v949_v27  ;;  %1048 = vmatpush.msrb.mxu3 %v981_v28  ;;  %v1128_v26 = vld [vmem:[#allocation5 + $0x7e8] sm:$0xff]  ;;  %v1093_v27 = vld [vmem:[#allocation5 + $0x6d0] sm:$0xff] }
 0x306   : > { %989 = vmatpush.msrb.mxu0 %v946_v29  ;;  %1009 = vmatpush.msrb.mxu1 %v978_v30  ;;  %v1125_v28 = vld [vmem:[#allocation5 + $0x7d0] sm:$0xff]  ;;  %v1094_v29 = vld [vmem:[#allocation5 + $0x6d8] sm:$0xff] }
 0x307   : > { %1029 = vmatpush.msrb.mxu2 %v947_v31  ;;  %1049 = vmatpush.msrb.mxu3 %v979_v32  ;;  %v1126_v30 = vld [vmem:[#allocation5 + $0x7d8] sm:$0xff]  ;;  %v1091_v31 = vld [vmem:[#allocation5 + $0x6c0] sm:$0xff] }
 0x308   : > { %857 = vmatmul.f32.vlgmr.msra.gmra.mxu0 %v3890_v18  ;;  %877 = vmatmul.f32.vlgmr.msra.gmra.mxu1 %v3892_v19  ;;  %v1123_v32 = vld [vmem:[#allocation5 + $0x7c0] sm:$0xff] }
 0x309   : > { %897 = vmatmul.f32.vlgmr.msra.gmra.mxu2 %v3890_v18  ;;  %917 = vmatmul.f32.vlgmr.msra.gmra.mxu3 %v3892_v19 }
 0x30a   : > { %990 = vmatpush.msrb.mxu0 %v944_v33  ;;  %1010 = vmatpush.msrb.mxu1 %v976_v34  ;;  %v1092_v33 = vld [vmem:[#allocation5 + $0x6c8] sm:$0xff] }
 0x30b   : > { %1030 = vmatpush.msrb.mxu2 %v945_v35  ;;  %1050 = vmatpush.msrb.mxu3 %v977_v36  ;;  %v1124_v34 = vld [vmem:[#allocation5 + $0x7c8] sm:$0xff]  ;;  %v1089_v35 = vld [vmem:[#allocation5 + $0x6b0] sm:$0xff] }
 0x30c   : > { %991 = vmatpush.msrb.mxu0 %v942_v37  ;;  %1011 = vmatpush.msrb.mxu1 %v974_v38  ;;  %v1121_v36 = vld [vmem:[#allocation5 + $0x7b0] sm:$0xff]  ;;  %v1090_v37 = vld [vmem:[#allocation5 + $0x6b8] sm:$0xff] }
 0x30d   : > { %1031 = vmatpush.msrb.mxu2 %v943_v39  ;;  %1051 = vmatpush.msrb.mxu3 %v975_v40  ;;  %v1122_v38 = vld [vmem:[#allocation5 + $0x7b8] sm:$0xff]  ;;  %v1087_v39 = vld [vmem:[#allocation5 + $0x6a0] sm:$0xff] }
 0x30e   : > { %992 = vmatpush.msrb.mxu0 %v940_v41  ;;  %1012 = vmatpush.msrb.mxu1 %v972_v42  ;;  %v1119_v40 = vld [vmem:[#allocation5 + $0x7a0] sm:$0xff]  ;;  %v1088_v41 = vld [vmem:[#allocation5 + $0x6a8] sm:$0xff] }
 0x30f   : > { %1032 = vmatpush.msrb.mxu2 %v941_v43  ;;  %1052 = vmatpush.msrb.mxu3 %v973_v44  ;;  %v1120_v42 = vld [vmem:[#allocation5 + $0x7a8] sm:$0xff]  ;;  %v1085_v43 = vld [vmem:[#allocation5 + $0x690] sm:$0xff] }
 0x310   : > { %993 = vmatpush.msrb.mxu0 %v938_v45  ;;  %1013 = vmatpush.msrb.mxu1 %v970_v46  ;;  %v1117_v44 = vld [vmem:[#allocation5 + $0x790] sm:$0xff]  ;;  %v1086_v45 = vld [vmem:[#allocation5 + $0x698] sm:$0xff] }
 0x311   : > { %1033 = vmatpush.msrb.mxu2 %v939_v51  ;;  %1053 = vmatpush.msrb.mxu3 %v971_v52  ;;  %v1118_v46 = vld [vmem:[#allocation5 + $0x798] sm:$0xff]  ;;  %v1083_v51 = vld [vmem:[#allocation5 + $0x680] sm:$0xff] }
 0x312   : > { %994 = vmatpush.msrb.mxu0 %v936_v53  ;;  %1014 = vmatpush.msrb.mxu1 %v968_v54  ;;  %v1115_v52 = vld [vmem:[#allocation5 + $0x780] sm:$0xff]  ;;  %v1084_v53 = vld [vmem:[#allocation5 + $0x688] sm:$0xff] }
 0x313   : > { %1034 = vmatpush.msrb.mxu2 %v937_v55  ;;  %1054 = vmatpush.msrb.mxu3 %v969_v56  ;;  %v1116_v54 = vld [vmem:[#allocation5 + $0x788] sm:$0xff]  ;;  %v1081_v55 = vld [vmem:[#allocation5 + $0x670] sm:$0xff] }
 0x314   : > { %995 = vmatpush.msrb.mxu0 %v934_v49  ;;  %1015 = vmatpush.msrb.mxu1 %v966_v57  ;;  %v1113_v56 = vld [vmem:[#allocation5 + $0x770] sm:$0xff]  ;;  %v1082_v49 = vld [vmem:[#allocation5 + $0x678] sm:$0xff] }
 0x315   : > { %1035 = vmatpush.msrb.mxu2 %v935_v50  ;;  %1055 = vmatpush.msrb.mxu3 %v967_v58  ;;  %v1114_v57 = vld [vmem:[#allocation5 + $0x778] sm:$0xff]  ;;  %v1079_v50 = vld [vmem:[#allocation5 + $0x660] sm:$0xff] }
 0x316   : > { %996 = vmatpush.msrb.mxu0 %v932_v59  ;;  %1016 = vmatpush.msrb.mxu1 %v964_v60  ;;  %v1111_v58 = vld [vmem:[#allocation5 + $0x760] sm:$0xff]  ;;  %v1080_v59 = vld [vmem:[#allocation5 + $0x668] sm:$0xff] }
 0x317   : > { %1036 = vmatpush.msrb.mxu2 %v933_v61  ;;  %1056 = vmatpush.msrb.mxu3 %v965_v62  ;;  %v1112_v60 = vld [vmem:[#allocation5 + $0x768] sm:$0xff]  ;;  %v1077_v61 = vld [vmem:[#allocation5 + $0x650] sm:$0xff] }
 0x318   : > { %997 = vmatpush.msrb.mxu0 %v930_v63  ;;  %1017 = vmatpush.msrb.mxu1 %v962_v0  ;;  %v1109_v62 = vld [vmem:[#allocation5 + $0x750] sm:$0xff]  ;;  %v1078_v63 = vld [vmem:[#allocation5 + $0x658] sm:$0xff] }
 0x319   : > { %1037 = vmatpush.msrb.mxu2 %v931_v1  ;;  %1057 = vmatpush.msrb.mxu3 %v963_v2  ;;  %v1110_v0 = vld [vmem:[#allocation5 + $0x758] sm:$0xff]  ;;  %v1075_v1 = vld [vmem:[#allocation5 + $0x640] sm:$0xff] }
 0x31a   : > { %998 = vmatpush.msrb.mxu0 %v928_v3  ;;  %1018 = vmatpush.msrb.mxu1 %v960_v4  ;;  %v1107_v2 = vld [vmem:[#allocation5 + $0x740] sm:$0xff]  ;;  %v1076_v3 = vld [vmem:[#allocation5 + $0x648] sm:$0xff] }
 0x31b   : > { %1038 = vmatpush.msrb.mxu2 %v929_v5  ;;  %1058 = vmatpush.msrb.mxu3 %v961_v6  ;;  %v1108_v4 = vld [vmem:[#allocation5 + $0x748] sm:$0xff]  ;;  %v1073_v5 = vld [vmem:[#allocation5 + $0x630] sm:$0xff] }
 0x31c   : > { %999 = vmatpush.msrb.mxu0 %v926_v7  ;;  %1019 = vmatpush.msrb.mxu1 %v958_v8  ;;  %v1105_v6 = vld [vmem:[#allocation5 + $0x730] sm:$0xff]  ;;  %v1074_v7 = vld [vmem:[#allocation5 + $0x638] sm:$0xff] }
 0x31d   : > { %1039 = vmatpush.msrb.mxu2 %v927_v9  ;;  %1059 = vmatpush.msrb.mxu3 %v959_v10  ;;  %v1106_v8 = vld [vmem:[#allocation5 + $0x738] sm:$0xff]  ;;  %v1071_v9 = vld [vmem:[#allocation5 + $0x620] sm:$0xff] }
 0x31e   : > { %1000 = vmatpush.msrb.mxu0 %v924_v11  ;;  %1020 = vmatpush.msrb.mxu1 %v956_v12  ;;  %v1103_v10 = vld [vmem:[#allocation5 + $0x720] sm:$0xff]  ;;  %v1072_v11 = vld [vmem:[#allocation5 + $0x628] sm:$0xff] }
 0x31f   : > { %1040 = vmatpush.msrb.mxu2 %v925_v13  ;;  %1060 = vmatpush.msrb.mxu3 %v957_v14  ;;  %v1104_v12 = vld [vmem:[#allocation5 + $0x728] sm:$0xff]  ;;  %v1069_v13 = vld [vmem:[#allocation5 + $0x610] sm:$0xff] }
 0x320   : > { %1001 = vmatpush.msrb.mxu0 %v922_v15  ;;  %1021 = vmatpush.msrb.mxu1 %v954_v17  ;;  %v1101_v14 = vld [vmem:[#allocation5 + $0x710] sm:$0xff]  ;;  %v1070_v15 = vld [vmem:[#allocation5 + $0x618] sm:$0xff] }
 0x321   : > { %1041 = vmatpush.msrb.mxu2 %v923_v16  ;;  %1061 = vmatpush.msrb.mxu3 %v955_v20  ;;  %v1102_v17 = vld [vmem:[#allocation5 + $0x718] sm:$0xff]  ;;  %v1067_v16 = vld [vmem:[#allocation5 + $0x600] sm:$0xff] }
 0x322   : > { %1002 = vmatmul.f32.vlgmr.msrb.gmra.mxu0 %v3890_v18  ;;  %1022 = vmatmul.f32.vlgmr.msrb.gmra.mxu1 %v3892_v19  ;;  %v1099_v20 = vld [vmem:[#allocation5 + $0x700] sm:$0xff] }
 0x323   : > { %1042 = vmatmul.f32.vlgmr.msrb.gmra.mxu2 %v3890_v18  ;;  %1062 = vmatmul.f32.vlgmr.msrb.gmra.mxu3 %v3892_v19 }
 0x324   : > { %1131 = vmatpush.msra.mxu0 %v1097_v21  ;;  %1151 = vmatpush.msra.mxu1 %v1129_v22  ;;  %v1068_v21 = vld [vmem:[#allocation5 + $0x608] sm:$0xff] }
 0x325   : > { %1171 = vmatpush.msra.mxu2 %v1098_v23  ;;  %1191 = vmatpush.msra.mxu3 %v1130_v47  ;;  %v1100_v22 = vld [vmem:[#allocation5 + $0x708] sm:$0xff]  ;;  %v1242_v23 = vld [vmem:[#allocation5 + $0x8f0] sm:$0xff] }
 0x326   : > { %1132 = vmatpush.msra.mxu0 %v1095_v48  ;;  %1152 = vmatpush.msra.mxu1 %v1127_v24  ;;  %v1274_v47 = vld [vmem:[#allocation5 + $0x9f0] sm:$0xff]  ;;  %v1243_v48 = vld [vmem:[#allocation5 + $0x8f8] sm:$0xff] }
 0x327   : > { %1172 = vmatpush.msra.mxu2 %v1096_v25  ;;  %1192 = vmatpush.msra.mxu3 %v1128_v26  ;;  %v1275_v24 = vld [vmem:[#allocation5 + $0x9f8] sm:$0xff]  ;;  %v1240_v25 = vld [vmem:[#allocation5 + $0x8e0] sm:$0xff] }
 0x328   : > { %1133 = vmatpush.msra.mxu0 %v1093_v27  ;;  %1153 = vmatpush.msra.mxu1 %v1125_v28  ;;  %v1272_v26 = vld [vmem:[#allocation5 + $0x9e0] sm:$0xff]  ;;  %v1241_v27 = vld [vmem:[#allocation5 + $0x8e8] sm:$0xff] }
 0x329   : > { %1173 = vmatpush.msra.mxu2 %v1094_v29  ;;  %1193 = vmatpush.msra.mxu3 %v1126_v30  ;;  %v1273_v28 = vld [vmem:[#allocation5 + $0x9e8] sm:$0xff]  ;;  %v1238_v29 = vld [vmem:[#allocation5 + $0x8d0] sm:$0xff] }
 0x32a   : > { %1134 = vmatpush.msra.mxu0 %v1091_v31  ;;  %1154 = vmatpush.msra.mxu1 %v1123_v32  ;;  %v1270_v30 = vld [vmem:[#allocation5 + $0x9d0] sm:$0xff]  ;;  %v1239_v31 = vld [vmem:[#allocation5 + $0x8d8] sm:$0xff] }
 0x32b   : > { %1174 = vmatpush.msra.mxu2 %v1092_v33  ;;  %1194 = vmatpush.msra.mxu3 %v1124_v34  ;;  %v1271_v32 = vld [vmem:[#allocation5 + $0x9d8] sm:$0xff]  ;;  %v1236_v33 = vld [vmem:[#allocation5 + $0x8c0] sm:$0xff] }
 0x32c   : > { %1135 = vmatpush.msra.mxu0 %v1089_v35  ;;  %1155 = vmatpush.msra.mxu1 %v1121_v36  ;;  %v1268_v34 = vld [vmem:[#allocation5 + $0x9c0] sm:$0xff]  ;;  %v1237_v35 = vld [vmem:[#allocation5 + $0x8c8] sm:$0xff] }
 0x32d   : > { %1175 = vmatpush.msra.mxu2 %v1090_v37  ;;  %1195 = vmatpush.msra.mxu3 %v1122_v38  ;;  %v1269_v36 = vld [vmem:[#allocation5 + $0x9c8] sm:$0xff]  ;;  %v1234_v37 = vld [vmem:[#allocation5 + $0x8b0] sm:$0xff] }
 0x32e   : > { %1136 = vmatpush.msra.mxu0 %v1087_v39  ;;  %1156 = vmatpush.msra.mxu1 %v1119_v40  ;;  %v1266_v38 = vld [vmem:[#allocation5 + $0x9b0] sm:$0xff]  ;;  %v1235_v39 = vld [vmem:[#allocation5 + $0x8b8] sm:$0xff] }
 0x32f   : > { %1176 = vmatpush.msra.mxu2 %v1088_v41  ;;  %1196 = vmatpush.msra.mxu3 %v1120_v42  ;;  %v1267_v40 = vld [vmem:[#allocation5 + $0x9b8] sm:$0xff]  ;;  %v1232_v41 = vld [vmem:[#allocation5 + $0x8a0] sm:$0xff] }
 0x330   : > { %1137 = vmatpush.msra.mxu0 %v1085_v43  ;;  %1157 = vmatpush.msra.mxu1 %v1117_v44  ;;  %v1264_v42 = vld [vmem:[#allocation5 + $0x9a0] sm:$0xff]  ;;  %v1233_v43 = vld [vmem:[#allocation5 + $0x8a8] sm:$0xff] }
 0x331   : > { %1177 = vmatpush.msra.mxu2 %v1086_v45  ;;  %1197 = vmatpush.msra.mxu3 %v1118_v46  ;;  %v1265_v44 = vld [vmem:[#allocation5 + $0x9a8] sm:$0xff]  ;;  %v1230_v45 = vld [vmem:[#allocation5 + $0x890] sm:$0xff] }
 0x332   : > { %1138 = vmatpush.msra.mxu0 %v1083_v51  ;;  %1158 = vmatpush.msra.mxu1 %v1115_v52  ;;  %v1262_v46 = vld [vmem:[#allocation5 + $0x990] sm:$0xff]  ;;  %v1231_v51 = vld [vmem:[#allocation5 + $0x898] sm:$0xff] }
 0x333   : > { %1178 = vmatpush.msra.mxu2 %v1084_v53  ;;  %1198 = vmatpush.msra.mxu3 %v1116_v54  ;;  %v1263_v52 = vld [vmem:[#allocation5 + $0x998] sm:$0xff]  ;;  %v1228_v53 = vld [vmem:[#allocation5 + $0x880] sm:$0xff] }
 0x334   : > { %1139 = vmatpush.msra.mxu0 %v1081_v55  ;;  %1159 = vmatpush.msra.mxu1 %v1113_v56  ;;  %v1260_v54 = vld [vmem:[#allocation5 + $0x980] sm:$0xff]  ;;  %v1229_v55 = vld [vmem:[#allocation5 + $0x888] sm:$0xff] }
 0x335   : > { %1179 = vmatpush.msra.mxu2 %v1082_v49  ;;  %1199 = vmatpush.msra.mxu3 %v1114_v57  ;;  %v1261_v56 = vld [vmem:[#allocation5 + $0x988] sm:$0xff]  ;;  %v1226_v49 = vld [vmem:[#allocation5 + $0x870] sm:$0xff] }
 0x336   : > { %1140 = vmatpush.msra.mxu0 %v1079_v50  ;;  %1160 = vmatpush.msra.mxu1 %v1111_v58  ;;  %v1258_v57 = vld [vmem:[#allocation5 + $0x970] sm:$0xff]  ;;  %v1227_v50 = vld [vmem:[#allocation5 + $0x878] sm:$0xff] }
 0x337   : > { %1180 = vmatpush.msra.mxu2 %v1080_v59  ;;  %1200 = vmatpush.msra.mxu3 %v1112_v60  ;;  %v1259_v58 = vld [vmem:[#allocation5 + $0x978] sm:$0xff]  ;;  %v1224_v59 = vld [vmem:[#allocation5 + $0x860] sm:$0xff] }
 0x338   : > { %1141 = vmatpush.msra.mxu0 %v1077_v61  ;;  %1161 = vmatpush.msra.mxu1 %v1109_v62  ;;  %v1256_v60 = vld [vmem:[#allocation5 + $0x960] sm:$0xff]  ;;  %v1225_v61 = vld [vmem:[#allocation5 + $0x868] sm:$0xff] }
 0x339   : > { %1181 = vmatpush.msra.mxu2 %v1078_v63  ;;  %1201 = vmatpush.msra.mxu3 %v1110_v0  ;;  %v1257_v62 = vld [vmem:[#allocation5 + $0x968] sm:$0xff]  ;;  %v1222_v63 = vld [vmem:[#allocation5 + $0x850] sm:$0xff] }
 0x33a   : > { %1142 = vmatpush.msra.mxu0 %v1075_v1  ;;  %1162 = vmatpush.msra.mxu1 %v1107_v2  ;;  %v1254_v0 = vld [vmem:[#allocation5 + $0x950] sm:$0xff]  ;;  %v1223_v1 = vld [vmem:[#allocation5 + $0x858] sm:$0xff] }
 0x33b   : > { %1182 = vmatpush.msra.mxu2 %v1076_v3  ;;  %1202 = vmatpush.msra.mxu3 %v1108_v4  ;;  %v1255_v2 = vld [vmem:[#allocation5 + $0x958] sm:$0xff]  ;;  %v1220_v3 = vld [vmem:[#allocation5 + $0x840] sm:$0xff] }
 0x33c   : > { %1143 = vmatpush.msra.mxu0 %v1073_v5  ;;  %1163 = vmatpush.msra.mxu1 %v1105_v6  ;;  %v1252_v4 = vld [vmem:[#allocation5 + $0x940] sm:$0xff]  ;;  %v1221_v5 = vld [vmem:[#allocation5 + $0x848] sm:$0xff] }
 0x33d   : > { %1183 = vmatpush.msra.mxu2 %v1074_v7  ;;  %1203 = vmatpush.msra.mxu3 %v1106_v8  ;;  %v1253_v6 = vld [vmem:[#allocation5 + $0x948] sm:$0xff]  ;;  %v1218_v7 = vld [vmem:[#allocation5 + $0x830] sm:$0xff] }
 0x33e   : > { %1144 = vmatpush.msra.mxu0 %v1071_v9  ;;  %1164 = vmatpush.msra.mxu1 %v1103_v10  ;;  %v1250_v8 = vld [vmem:[#allocation5 + $0x930] sm:$0xff]  ;;  %v1219_v9 = vld [vmem:[#allocation5 + $0x838] sm:$0xff] }
 0x33f   : > { %1184 = vmatpush.msra.mxu2 %v1072_v11  ;;  %1204 = vmatpush.msra.mxu3 %v1104_v12  ;;  %v1251_v10 = vld [vmem:[#allocation5 + $0x938] sm:$0xff]  ;;  %v1216_v11 = vld [vmem:[#allocation5 + $0x820] sm:$0xff] }
 0x340   : > { %1145 = vmatpush.msra.mxu0 %v1069_v13  ;;  %1165 = vmatpush.msra.mxu1 %v1101_v14  ;;  %v1248_v12 = vld [vmem:[#allocation5 + $0x920] sm:$0xff]  ;;  %v1217_v13 = vld [vmem:[#allocation5 + $0x828] sm:$0xff] }
 0x341   : > { %1185 = vmatpush.msra.mxu2 %v1070_v15  ;;  %1205 = vmatpush.msra.mxu3 %v1102_v17  ;;  %v1249_v14 = vld [vmem:[#allocation5 + $0x928] sm:$0xff]  ;;  %v1214_v15 = vld [vmem:[#allocation5 + $0x810] sm:$0xff] }
 0x342   : > { %1146 = vmatpush.msra.mxu0 %v1067_v16  ;;  %1166 = vmatpush.msra.mxu1 %v1099_v20  ;;  %v1246_v17 = vld [vmem:[#allocation5 + $0x910] sm:$0xff]  ;;  %v1215_v16 = vld [vmem:[#allocation5 + $0x818] sm:$0xff] }
 0x343   : > { %1186 = vmatpush.msra.mxu2 %v1068_v21  ;;  %1206 = vmatpush.msra.mxu3 %v1100_v22  ;;  %v1247_v20 = vld [vmem:[#allocation5 + $0x918] sm:$0xff]  ;;  %v1212_v21 = vld [vmem:[#allocation5 + $0x800] sm:$0xff] }
 0x344   : > { %1147 = vmatmul.f32.vlgmr.msra.gmra.mxu0 %v3890_v18  ;;  %1167 = vmatmul.f32.vlgmr.msra.gmra.mxu1 %v3892_v19  ;;  %v1244_v22 = vld [vmem:[#allocation5 + $0x900] sm:$0xff] }
 0x345   : > { %1187 = vmatmul.f32.vlgmr.msra.gmra.mxu2 %v3890_v18  ;;  %1207 = vmatmul.f32.vlgmr.msra.gmra.mxu3 %v3892_v19 }
 0x346   : > { %1276 = vmatpush.msrb.mxu0 %v1242_v23  ;;  %1296 = vmatpush.msrb.mxu1 %v1274_v47  ;;  %v1213_v23 = vld [vmem:[#allocation5 + $0x808] sm:$0xff] }
 0x347   : > { %1316 = vmatpush.msrb.mxu2 %v1243_v48  ;;  %1336 = vmatpush.msrb.mxu3 %v1275_v24  ;;  %v1245_v47 = vld [vmem:[#allocation5 + $0x908] sm:$0xff]  ;;  %v1387_v48 = vld [vmem:[#allocation5 + $0xaf0] sm:$0xff] }
 0x348   : > { %1277 = vmatpush.msrb.mxu0 %v1240_v25  ;;  %1297 = vmatpush.msrb.mxu1 %v1272_v26  ;;  %v1419_v24 = vld [vmem:[#allocation5 + $0xbf0] sm:$0xff]  ;;  %v1388_v25 = vld [vmem:[#allocation5 + $0xaf8] sm:$0xff] }
 0x349   : > { %1317 = vmatpush.msrb.mxu2 %v1241_v27  ;;  %1337 = vmatpush.msrb.mxu3 %v1273_v28  ;;  %v1420_v26 = vld [vmem:[#allocation5 + $0xbf8] sm:$0xff]  ;;  %v1385_v27 = vld [vmem:[#allocation5 + $0xae0] sm:$0xff] }
 0x34a   : > { %1278 = vmatpush.msrb.mxu0 %v1238_v29  ;;  %1298 = vmatpush.msrb.mxu1 %v1270_v30  ;;  %v1417_v28 = vld [vmem:[#allocation5 + $0xbe0] sm:$0xff]  ;;  %v1386_v29 = vld [vmem:[#allocation5 + $0xae8] sm:$0xff] }
 0x34b   : > { %1318 = vmatpush.msrb.mxu2 %v1239_v31  ;;  %1338 = vmatpush.msrb.mxu3 %v1271_v32  ;;  %v1418_v30 = vld [vmem:[#allocation5 + $0xbe8] sm:$0xff]  ;;  %v1383_v31 = vld [vmem:[#allocation5 + $0xad0] sm:$0xff] }
 0x34c   : > { %1279 = vmatpush.msrb.mxu0 %v1236_v33  ;;  %1299 = vmatpush.msrb.mxu1 %v1268_v34  ;;  %v1415_v32 = vld [vmem:[#allocation5 + $0xbd0] sm:$0xff]  ;;  %v1384_v33 = vld [vmem:[#allocation5 + $0xad8] sm:$0xff] }
 0x34d   : > { %1319 = vmatpush.msrb.mxu2 %v1237_v35  ;;  %1339 = vmatpush.msrb.mxu3 %v1269_v36  ;;  %v1416_v34 = vld [vmem:[#allocation5 + $0xbd8] sm:$0xff]  ;;  %v1381_v35 = vld [vmem:[#allocation5 + $0xac0] sm:$0xff] }
 0x34e   : > { %1280 = vmatpush.msrb.mxu0 %v1234_v37  ;;  %1300 = vmatpush.msrb.mxu1 %v1266_v38  ;;  %v1413_v36 = vld [vmem:[#allocation5 + $0xbc0] sm:$0xff]  ;;  %v1382_v37 = vld [vmem:[#allocation5 + $0xac8] sm:$0xff] }
 0x34f   : > { %1320 = vmatpush.msrb.mxu2 %v1235_v39  ;;  %1340 = vmatpush.msrb.mxu3 %v1267_v40  ;;  %v1414_v38 = vld [vmem:[#allocation5 + $0xbc8] sm:$0xff]  ;;  %v1379_v39 = vld [vmem:[#allocation5 + $0xab0] sm:$0xff] }
 0x350   : > { %1281 = vmatpush.msrb.mxu0 %v1232_v41  ;;  %1301 = vmatpush.msrb.mxu1 %v1264_v42  ;;  %v1411_v40 = vld [vmem:[#allocation5 + $0xbb0] sm:$0xff]  ;;  %v1380_v41 = vld [vmem:[#allocation5 + $0xab8] sm:$0xff] }
 0x351   : > { %1321 = vmatpush.msrb.mxu2 %v1233_v43  ;;  %1341 = vmatpush.msrb.mxu3 %v1265_v44  ;;  %v1412_v42 = vld [vmem:[#allocation5 + $0xbb8] sm:$0xff]  ;;  %v1377_v43 = vld [vmem:[#allocation5 + $0xaa0] sm:$0xff] }
 0x352   : > { %1282 = vmatpush.msrb.mxu0 %v1230_v45  ;;  %1302 = vmatpush.msrb.mxu1 %v1262_v46  ;;  %v1409_v44 = vld [vmem:[#allocation5 + $0xba0] sm:$0xff]  ;;  %v1378_v45 = vld [vmem:[#allocation5 + $0xaa8] sm:$0xff] }
 0x353   : > { %1322 = vmatpush.msrb.mxu2 %v1231_v51  ;;  %1342 = vmatpush.msrb.mxu3 %v1263_v52  ;;  %v1410_v46 = vld [vmem:[#allocation5 + $0xba8] sm:$0xff]  ;;  %v1375_v51 = vld [vmem:[#allocation5 + $0xa90] sm:$0xff] }
 0x354   : > { %1283 = vmatpush.msrb.mxu0 %v1228_v53  ;;  %1303 = vmatpush.msrb.mxu1 %v1260_v54  ;;  %v1407_v52 = vld [vmem:[#allocation5 + $0xb90] sm:$0xff]  ;;  %v1376_v53 = vld [vmem:[#allocation5 + $0xa98] sm:$0xff] }
 0x355   : > { %1323 = vmatpush.msrb.mxu2 %v1229_v55  ;;  %1343 = vmatpush.msrb.mxu3 %v1261_v56  ;;  %v1408_v54 = vld [vmem:[#allocation5 + $0xb98] sm:$0xff]  ;;  %v1373_v55 = vld [vmem:[#allocation5 + $0xa80] sm:$0xff] }
 0x356   : > { %1284 = vmatpush.msrb.mxu0 %v1226_v49  ;;  %1304 = vmatpush.msrb.mxu1 %v1258_v57  ;;  %v1405_v56 = vld [vmem:[#allocation5 + $0xb80] sm:$0xff]  ;;  %v1374_v49 = vld [vmem:[#allocation5 + $0xa88] sm:$0xff] }
 0x357   : > { %1324 = vmatpush.msrb.mxu2 %v1227_v50  ;;  %1344 = vmatpush.msrb.mxu3 %v1259_v58  ;;  %v1406_v57 = vld [vmem:[#allocation5 + $0xb88] sm:$0xff]  ;;  %v1371_v50 = vld [vmem:[#allocation5 + $0xa70] sm:$0xff] }
 0x358   : > { %1285 = vmatpush.msrb.mxu0 %v1224_v59  ;;  %1305 = vmatpush.msrb.mxu1 %v1256_v60  ;;  %v1403_v58 = vld [vmem:[#allocation5 + $0xb70] sm:$0xff]  ;;  %v1372_v59 = vld [vmem:[#allocation5 + $0xa78] sm:$0xff] }
 0x359   : > { %1325 = vmatpush.msrb.mxu2 %v1225_v61  ;;  %1345 = vmatpush.msrb.mxu3 %v1257_v62  ;;  %v1404_v60 = vld [vmem:[#allocation5 + $0xb78] sm:$0xff]  ;;  %v1369_v61 = vld [vmem:[#allocation5 + $0xa60] sm:$0xff] }
 0x35a   : > { %1286 = vmatpush.msrb.mxu0 %v1222_v63  ;;  %1306 = vmatpush.msrb.mxu1 %v1254_v0  ;;  %v1401_v62 = vld [vmem:[#allocation5 + $0xb60] sm:$0xff]  ;;  %v1370_v63 = vld [vmem:[#allocation5 + $0xa68] sm:$0xff] }
 0x35b   : > { %1326 = vmatpush.msrb.mxu2 %v1223_v1  ;;  %1346 = vmatpush.msrb.mxu3 %v1255_v2  ;;  %v1402_v0 = vld [vmem:[#allocation5 + $0xb68] sm:$0xff]  ;;  %v1367_v1 = vld [vmem:[#allocation5 + $0xa50] sm:$0xff] }
 0x35c   : > { %1287 = vmatpush.msrb.mxu0 %v1220_v3  ;;  %1307 = vmatpush.msrb.mxu1 %v1252_v4  ;;  %v1399_v2 = vld [vmem:[#allocation5 + $0xb50] sm:$0xff]  ;;  %v1368_v3 = vld [vmem:[#allocation5 + $0xa58] sm:$0xff] }
 0x35d   : > { %1327 = vmatpush.msrb.mxu2 %v1221_v5  ;;  %1347 = vmatpush.msrb.mxu3 %v1253_v6  ;;  %v1400_v4 = vld [vmem:[#allocation5 + $0xb58] sm:$0xff]  ;;  %v1365_v5 = vld [vmem:[#allocation5 + $0xa40] sm:$0xff] }
 0x35e   : > { %1288 = vmatpush.msrb.mxu0 %v1218_v7  ;;  %1308 = vmatpush.msrb.mxu1 %v1250_v8  ;;  %v1397_v6 = vld [vmem:[#allocation5 + $0xb40] sm:$0xff]  ;;  %v1366_v7 = vld [vmem:[#allocation5 + $0xa48] sm:$0xff] }
 0x35f   : > { %1328 = vmatpush.msrb.mxu2 %v1219_v9  ;;  %1348 = vmatpush.msrb.mxu3 %v1251_v10  ;;  %v1398_v8 = vld [vmem:[#allocation5 + $0xb48] sm:$0xff]  ;;  %v1363_v9 = vld [vmem:[#allocation5 + $0xa30] sm:$0xff] }
 0x360   : > { %1289 = vmatpush.msrb.mxu0 %v1216_v11  ;;  %1309 = vmatpush.msrb.mxu1 %v1248_v12  ;;  %v1395_v10 = vld [vmem:[#allocation5 + $0xb30] sm:$0xff]  ;;  %v1364_v11 = vld [vmem:[#allocation5 + $0xa38] sm:$0xff] }
 0x361   : > { %1329 = vmatpush.msrb.mxu2 %v1217_v13  ;;  %1349 = vmatpush.msrb.mxu3 %v1249_v14  ;;  %v1396_v12 = vld [vmem:[#allocation5 + $0xb38] sm:$0xff]  ;;  %v1361_v13 = vld [vmem:[#allocation5 + $0xa20] sm:$0xff] }
 0x362   : > { %1290 = vmatpush.msrb.mxu0 %v1214_v15  ;;  %1310 = vmatpush.msrb.mxu1 %v1246_v17  ;;  %v1393_v14 = vld [vmem:[#allocation5 + $0xb20] sm:$0xff]  ;;  %v1362_v15 = vld [vmem:[#allocation5 + $0xa28] sm:$0xff] }
 0x363   : > { %1330 = vmatpush.msrb.mxu2 %v1215_v16  ;;  %1350 = vmatpush.msrb.mxu3 %v1247_v20  ;;  %v1394_v17 = vld [vmem:[#allocation5 + $0xb28] sm:$0xff]  ;;  %v1359_v16 = vld [vmem:[#allocation5 + $0xa10] sm:$0xff] }
 0x364   : > { %1291 = vmatpush.msrb.mxu0 %v1212_v21  ;;  %1311 = vmatpush.msrb.mxu1 %v1244_v22  ;;  %v1391_v20 = vld [vmem:[#allocation5 + $0xb10] sm:$0xff]  ;;  %v1360_v21 = vld [vmem:[#allocation5 + $0xa18] sm:$0xff] }
 0x365   : > { %1331 = vmatpush.msrb.mxu2 %v1213_v23  ;;  %1351 = vmatpush.msrb.mxu3 %v1245_v47  ;;  %v1392_v22 = vld [vmem:[#allocation5 + $0xb18] sm:$0xff]  ;;  %v1357_v23 = vld [vmem:[#allocation5 + $0xa00] sm:$0xff] }
 0x366   : > { %1292 = vmatmul.f32.vlgmr.msrb.gmra.mxu0 %v3890_v18  ;;  %1312 = vmatmul.f32.vlgmr.msrb.gmra.mxu1 %v3892_v19  ;;  %v1389_v47 = vld [vmem:[#allocation5 + $0xb00] sm:$0xff] }
 0x367   : > { %1332 = vmatmul.f32.vlgmr.msrb.gmra.mxu2 %v3890_v18  ;;  %1352 = vmatmul.f32.vlgmr.msrb.gmra.mxu3 %v3892_v19 }
 0x368   : > { %1421 = vmatpush.msra.mxu0 %v1387_v48  ;;  %1441 = vmatpush.msra.mxu1 %v1419_v24  ;;  %v1358_v48 = vld [vmem:[#allocation5 + $0xa08] sm:$0xff] }
 0x369   : > { %1461 = vmatpush.msra.mxu2 %v1388_v25  ;;  %1481 = vmatpush.msra.mxu3 %v1420_v26  ;;  %v1390_v24 = vld [vmem:[#allocation5 + $0xb08] sm:$0xff]  ;;  %v1532_v25 = vld [vmem:[#allocation5 + $0xcf0] sm:$0xff] }
 0x36a   : > { %1422 = vmatpush.msra.mxu0 %v1385_v27  ;;  %1442 = vmatpush.msra.mxu1 %v1417_v28  ;;  %v1564_v26 = vld [vmem:[#allocation5 + $0xdf0] sm:$0xff]  ;;  %v1533_v27 = vld [vmem:[#allocation5 + $0xcf8] sm:$0xff] }
 0x36b   : > { %1462 = vmatpush.msra.mxu2 %v1386_v29  ;;  %1482 = vmatpush.msra.mxu3 %v1418_v30  ;;  %v1565_v28 = vld [vmem:[#allocation5 + $0xdf8] sm:$0xff]  ;;  %v1530_v29 = vld [vmem:[#allocation5 + $0xce0] sm:$0xff] }
 0x36c   : > { %1423 = vmatpush.msra.mxu0 %v1383_v31  ;;  %1443 = vmatpush.msra.mxu1 %v1415_v32  ;;  %v1562_v30 = vld [vmem:[#allocation5 + $0xde0] sm:$0xff]  ;;  %v1531_v31 = vld [vmem:[#allocation5 + $0xce8] sm:$0xff] }
 0x36d   : > { %1463 = vmatpush.msra.mxu2 %v1384_v33  ;;  %1483 = vmatpush.msra.mxu3 %v1416_v34  ;;  %v1563_v32 = vld [vmem:[#allocation5 + $0xde8] sm:$0xff]  ;;  %v1528_v33 = vld [vmem:[#allocation5 + $0xcd0] sm:$0xff] }
 0x36e   : > { %1424 = vmatpush.msra.mxu0 %v1381_v35  ;;  %1444 = vmatpush.msra.mxu1 %v1413_v36  ;;  %v1560_v34 = vld [vmem:[#allocation5 + $0xdd0] sm:$0xff]  ;;  %v1529_v35 = vld [vmem:[#allocation5 + $0xcd8] sm:$0xff] }
 0x36f   : > { %1464 = vmatpush.msra.mxu2 %v1382_v37  ;;  %1484 = vmatpush.msra.mxu3 %v1414_v38  ;;  %v1561_v36 = vld [vmem:[#allocation5 + $0xdd8] sm:$0xff]  ;;  %v1526_v37 = vld [vmem:[#allocation5 + $0xcc0] sm:$0xff] }
 0x370   : > { %1425 = vmatpush.msra.mxu0 %v1379_v39  ;;  %1445 = vmatpush.msra.mxu1 %v1411_v40  ;;  %v1558_v38 = vld [vmem:[#allocation5 + $0xdc0] sm:$0xff]  ;;  %v1527_v39 = vld [vmem:[#allocation5 + $0xcc8] sm:$0xff] }
 0x371   : > { %1465 = vmatpush.msra.mxu2 %v1380_v41  ;;  %1485 = vmatpush.msra.mxu3 %v1412_v42  ;;  %v1559_v40 = vld [vmem:[#allocation5 + $0xdc8] sm:$0xff]  ;;  %v1524_v41 = vld [vmem:[#allocation5 + $0xcb0] sm:$0xff] }
 0x372   : > { %1426 = vmatpush.msra.mxu0 %v1377_v43  ;;  %1446 = vmatpush.msra.mxu1 %v1409_v44  ;;  %v1556_v42 = vld [vmem:[#allocation5 + $0xdb0] sm:$0xff]  ;;  %v1525_v43 = vld [vmem:[#allocation5 + $0xcb8] sm:$0xff] }
 0x373   : > { %1466 = vmatpush.msra.mxu2 %v1378_v45  ;;  %1486 = vmatpush.msra.mxu3 %v1410_v46  ;;  %v1557_v44 = vld [vmem:[#allocation5 + $0xdb8] sm:$0xff]  ;;  %v1522_v45 = vld [vmem:[#allocation5 + $0xca0] sm:$0xff] }
 0x374   : > { %1427 = vmatpush.msra.mxu0 %v1375_v51  ;;  %1447 = vmatpush.msra.mxu1 %v1407_v52  ;;  %v1554_v46 = vld [vmem:[#allocation5 + $0xda0] sm:$0xff]  ;;  %v1523_v51 = vld [vmem:[#allocation5 + $0xca8] sm:$0xff] }
 0x375   : > { %1467 = vmatpush.msra.mxu2 %v1376_v53  ;;  %1487 = vmatpush.msra.mxu3 %v1408_v54  ;;  %v1555_v52 = vld [vmem:[#allocation5 + $0xda8] sm:$0xff]  ;;  %v1520_v53 = vld [vmem:[#allocation5 + $0xc90] sm:$0xff] }
 0x376   : > { %1428 = vmatpush.msra.mxu0 %v1373_v55  ;;  %1448 = vmatpush.msra.mxu1 %v1405_v56  ;;  %v1552_v54 = vld [vmem:[#allocation5 + $0xd90] sm:$0xff]  ;;  %v1521_v55 = vld [vmem:[#allocation5 + $0xc98] sm:$0xff] }
 0x377   : > { %1468 = vmatpush.msra.mxu2 %v1374_v49  ;;  %1488 = vmatpush.msra.mxu3 %v1406_v57  ;;  %v1553_v56 = vld [vmem:[#allocation5 + $0xd98] sm:$0xff]  ;;  %v1518_v49 = vld [vmem:[#allocation5 + $0xc80] sm:$0xff] }
 0x378   : > { %1429 = vmatpush.msra.mxu0 %v1371_v50  ;;  %1449 = vmatpush.msra.mxu1 %v1403_v58  ;;  %v1550_v57 = vld [vmem:[#allocation5 + $0xd80] sm:$0xff]  ;;  %v1519_v50 = vld [vmem:[#allocation5 + $0xc88] sm:$0xff] }
 0x379   : > { %1469 = vmatpush.msra.mxu2 %v1372_v59  ;;  %1489 = vmatpush.msra.mxu3 %v1404_v60  ;;  %v1551_v58 = vld [vmem:[#allocation5 + $0xd88] sm:$0xff]  ;;  %v1516_v59 = vld [vmem:[#allocation5 + $0xc70] sm:$0xff] }
 0x37a   : > { %1430 = vmatpush.msra.mxu0 %v1369_v61  ;;  %1450 = vmatpush.msra.mxu1 %v1401_v62  ;;  %v1548_v60 = vld [vmem:[#allocation5 + $0xd70] sm:$0xff]  ;;  %v1517_v61 = vld [vmem:[#allocation5 + $0xc78] sm:$0xff] }
 0x37b   : > { %1470 = vmatpush.msra.mxu2 %v1370_v63  ;;  %1490 = vmatpush.msra.mxu3 %v1402_v0  ;;  %v1549_v62 = vld [vmem:[#allocation5 + $0xd78] sm:$0xff]  ;;  %v1514_v63 = vld [vmem:[#allocation5 + $0xc60] sm:$0xff] }
 0x37c   : > { %1431 = vmatpush.msra.mxu0 %v1367_v1  ;;  %1451 = vmatpush.msra.mxu1 %v1399_v2  ;;  %v1546_v0 = vld [vmem:[#allocation5 + $0xd60] sm:$0xff]  ;;  %v1515_v1 = vld [vmem:[#allocation5 + $0xc68] sm:$0xff] }
 0x37d   : > { %1471 = vmatpush.msra.mxu2 %v1368_v3  ;;  %1491 = vmatpush.msra.mxu3 %v1400_v4  ;;  %v1547_v2 = vld [vmem:[#allocation5 + $0xd68] sm:$0xff]  ;;  %v1512_v3 = vld [vmem:[#allocation5 + $0xc50] sm:$0xff] }
 0x37e   : > { %1432 = vmatpush.msra.mxu0 %v1365_v5  ;;  %1452 = vmatpush.msra.mxu1 %v1397_v6  ;;  %v1544_v4 = vld [vmem:[#allocation5 + $0xd50] sm:$0xff]  ;;  %v1513_v5 = vld [vmem:[#allocation5 + $0xc58] sm:$0xff] }
 0x37f   : > { %1472 = vmatpush.msra.mxu2 %v1366_v7  ;;  %1492 = vmatpush.msra.mxu3 %v1398_v8  ;;  %v1545_v6 = vld [vmem:[#allocation5 + $0xd58] sm:$0xff]  ;;  %v1510_v7 = vld [vmem:[#allocation5 + $0xc40] sm:$0xff] }
 0x380   : > { %1433 = vmatpush.msra.mxu0 %v1363_v9  ;;  %1453 = vmatpush.msra.mxu1 %v1395_v10  ;;  %v1542_v8 = vld [vmem:[#allocation5 + $0xd40] sm:$0xff]  ;;  %v1511_v9 = vld [vmem:[#allocation5 + $0xc48] sm:$0xff] }
 0x381   : > { %1473 = vmatpush.msra.mxu2 %v1364_v11  ;;  %1493 = vmatpush.msra.mxu3 %v1396_v12  ;;  %v1543_v10 = vld [vmem:[#allocation5 + $0xd48] sm:$0xff]  ;;  %v1508_v11 = vld [vmem:[#allocation5 + $0xc30] sm:$0xff] }
 0x382   : > { %1434 = vmatpush.msra.mxu0 %v1361_v13  ;;  %1454 = vmatpush.msra.mxu1 %v1393_v14  ;;  %v1540_v12 = vld [vmem:[#allocation5 + $0xd30] sm:$0xff]  ;;  %v1509_v13 = vld [vmem:[#allocation5 + $0xc38] sm:$0xff] }
 0x383   : > { %1474 = vmatpush.msra.mxu2 %v1362_v15  ;;  %1494 = vmatpush.msra.mxu3 %v1394_v17  ;;  %v1541_v14 = vld [vmem:[#allocation5 + $0xd38] sm:$0xff]  ;;  %v1506_v15 = vld [vmem:[#allocation5 + $0xc20] sm:$0xff] }
 0x384   : > { %1435 = vmatpush.msra.mxu0 %v1359_v16  ;;  %1455 = vmatpush.msra.mxu1 %v1391_v20  ;;  %v1538_v17 = vld [vmem:[#allocation5 + $0xd20] sm:$0xff]  ;;  %v1507_v16 = vld [vmem:[#allocation5 + $0xc28] sm:$0xff] }
 0x385   : > { %1475 = vmatpush.msra.mxu2 %v1360_v21  ;;  %1495 = vmatpush.msra.mxu3 %v1392_v22  ;;  %v1539_v20 = vld [vmem:[#allocation5 + $0xd28] sm:$0xff]  ;;  %v1504_v21 = vld [vmem:[#allocation5 + $0xc10] sm:$0xff] }
 0x386   : > { %1436 = vmatpush.msra.mxu0 %v1357_v23  ;;  %1456 = vmatpush.msra.mxu1 %v1389_v47  ;;  %v1536_v22 = vld [vmem:[#allocation5 + $0xd10] sm:$0xff]  ;;  %v1505_v23 = vld [vmem:[#allocation5 + $0xc18] sm:$0xff] }
 0x387   : > { %1476 = vmatpush.msra.mxu2 %v1358_v48  ;;  %1496 = vmatpush.msra.mxu3 %v1390_v24  ;;  %v1537_v47 = vld [vmem:[#allocation5 + $0xd18] sm:$0xff]  ;;  %v1502_v48 = vld [vmem:[#allocation5 + $0xc00] sm:$0xff] }
 0x388   : > { %1437 = vmatmul.f32.vlgmr.msra.gmra.mxu0 %v3890_v18  ;;  %1457 = vmatmul.f32.vlgmr.msra.gmra.mxu1 %v3892_v19  ;;  %v1534_v24 = vld [vmem:[#allocation5 + $0xd00] sm:$0xff] }
 0x389   : > { %1477 = vmatmul.f32.vlgmr.msra.gmra.mxu2 %v3890_v18  ;;  %1497 = vmatmul.f32.vlgmr.msra.gmra.mxu3 %v3892_v19 }
 0x38a   : > { %1566 = vmatpush.msrb.mxu0 %v1532_v25  ;;  %1586 = vmatpush.msrb.mxu1 %v1564_v26  ;;  %v1503_v25 = vld [vmem:[#allocation5 + $0xc08] sm:$0xff] }
 0x38b   : > { %1606 = vmatpush.msrb.mxu2 %v1533_v27  ;;  %1626 = vmatpush.msrb.mxu3 %v1565_v28  ;;  %v1535_v26 = vld [vmem:[#allocation5 + $0xd08] sm:$0xff]  ;;  %v1677_v27 = vld [vmem:[#allocation5 + $0xef0] sm:$0xff] }
 0x38c   : > { %1567 = vmatpush.msrb.mxu0 %v1530_v29  ;;  %1587 = vmatpush.msrb.mxu1 %v1562_v30  ;;  %v1709_v28 = vld [vmem:[#allocation5 + $0xff0] sm:$0xff]  ;;  %v1678_v29 = vld [vmem:[#allocation5 + $0xef8] sm:$0xff] }
 0x38d   : > { %1607 = vmatpush.msrb.mxu2 %v1531_v31  ;;  %1627 = vmatpush.msrb.mxu3 %v1563_v32  ;;  %v1710_v30 = vld [vmem:[#allocation5 + $0xff8] sm:$0xff]  ;;  %v1675_v31 = vld [vmem:[#allocation5 + $0xee0] sm:$0xff] }
 0x38e   : > { %1568 = vmatpush.msrb.mxu0 %v1528_v33  ;;  %1588 = vmatpush.msrb.mxu1 %v1560_v34  ;;  %v1707_v32 = vld [vmem:[#allocation5 + $0xfe0] sm:$0xff]  ;;  %v1676_v33 = vld [vmem:[#allocation5 + $0xee8] sm:$0xff] }
 0x38f   : > { %1608 = vmatpush.msrb.mxu2 %v1529_v35  ;;  %1628 = vmatpush.msrb.mxu3 %v1561_v36  ;;  %v1708_v34 = vld [vmem:[#allocation5 + $0xfe8] sm:$0xff]  ;;  %v1673_v35 = vld [vmem:[#allocation5 + $0xed0] sm:$0xff] }
 0x390   : > { %1569 = vmatpush.msrb.mxu0 %v1526_v37  ;;  %1589 = vmatpush.msrb.mxu1 %v1558_v38  ;;  %v1705_v36 = vld [vmem:[#allocation5 + $0xfd0] sm:$0xff]  ;;  %v1674_v37 = vld [vmem:[#allocation5 + $0xed8] sm:$0xff] }
 0x391   : > { %1609 = vmatpush.msrb.mxu2 %v1527_v39  ;;  %1629 = vmatpush.msrb.mxu3 %v1559_v40  ;;  %v1706_v38 = vld [vmem:[#allocation5 + $0xfd8] sm:$0xff]  ;;  %v1671_v39 = vld [vmem:[#allocation5 + $0xec0] sm:$0xff] }
 0x392   : > { %1570 = vmatpush.msrb.mxu0 %v1524_v41  ;;  %1590 = vmatpush.msrb.mxu1 %v1556_v42  ;;  %v1703_v40 = vld [vmem:[#allocation5 + $0xfc0] sm:$0xff]  ;;  %v1672_v41 = vld [vmem:[#allocation5 + $0xec8] sm:$0xff] }
 0x393   : > { %1610 = vmatpush.msrb.mxu2 %v1525_v43  ;;  %1630 = vmatpush.msrb.mxu3 %v1557_v44  ;;  %v1704_v42 = vld [vmem:[#allocation5 + $0xfc8] sm:$0xff]  ;;  %v1669_v43 = vld [vmem:[#allocation5 + $0xeb0] sm:$0xff] }
 0x394   : > { %1571 = vmatpush.msrb.mxu0 %v1522_v45  ;;  %1591 = vmatpush.msrb.mxu1 %v1554_v46  ;;  %v1701_v44 = vld [vmem:[#allocation5 + $0xfb0] sm:$0xff]  ;;  %v1670_v45 = vld [vmem:[#allocation5 + $0xeb8] sm:$0xff] }
 0x395   : > { %1611 = vmatpush.msrb.mxu2 %v1523_v51  ;;  %1631 = vmatpush.msrb.mxu3 %v1555_v52  ;;  %v1702_v46 = vld [vmem:[#allocation5 + $0xfb8] sm:$0xff]  ;;  %v1667_v51 = vld [vmem:[#allocation5 + $0xea0] sm:$0xff] }
 0x396   : > { %1572 = vmatpush.msrb.mxu0 %v1520_v53  ;;  %1592 = vmatpush.msrb.mxu1 %v1552_v54  ;;  %v1699_v52 = vld [vmem:[#allocation5 + $0xfa0] sm:$0xff]  ;;  %v1668_v53 = vld [vmem:[#allocation5 + $0xea8] sm:$0xff] }
 0x397   : > { %1612 = vmatpush.msrb.mxu2 %v1521_v55  ;;  %1632 = vmatpush.msrb.mxu3 %v1553_v56  ;;  %v1700_v54 = vld [vmem:[#allocation5 + $0xfa8] sm:$0xff]  ;;  %v1665_v55 = vld [vmem:[#allocation5 + $0xe90] sm:$0xff] }
 0x398   : > { %1573 = vmatpush.msrb.mxu0 %v1518_v49  ;;  %1593 = vmatpush.msrb.mxu1 %v1550_v57  ;;  %v1697_v56 = vld [vmem:[#allocation5 + $0xf90] sm:$0xff]  ;;  %v1666_v49 = vld [vmem:[#allocation5 + $0xe98] sm:$0xff] }
 0x399   : > { %1613 = vmatpush.msrb.mxu2 %v1519_v50  ;;  %1633 = vmatpush.msrb.mxu3 %v1551_v58  ;;  %v1698_v57 = vld [vmem:[#allocation5 + $0xf98] sm:$0xff]  ;;  %v3922_v50 = vpop.f32.mrf.mxu0  ;;  %v3924_v58 = vpop.f32.mrf.mxu1 }
 0x39a   : > { %1574 = vmatpush.msrb.mxu0 %v1516_v59  ;;  %1594 = vmatpush.msrb.mxu1 %v1548_v60  ;;  %v1663_v59 = vld [vmem:[#allocation5 + $0xe80] sm:$0xff] }
 0x39b   : > { %1614 = vmatpush.msrb.mxu2 %v1517_v61  ;;  %1634 = vmatpush.msrb.mxu3 %v1549_v62  ;;  %v1695_v60 = vld [vmem:[#allocation5 + $0xf80] sm:$0xff]  ;;  %v1664_v61 = vld [vmem:[#allocation5 + $0xe88] sm:$0xff] }
 0x39c   : > { %1575 = vmatpush.msrb.mxu0 %v1514_v63  ;;  %1595 = vmatpush.msrb.mxu1 %v1546_v0  ;;  %v1696_v62 = vld [vmem:[#allocation5 + $0xf88] sm:$0xff]  ;;  %v1661_v63 = vld [vmem:[#allocation5 + $0xe70] sm:$0xff] }
 0x39d   : > { %1615 = vmatpush.msrb.mxu2 %v1515_v1  ;;  %1635 = vmatpush.msrb.mxu3 %v1547_v2  ;;  %v1693_v0 = vld [vmem:[#allocation5 + $0xf70] sm:$0xff]  ;;  %v1662_v1 = vld [vmem:[#allocation5 + $0xe78] sm:$0xff] }
 0x39e   : > { %1576 = vmatpush.msrb.mxu0 %v1512_v3  ;;  %1596 = vmatpush.msrb.mxu1 %v1544_v4  ;;  %v1694_v2 = vld [vmem:[#allocation5 + $0xf78] sm:$0xff]  ;;  %v1659_v3 = vld [vmem:[#allocation5 + $0xe60] sm:$0xff] }
 0x39f   : > { %1616 = vmatpush.msrb.mxu2 %v1513_v5  ;;  %1636 = vmatpush.msrb.mxu3 %v1545_v6  ;;  %v1691_v4 = vld [vmem:[#allocation5 + $0xf60] sm:$0xff]  ;;  %v1660_v5 = vld [vmem:[#allocation5 + $0xe68] sm:$0xff] }
 0x3a0   : > { %1577 = vmatpush.msrb.mxu0 %v1510_v7  ;;  %1597 = vmatpush.msrb.mxu1 %v1542_v8  ;;  %v1692_v6 = vld [vmem:[#allocation5 + $0xf68] sm:$0xff]  ;;  %v1657_v7 = vld [vmem:[#allocation5 + $0xe50] sm:$0xff] }
 0x3a1   : > { %1617 = vmatpush.msrb.mxu2 %v1511_v9  ;;  %1637 = vmatpush.msrb.mxu3 %v1543_v10  ;;  %v1689_v8 = vld [vmem:[#allocation5 + $0xf50] sm:$0xff]  ;;  %v1658_v9 = vld [vmem:[#allocation5 + $0xe58] sm:$0xff] }
 0x3a2   : > { %1578 = vmatpush.msrb.mxu0 %v1508_v11  ;;  %1598 = vmatpush.msrb.mxu1 %v1540_v12  ;;  %v1690_v10 = vld [vmem:[#allocation5 + $0xf58] sm:$0xff]  ;;  %v3926_v11 = vpop.f32.mrf.mxu0  ;;  %v3928_v12 = vpop.f32.mrf.mxu1 }
 0x3a3   : > { %1618 = vmatpush.msrb.mxu2 %v1509_v13  ;;  %1638 = vmatpush.msrb.mxu3 %v1541_v14  ;;  %v1655_v13 = vld [vmem:[#allocation5 + $0xe40] sm:$0xff] }
 0x3a4   : > { %1579 = vmatpush.msrb.mxu0 %v1506_v15  ;;  %1599 = vmatpush.msrb.mxu1 %v1538_v17  ;;  %v1687_v14 = vld [vmem:[#allocation5 + $0xf40] sm:$0xff]  ;;  %v1656_v15 = vld [vmem:[#allocation5 + $0xe48] sm:$0xff] }
 0x3a5   : > { %1619 = vmatpush.msrb.mxu2 %v1507_v16  ;;  %1639 = vmatpush.msrb.mxu3 %v1539_v20  ;;  %v1688_v17 = vld [vmem:[#allocation5 + $0xf48] sm:$0xff]  ;;  %v1653_v16 = vld [vmem:[#allocation5 + $0xe30] sm:$0xff] }
 0x3a6   : > { %1580 = vmatpush.msrb.mxu0 %v1504_v21  ;;  %1600 = vmatpush.msrb.mxu1 %v1536_v22  ;;  %v1685_v20 = vld [vmem:[#allocation5 + $0xf30] sm:$0xff]  ;;  %v1654_v21 = vld [vmem:[#allocation5 + $0xe38] sm:$0xff] }
 0x3a7   : > { %1620 = vmatpush.msrb.mxu2 %v1505_v23  ;;  %1640 = vmatpush.msrb.mxu3 %v1537_v47  ;;  %v1686_v22 = vld [vmem:[#allocation5 + $0xf38] sm:$0xff]  ;;  %v1651_v23 = vld [vmem:[#allocation5 + $0xe20] sm:$0xff] }
 0x3a8   : > { %1581 = vmatpush.msrb.mxu0 %v1502_v48  ;;  %1601 = vmatpush.msrb.mxu1 %v1534_v24  ;;  %v1683_v47 = vld [vmem:[#allocation5 + $0xf20] sm:$0xff]  ;;  %v1652_v48 = vld [vmem:[#allocation5 + $0xe28] sm:$0xff] }
 0x3a9   : > { %1621 = vmatpush.msrb.mxu2 %v1503_v25  ;;  %1641 = vmatpush.msrb.mxu3 %v1535_v26  ;;  %v1684_v24 = vld [vmem:[#allocation5 + $0xf28] sm:$0xff]  ;;  %v1649_v25 = vld [vmem:[#allocation5 + $0xe10] sm:$0xff] }
 0x3aa   : > { %1582 = vmatmul.f32.vlgmr.msrb.gmra.mxu0 %v3890_v18  ;;  %1602 = vmatmul.f32.vlgmr.msrb.gmra.mxu1 %v3892_v19  ;;  %v1681_v26 = vld [vmem:[#allocation5 + $0xf10] sm:$0xff] }
 0x3ab   : > { %1622 = vmatmul.f32.vlgmr.msrb.gmra.mxu2 %v3890_v18  ;;  %1642 = vmatmul.f32.vlgmr.msrb.gmra.mxu3 %v3892_v19 }
 0x3ac   : > { %1711 = vmatpush.msra.mxu0 %v1677_v27  ;;  %1731 = vmatpush.msra.mxu1 %v1709_v28  ;;  %v1650_v27 = vld [vmem:[#allocation5 + $0xe18] sm:$0xff] }
 0x3ad   : > { %1751 = vmatpush.msra.mxu2 %v1678_v29  ;;  %1771 = vmatpush.msra.mxu3 %v1710_v30  ;;  %v1682_v28 = vld [vmem:[#allocation5 + $0xf18] sm:$0xff]  ;;  %v1647_v29 = vld [vmem:[#allocation5 + $0xe00] sm:$0xff] }
 0x3ae   : > { %1712 = vmatpush.msra.mxu0 %v1675_v31  ;;  %1732 = vmatpush.msra.mxu1 %v1707_v32  ;;  %v1679_v30 = vld [vmem:[#allocation5 + $0xf00] sm:$0xff]  ;;  %v1648_v31 = vld [vmem:[#allocation5 + $0xe08] sm:$0xff] }
 0x3af   : > { %1752 = vmatpush.msra.mxu2 %v1676_v33  ;;  %1772 = vmatpush.msra.mxu3 %v1708_v34  ;;  %v1680_v32 = vld [vmem:[#allocation5 + $0xf08] sm:$0xff]  ;;  %v3930_v33 = vpop.f32.mrf.mxu0  ;;  %v3932_v34 = vpop.f32.mrf.mxu1 }
 0x3b0   : > { %1713 = vmatpush.msra.mxu0 %v1673_v35  ;;  %1733 = vmatpush.msra.mxu1 %v1705_v36  ;;  %v3934_v35 = vpop.f32.mrf.mxu2  ;;  %v3936_v36 = vpop.f32.mrf.mxu3 }
 0x3b1   : > { %1753 = vmatpush.msra.mxu2 %v1674_v37  ;;  %1773 = vmatpush.msra.mxu3 %v1706_v38  ;;  %v1822_v37 = vld [vmem:[#allocation5 + $0x10f0] sm:$0xff] }
 0x3b2   : > { %1714 = vmatpush.msra.mxu0 %v1671_v39  ;;  %1734 = vmatpush.msra.mxu1 %v1703_v40  ;;  %v1854_v38 = vld [vmem:[#allocation5 + $0x11f0] sm:$0xff]  ;;  %v1823_v39 = vld [vmem:[#allocation5 + $0x10f8] sm:$0xff] }
 0x3b3   : > { %1754 = vmatpush.msra.mxu2 %v1672_v41  ;;  %1774 = vmatpush.msra.mxu3 %v1704_v42  ;;  %v1855_v40 = vld [vmem:[#allocation5 + $0x11f8] sm:$0xff]  ;;  %v1820_v41 = vld [vmem:[#allocation5 + $0x10e0] sm:$0xff] }
 0x3b4   : > { %1715 = vmatpush.msra.mxu0 %v1669_v43  ;;  %1735 = vmatpush.msra.mxu1 %v1701_v44  ;;  %v1852_v42 = vld [vmem:[#allocation5 + $0x11e0] sm:$0xff]  ;;  %v1821_v43 = vld [vmem:[#allocation5 + $0x10e8] sm:$0xff] }
 0x3b5   : > { %1755 = vmatpush.msra.mxu2 %v1670_v45  ;;  %1775 = vmatpush.msra.mxu3 %v1702_v46  ;;  %v1853_v44 = vld [vmem:[#allocation5 + $0x11e8] sm:$0xff]  ;;  %v1818_v45 = vld [vmem:[#allocation5 + $0x10d0] sm:$0xff] }
 0x3b6   : > { %1716 = vmatpush.msra.mxu0 %v1667_v51  ;;  %1736 = vmatpush.msra.mxu1 %v1699_v52  ;;  %v1850_v46 = vld [vmem:[#allocation5 + $0x11d0] sm:$0xff]  ;;  %v1819_v51 = vld [vmem:[#allocation5 + $0x10d8] sm:$0xff] }
 0x3b7   : > { %1756 = vmatpush.msra.mxu2 %v1668_v53  ;;  %1776 = vmatpush.msra.mxu3 %v1700_v54  ;;  %v1851_v52 = vld [vmem:[#allocation5 + $0x11d8] sm:$0xff]  ;;  %v1816_v53 = vld [vmem:[#allocation5 + $0x10c0] sm:$0xff] }
 0x3b8   : > { %1717 = vmatpush.msra.mxu0 %v1665_v55  ;;  %1737 = vmatpush.msra.mxu1 %v1697_v56  ;;  %v1848_v54 = vld [vmem:[#allocation5 + $0x11c0] sm:$0xff]  ;;  %v1817_v55 = vld [vmem:[#allocation5 + $0x10c8] sm:$0xff] }
 0x3b9   : > { %1757 = vmatpush.msra.mxu2 %v1666_v49  ;;  %1777 = vmatpush.msra.mxu3 %v1698_v57  ;;  %v1849_v56 = vld [vmem:[#allocation5 + $0x11c8] sm:$0xff]  ;;  %v3942_v49 = vpop.f32.mrf.mxu0  ;;  %v3944_v57 = vpop.f32.mrf.mxu1 }
 0x3ba   : > { %1718 = vmatpush.msra.mxu0 %v1663_v59  ;;  %1738 = vmatpush.msra.mxu1 %v1695_v60  ;;  %v1814_v59 = vld [vmem:[#allocation5 + $0x10b0] sm:$0xff] }
 0x3bb   : > { %1758 = vmatpush.msra.mxu2 %v1664_v61  ;;  %1778 = vmatpush.msra.mxu3 %v1696_v62  ;;  %v1846_v60 = vld [vmem:[#allocation5 + $0x11b0] sm:$0xff]  ;;  %v3946_v61 = vpop.f32.mrf.mxu2  ;;  %v3948_v62 = vpop.f32.mrf.mxu3 }
 0x3bc   : > { %1719 = vmatpush.msra.mxu0 %v1661_v63  ;;  %1739 = vmatpush.msra.mxu1 %v1693_v0  ;;  %v1815_v63 = vld [vmem:[#allocation5 + $0x10b8] sm:$0xff] }
 0x3bd   : > { %1759 = vmatpush.msra.mxu2 %v1662_v1  ;;  %1779 = vmatpush.msra.mxu3 %v1694_v2  ;;  %v1847_v0 = vld [vmem:[#allocation5 + $0x11b8] sm:$0xff]  ;;  %v1812_v1 = vld [vmem:[#allocation5 + $0x10a0] sm:$0xff] }
 0x3be   : > { %1720 = vmatpush.msra.mxu0 %v1659_v3  ;;  %1740 = vmatpush.msra.mxu1 %v1691_v4  ;;  %v1844_v2 = vld [vmem:[#allocation5 + $0x11a0] sm:$0xff]  ;;  %v1813_v3 = vld [vmem:[#allocation5 + $0x10a8] sm:$0xff] }
 0x3bf   : > { %1760 = vmatpush.msra.mxu2 %v1660_v5  ;;  %1780 = vmatpush.msra.mxu3 %v1692_v6  ;;  %v1845_v4 = vld [vmem:[#allocation5 + $0x11a8] sm:$0xff]  ;;  %v1810_v5 = vld [vmem:[#allocation5 + $0x1090] sm:$0xff] }
 0x3c0   : > { %1721 = vmatpush.msra.mxu0 %v1657_v7  ;;  %1741 = vmatpush.msra.mxu1 %v1689_v8  ;;  %v1842_v6 = vld [vmem:[#allocation5 + $0x1190] sm:$0xff]  ;;  %v1811_v7 = vld [vmem:[#allocation5 + $0x1098] sm:$0xff] }
 0x3c1   : > { %1761 = vmatpush.msra.mxu2 %v1658_v9  ;;  %1781 = vmatpush.msra.mxu3 %v1690_v10  ;;  %v1843_v8 = vld [vmem:[#allocation5 + $0x1198] sm:$0xff]  ;;  %v1808_v9 = vld [vmem:[#allocation5 + $0x1080] sm:$0xff] }
 0x3c2   : > { %1722 = vmatpush.msra.mxu0 %v1655_v13  ;;  %1742 = vmatpush.msra.mxu1 %v1687_v14  ;;  %v1840_v10 = vld [vmem:[#allocation5 + $0x1180] sm:$0xff]  ;;  %v1809_v13 = vld [vmem:[#allocation5 + $0x1088] sm:$0xff] }
 0x3c3   : > { %1762 = vmatpush.msra.mxu2 %v1656_v15  ;;  %1782 = vmatpush.msra.mxu3 %v1688_v17  ;;  %v1841_v14 = vld [vmem:[#allocation5 + $0x1188] sm:$0xff]  ;;  %v3950_v15 = vpop.f32.mrf.mxu0  ;;  %v3952_v17 = vpop.f32.mrf.mxu1 }
 0x3c4   : > { %1723 = vmatpush.msra.mxu0 %v1653_v16  ;;  %1743 = vmatpush.msra.mxu1 %v1685_v20  ;;  %v1806_v16 = vld [vmem:[#allocation5 + $0x1070] sm:$0xff] }
 0x3c5   : > { %1763 = vmatpush.msra.mxu2 %v1654_v21  ;;  %1783 = vmatpush.msra.mxu3 %v1686_v22  ;;  %v1838_v20 = vld [vmem:[#allocation5 + $0x1170] sm:$0xff]  ;;  %v3954_v21 = vpop.f32.mrf.mxu2  ;;  %v3956_v22 = vpop.f32.mrf.mxu3 }
 0x3c6   : > { %1724 = vmatpush.msra.mxu0 %v1651_v23  ;;  %1744 = vmatpush.msra.mxu1 %v1683_v47  ;;  %v1807_v23 = vld [vmem:[#allocation5 + $0x1078] sm:$0xff] }
 0x3c7   : > { %1764 = vmatpush.msra.mxu2 %v1652_v48  ;;  %1784 = vmatpush.msra.mxu3 %v1684_v24  ;;  %v1839_v47 = vld [vmem:[#allocation5 + $0x1178] sm:$0xff]  ;;  %v1804_v48 = vld [vmem:[#allocation5 + $0x1060] sm:$0xff] }
 0x3c8   : > { %1725 = vmatpush.msra.mxu0 %v1649_v25  ;;  %1745 = vmatpush.msra.mxu1 %v1681_v26  ;;  %v1836_v24 = vld [vmem:[#allocation5 + $0x1160] sm:$0xff]  ;;  %v1805_v25 = vld [vmem:[#allocation5 + $0x1068] sm:$0xff] }
 0x3c9   : > { %1765 = vmatpush.msra.mxu2 %v1650_v27  ;;  %1785 = vmatpush.msra.mxu3 %v1682_v28  ;;  %v1837_v26 = vld [vmem:[#allocation5 + $0x1168] sm:$0xff]  ;;  %v1802_v27 = vld [vmem:[#allocation5 + $0x1050] sm:$0xff] }
 0x3ca   : > { %1726 = vmatpush.msra.mxu0 %v1647_v29  ;;  %1746 = vmatpush.msra.mxu1 %v1679_v30  ;;  %v1834_v28 = vld [vmem:[#allocation5 + $0x1150] sm:$0xff]  ;;  %v1803_v29 = vld [vmem:[#allocation5 + $0x1058] sm:$0xff] }
 0x3cb   : > { %1766 = vmatpush.msra.mxu2 %v1648_v31  ;;  %1786 = vmatpush.msra.mxu3 %v1680_v32  ;;  %v1835_v30 = vld [vmem:[#allocation5 + $0x1158] sm:$0xff]  ;;  %v1800_v31 = vld [vmem:[#allocation5 + $0x1040] sm:$0xff] }
 0x3cc   : > { %1727 = vmatmul.f32.vlgmr.msra.gmra.mxu0 %v3890_v18  ;;  %1747 = vmatmul.f32.vlgmr.msra.gmra.mxu1 %v3892_v19  ;;  %v1832_v32 = vld [vmem:[#allocation5 + $0x1140] sm:$0xff] }
 0x3cd   : > { %1767 = vmatmul.f32.vlgmr.msra.gmra.mxu2 %v3890_v18  ;;  %1787 = vmatmul.f32.vlgmr.msra.gmra.mxu3 %v3892_v19 }
 0x3ce   : > { %1856 = vmatpush.msrb.mxu0 %v1822_v37  ;;  %1876 = vmatpush.msrb.mxu1 %v1854_v38  ;;  %v1801_v37 = vld [vmem:[#allocation5 + $0x1048] sm:$0xff] }
 0x3cf   : > { %1896 = vmatpush.msrb.mxu2 %v1823_v39  ;;  %1916 = vmatpush.msrb.mxu3 %v1855_v40  ;;  %v1833_v38 = vld [vmem:[#allocation5 + $0x1148] sm:$0xff]  ;;  %v1148_v39 = vpop.f32.mrf.mxu0  ;;  %v1168_v40 = vpop.f32.mrf.mxu1 }
 0x3d0   : > { %1857 = vmatpush.msrb.mxu0 %v1820_v41  ;;  %1877 = vmatpush.msrb.mxu1 %v1852_v42  ;;  %v1798_v41 = vld [vmem:[#allocation5 + $0x1030] sm:$0xff] }
 0x3d1   : > { %1897 = vmatpush.msrb.mxu2 %v1821_v43  ;;  %1917 = vmatpush.msrb.mxu3 %v1853_v44  ;;  %v1830_v42 = vld [vmem:[#allocation5 + $0x1130] sm:$0xff]  ;;  %v1188_v43 = vpop.f32.mrf.mxu2  ;;  %v1208_v44 = vpop.f32.mrf.mxu3 }
 0x3d2   : > { %1858 = vmatpush.msrb.mxu0 %v1818_v45  ;;  %1878 = vmatpush.msrb.mxu1 %v1850_v46  ;;  %v1799_v45 = vld [vmem:[#allocation5 + $0x1038] sm:$0xff] }
 0x3d3   : > { %1898 = vmatpush.msrb.mxu2 %v1819_v51  ;;  %1918 = vmatpush.msrb.mxu3 %v1851_v52  ;;  %v1831_v46 = vld [vmem:[#allocation5 + $0x1138] sm:$0xff]  ;;  %v1796_v51 = vld [vmem:[#allocation5 + $0x1020] sm:$0xff] }
 0x3d4   : > { %1859 = vmatpush.msrb.mxu0 %v1816_v53  ;;  %1879 = vmatpush.msrb.mxu1 %v1848_v54  ;;  %v1828_v52 = vld [vmem:[#allocation5 + $0x1120] sm:$0xff]  ;;  %v1797_v53 = vld [vmem:[#allocation5 + $0x1028] sm:$0xff] }
 0x3d5   : > { %1899 = vmatpush.msrb.mxu2 %v1817_v55  ;;  %1919 = vmatpush.msrb.mxu3 %v1849_v56  ;;  %v1829_v54 = vld [vmem:[#allocation5 + $0x1128] sm:$0xff]  ;;  %v1794_v55 = vld [vmem:[#allocation5 + $0x1010] sm:$0xff] }
 0x3d6   : > { %1860 = vmatpush.msrb.mxu0 %v1814_v59  ;;  %1880 = vmatpush.msrb.mxu1 %v1846_v60  ;;  %v1826_v56 = vld [vmem:[#allocation5 + $0x1110] sm:$0xff]  ;;  %v1795_v59 = vld [vmem:[#allocation5 + $0x1018] sm:$0xff] }
 0x3d7   : > { %1900 = vmatpush.msrb.mxu2 %v1815_v63  ;;  %1920 = vmatpush.msrb.mxu3 %v1847_v0  ;;  %v1827_v60 = vld [vmem:[#allocation5 + $0x1118] sm:$0xff]  ;;  %v1792_v63 = vld [vmem:[#allocation5 + $0x1000] sm:$0xff] }
 0x3d8   : > { %1861 = vmatpush.msrb.mxu0 %v1812_v1  ;;  %1881 = vmatpush.msrb.mxu1 %v1844_v2  ;;  %v1824_v0 = vld [vmem:[#allocation5 + $0x1100] sm:$0xff]  ;;  %v1793_v1 = vld [vmem:[#allocation5 + $0x1008] sm:$0xff] }
 0x3d9   : > { %1901 = vmatpush.msrb.mxu2 %v1813_v3  ;;  %1921 = vmatpush.msrb.mxu3 %v1845_v4  ;;  %v1825_v2 = vld [vmem:[#allocation5 + $0x1108] sm:$0xff] }
 0x3da   : > { %1862 = vmatpush.msrb.mxu0 %v1810_v5  ;;  %1882 = vmatpush.msrb.mxu1 %v1842_v6 }
 0x3db   : > { %1902 = vmatpush.msrb.mxu2 %v1811_v7  ;;  %1922 = vmatpush.msrb.mxu3 %v1843_v8  ;;  %v734_v7 = vadd.f32 %v3932_v34, %v3930_v33  ;;  %v774_v8 = vadd.f32 %v3936_v36, %v3934_v35  ;;  %v1169_v34 = vadd.f32 %v1168_v40, %v1148_v39 }
 0x3dc   : > { %1863 = vmatpush.msrb.mxu0 %v1808_v9  ;;  %1883 = vmatpush.msrb.mxu1 %v1840_v10  ;;  %v879_v9 = vadd.f32 %v3944_v57, %v3942_v49  ;;  %v919_v10 = vadd.f32 %v3948_v62, %v3946_v61  ;;  %v1209_v35 = vadd.f32 %v1208_v44, %v1188_v43  ;;  %v3303_v57 = vld [vmem:[%s4246_s4 + $0x8] sm:$0xf]  ;;  %v3308_v61 = vld [vmem:[%s4246_s4 + $0xc] sm:$0xf]  ;;  %v3313_v62 = vld [vmem:[%s4246_s4 + $0x10] sm:$0xf] }
 0x3dd   : > { %1903 = vmatpush.msrb.mxu2 %v1809_v13  ;;  %1923 = vmatpush.msrb.mxu3 %v1841_v14  ;;  %v1024_v36 = vadd.f32 %v3952_v17, %v3950_v15  ;;  %v1064_v49 = vadd.f32 %v3956_v22, %v3954_v21 }
 0x3de   : > { %1864 = vmatpush.msrb.mxu0 %v1806_v16  ;;  %1884 = vmatpush.msrb.mxu1 %v1838_v20  ;;  %v3318_v16 = vld [vmem:[%s4246_s4 + $0x14] sm:$0xf]  ;;  %v3323_v20 = vld [vmem:[%s4246_s4 + $0x18] sm:$0xf] }
 0x3df   : > { %1904 = vmatpush.msrb.mxu2 %v1807_v23  ;;  %1924 = vmatpush.msrb.mxu3 %v1839_v47  ;;  %v3328_v47 = vld [vmem:[%s4246_s4 + $0x1c] sm:$0xf] }
 0x3e0   : > { %1865 = vmatpush.msrb.mxu0 %v1804_v48  ;;  %1885 = vmatpush.msrb.mxu1 %v1836_v24  ;;  %v3333_v48 = vld [vmem:[%s4246_s4 + $0x20] sm:$0xf] }
 0x3e1   : > { %1905 = vmatpush.msrb.mxu2 %v1805_v25  ;;  %1925 = vmatpush.msrb.mxu3 %v1837_v26 }
 0x3e2   : > { %1866 = vmatpush.msrb.mxu0 %v1802_v27  ;;  %1886 = vmatpush.msrb.mxu1 %v1834_v28  ;;  %v3338_v27 = vld [vmem:[%s4246_s4 + $0x24] sm:$0xf]  ;;  %v3343_v28 = vld [vmem:[%s4246_s4 + $0x28] sm:$0xf] }
 0x3e3   : > { %1906 = vmatpush.msrb.mxu2 %v1803_v29  ;;  %1926 = vmatpush.msrb.mxu3 %v1835_v30  ;;  %v1293_v3 = vpop.f32.mrf.mxu0  ;;  %v1313_v4 = vpop.f32.mrf.mxu1 }
 0x3e4   : > { %1867 = vmatpush.msrb.mxu0 %v1800_v31  ;;  %1887 = vmatpush.msrb.mxu1 %v1832_v32  ;;  %v3970_v13 = vadd.f32 %v1313_v4, %v1293_v3  ;;  %v1936_v32 = vld [vmem:[%s4247_s5] sm:$0xf] }
 0x3e5   : > { %1907 = vmatpush.msrb.mxu2 %v1801_v37  ;;  %1927 = vmatpush.msrb.mxu3 %v1833_v38  ;;  %v3353_v37 = vld [vmem:[%s4246_s4 + $0x30] sm:$0xf] }
 0x3e6   : > { %1868 = vmatpush.msrb.mxu0 %v1798_v41  ;;  %1888 = vmatpush.msrb.mxu1 %v1830_v42  ;;  %v3363_v41 = vld [vmem:[%s4246_s4 + $0x38] sm:$0xf]  ;;  %v3348_v42 = vld [vmem:[%s4246_s4 + $0x2c] sm:$0xf] }
 0x3e7   : > { %1908 = vmatpush.msrb.mxu2 %v1799_v45  ;;  %1928 = vmatpush.msrb.mxu3 %v1831_v46  ;;  %v3358_v46 = vld [vmem:[%s4246_s4 + $0x34] sm:$0xf] }
 0x3e8   : > { %1869 = vmatpush.msrb.mxu0 %v1796_v51  ;;  %1889 = vmatpush.msrb.mxu1 %v1828_v52 }
 0x3e9   : > { %1909 = vmatpush.msrb.mxu2 %v1797_v53  ;;  %1929 = vmatpush.msrb.mxu3 %v1829_v54  ;;  %v3368_v54 = vld [vmem:[%s4246_s4 + $0x3c] sm:$0xf] }
 0x3ea   : > { %1870 = vmatpush.msrb.mxu0 %v1794_v55  ;;  %1890 = vmatpush.msrb.mxu1 %v1826_v56  ;;  %v1333_v5 = vpop.f32.mrf.mxu2  ;;  %v1353_v6 = vpop.f32.mrf.mxu3 }
 0x3eb   : > { %1910 = vmatpush.msrb.mxu2 %v1795_v59  ;;  %1930 = vmatpush.msrb.mxu3 %v1827_v60  ;;  %v3972_v33 = vadd.f32 %v1353_v6, %v1333_v5 }
 0x3ec   : > { %1871 = vmatpush.msrb.mxu0 %v1792_v63  ;;  %1891 = vmatpush.msrb.mxu1 %v1824_v0 }
 0x3ed   : > { %1911 = vmatpush.msrb.mxu2 %v1793_v1  ;;  %1931 = vmatpush.msrb.mxu3 %v1825_v2 }
 0x3ee   : > { %1872 = vmatmul.f32.vlgmr.msrb.gmra.mxu0 %v3890_v18  ;;  %1892 = vmatmul.f32.vlgmr.msrb.gmra.mxu1 %v3892_v19 }
 0x3ef   : > { %1912 = vmatmul.f32.vlgmr.msrb.gmra.mxu2 %v3890_v18  ;;  %1932 = vmatmul.f32.vlgmr.msrb.gmra.mxu3 %v3892_v19  ;;  %v1937_v18 = vld [vmem:[%s4246_s4] sm:$0xf]  ;;  %v3298_v19 = vld [vmem:[%s4246_s4 + $0x4] sm:$0xf] }
 0x3f0   : > { %3294 = vmatpush.msk.msra.mxu0 %vm435_vm0, %v734_v7  ;;  %3296 = vmatpush.msk.msra.mxu1 %vm435_vm0, %v774_v8 }
 0x3f1   : > { %3299 = vmatpush.msk.msra.mxu2 %vm435_vm0, %v879_v9  ;;  %3301 = vmatpush.msk.msra.mxu3 %vm435_vm0, %v919_v10 }
 0x3f2   : > { %3304 = vmatpush.msk.msrb.mxu0 %vm435_vm0, %v1169_v34  ;;  %3306 = vmatpush.msk.msrb.mxu1 %vm435_vm0, %v1209_v35 }
 0x3f3   : > { %3309 = vmatpush.msk.msrb.mxu2 %vm435_vm0, %v3970_v13  ;;  %3311 = vmatpush.msk.msrb.mxu3 %vm435_vm0, %v3972_v33 }
 0x3f4   : > { %1989 = vperm.xlu2 %3491, %v1936_v32  }
 0x3f6   : > { %3295 = vmatmul.msk.f32.vlgmr.msra.gmra.mxu0 %vm428_vm5, %v1937_v18  ;;  %3297 = vmatmul.msk.f32.vlgmr.msra.gmra.mxu1 %vm428_vm5, %v1937_v18 }
 0x3f7   : > { %3300 = vmatmul.msk.f32.vlgmr.msra.gmra.mxu2 %vm428_vm5, %v3298_v19  ;;  %3314 = vmatpush.msk.msra.mxu0 %vm435_vm0, %v879_v9 }
 0x3f8   : > { %3316 = vmatpush.msk.msra.mxu1 %vm435_vm0, %v919_v10  ;;  %3319 = vmatpush.msk.msra.mxu2 %vm435_vm0, %v1024_v36 }
 0x3f9   : > { %3302 = vmatmul.msk.f32.vlgmr.msra.gmra.mxu3 %vm428_vm5, %v3298_v19 }
 0x3fa   : > { %3321 = vmatpush.msk.msra.mxu3 %vm435_vm0, %v1064_v49 }
 0x3fe   : > { %3305 = vmatmul.msk.f32.vlgmr.msrb.gmra.mxu0 %vm428_vm5, %v3303_v57  ;;  %3307 = vmatmul.msk.f32.vlgmr.msrb.gmra.mxu1 %vm428_vm5, %v3303_v57 }
 0x3ff   : > { %3324 = vmatpush.msk.msrb.mxu0 %vm435_vm0, %v3970_v13  ;;  %3326 = vmatpush.msk.msrb.mxu1 %vm435_vm0, %v3972_v33 }
 0x400   : > { %3310 = vmatmul.msk.f32.vlgmr.msrb.gmra.mxu2 %vm428_vm5, %v3308_v61 }
 0x401   : > { %3312 = vmatmul.msk.f32.vlgmr.msrb.gmra.mxu3 %vm428_vm5, %v3308_v61 }
 0x405   : > { %v1438_v14 = vpop.f32.mrf.mxu0  ;;  %v1458_v15 = vpop.f32.mrf.mxu1 }
 0x406   : > { %3315 = vmatmul.msk.f32.vlgmr.msra.gmra.mxu0 %vm428_vm5, %v3313_v62  ;;  %3317 = vmatmul.msk.f32.vlgmr.msra.gmra.mxu1 %vm428_vm5, %v3313_v62  ;;  %v1459_v17 = vadd.f32 %v1458_v15, %v1438_v14 }
 0x407   : > { %3334 = vmatpush.msk.msra.mxu0 %vm435_vm0, %v1169_v34  ;;  %3336 = vmatpush.msk.msra.mxu1 %vm435_vm0, %v1209_v35 }
 0x408   : > { %3329 = vmatpush.msk.msrb.mxu2 %vm435_vm0, %v1459_v17 }
 0x409   : > { %3320 = vmatmul.msk.f32.vlgmr.msra.gmra.mxu2 %vm428_vm5, %v3318_v16  ;;  %3322 = vmatmul.msk.f32.vlgmr.msra.gmra.mxu3 %vm428_vm5, %v3318_v16 }
 0x40a   : > { %3339 = vmatpush.msk.msra.mxu2 %vm435_vm0, %v3970_v13 }
 0x40c   : > { %v1478_v21 = vpop.f32.mrf.mxu2  ;;  %v1498_v22 = vpop.f32.mrf.mxu3 }
 0x40d   : > { %v1499_v23 = vadd.f32 %v1498_v22, %v1478_v21 }
 0x40e   : > { %3325 = vmatmul.msk.f32.vlgmr.msrb.gmra.mxu0 %vm428_vm5, %v3323_v20  ;;  %3327 = vmatmul.msk.f32.vlgmr.msrb.gmra.mxu1 %vm428_vm5, %v3323_v20 }
 0x40f   : > { %3331 = vmatpush.msk.msrb.mxu3 %vm435_vm0, %v1499_v23 }
 0x411   : > { %3341 = vmatpush.msk.msra.mxu3 %vm435_vm0, %v3972_v33  ;;  %3330 = vmatmul.msk.f32.vlgmr.msrb.gmra.mxu2 %vm428_vm5, %v3328_v47 }
 0x412   : > { %3332 = vmatmul.msk.f32.vlgmr.msrb.gmra.mxu3 %vm428_vm5, %v3328_v47 }
 0x416   : > { %3335 = vmatmul.msk.f32.vlgmr.msra.gmra.mxu0 %vm428_vm5, %v3333_v48  ;;  %3337 = vmatmul.msk.f32.vlgmr.msra.gmra.mxu1 %vm428_vm5, %v3333_v48 }
 0x419   : > { %3340 = vmatmul.msk.f32.vlgmr.msra.gmra.mxu2 %vm428_vm5, %v3338_v27 }
 0x41a   : > { %3342 = vmatmul.msk.f32.vlgmr.msra.gmra.mxu3 %vm428_vm5, %v3338_v27 }
 0x427   : > { %v1583_v24 = vpop.f32.mrf.mxu0  ;;  %v1603_v25 = vpop.f32.mrf.mxu1 }
 0x428   : > { %v1604_v26 = vadd.f32 %v1603_v25, %v1583_v24 }
 0x42a   : > { %3344 = vmatpush.msk.msrb.mxu0 %vm435_vm0, %v1604_v26 }
 0x42b   : > { %3345 = vmatmul.msk.f32.vlgmr.msrb.gmra.mxu0 %vm428_vm5, %v3343_v28 }
 0x42c   : > { %3354 = vmatpush.msk.msra.mxu0 %vm435_vm0, %v3970_v13 }
 0x42e   : > { %v1623_v29 = vpop.f32.mrf.mxu2  ;;  %v1643_v30 = vpop.f32.mrf.mxu3 }
 0x42f   : > { %v1644_v31 = vadd.f32 %v1643_v30, %v1623_v29 }
 0x431   : > { %3346 = vmatpush.msk.msrb.mxu1 %vm435_vm0, %v1644_v31 }
 0x432   : > { %3347 = vmatmul.msk.f32.vlgmr.msrb.gmra.mxu1 %vm428_vm5, %v3343_v28 }
 0x433   : > { %3356 = vmatpush.msk.msra.mxu1 %vm435_vm0, %v3972_v33  ;;  %3355 = vmatmul.msk.f32.vlgmr.msra.gmra.mxu0 %vm428_vm5, %v3353_v37 }
 0x43a   : > { %3357 = vmatmul.msk.f32.vlgmr.msra.gmra.mxu1 %vm428_vm5, %v3353_v37 }
 0x449   : > { %v1728_v38 = vpop.f32.mrf.mxu0  ;;  %v1748_v39 = vpop.f32.mrf.mxu1 }
 0x44a   : > { %v1749_v40 = vadd.f32 %v1748_v39, %v1728_v38 }
 0x44c   : > { %3349 = vmatpush.msk.msrb.mxu2 %vm435_vm0, %v1749_v40  ;;  %3364 = vmatpush.msk.msrb.mxu0 %vm435_vm0, %v1749_v40 }
 0x44d   : > { %3365 = vmatmul.msk.f32.vlgmr.msrb.gmra.mxu0 %vm428_vm5, %v3363_v41  ;;  %3350 = vmatmul.msk.f32.vlgmr.msrb.gmra.mxu2 %vm428_vm5, %v3348_v42 }
 0x44e   : > { %3359 = vmatpush.msk.msra.mxu2 %vm435_vm0, %v1459_v17  ;;  %v1990_v10 = vpop.permute.xlu2 %1989 }
 0x450   : > { %v1768_v43 = vpop.f32.mrf.mxu2  ;;  %v1788_v44 = vpop.f32.mrf.mxu3 }
 0x451   : > { %v1789_v45 = vadd.f32 %v1788_v44, %v1768_v43 }
 0x453   : > { %3351 = vmatpush.msk.msrb.mxu3 %vm435_vm0, %v1789_v45  ;;  %3366 = vmatpush.msk.msrb.mxu1 %vm435_vm0, %v1789_v45 }
 0x454   : > { %3352 = vmatmul.msk.f32.vlgmr.msrb.gmra.mxu3 %vm428_vm5, %v3348_v42  ;;  %3367 = vmatmul.msk.f32.vlgmr.msrb.gmra.mxu1 %vm428_vm5, %v3363_v41 }
 0x455   : > { %3361 = vmatpush.msk.msra.mxu3 %vm435_vm0, %v1499_v23  ;;  %3360 = vmatmul.msk.f32.vlgmr.msra.gmra.mxu2 %vm428_vm5, %v3358_v46 }
 0x45c   : > { %3362 = vmatmul.msk.f32.vlgmr.msra.gmra.mxu3 %vm428_vm5, %v3358_v46 }
 0x46b   : > { %v1873_v51 = vpop.f32.mrf.mxu0  ;;  %v1893_v52 = vpop.f32.mrf.mxu1 }
 0x46c   : > { %v1894_v53 = vadd.f32 %v1893_v52, %v1873_v51 }
 0x46e   : > { %3369 = vmatpush.msk.msrb.mxu2 %vm435_vm0, %v1894_v53 }
 0x46f   : > { %3370 = vmatmul.msk.f32.vlgmr.msrb.gmra.mxu2 %vm428_vm5, %v3368_v54 }
 0x472   : > { %v1913_v55 = vpop.f32.mrf.mxu2  ;;  %v1933_v56 = vpop.f32.mrf.mxu3 }
 0x473   : > { %v1934_v59 = vadd.f32 %v1933_v56, %v1913_v55  ;;  %v1964_v60 = vpop.f32.mrf.mxu0  ;;  %v1984_v63 = vpop.f32.mrf.mxu1 }
 0x474   : > { %v1992_v34 = vadd.f32 %v1990_v10, %v1964_v60  ;;  %v1993_v35 = vadd.f32 %v1990_v10, %v1984_v63 }
 0x475   : > { %3371 = vmatpush.msk.msrb.mxu3 %vm435_vm0, %v1934_v59 }
 0x476   : > { %3372 = vmatmul.msk.f32.vlgmr.msrb.gmra.mxu3 %vm428_vm5, %v3368_v54 }
 0x47a   : > { %v2022_v0 = vpop.f32.mrf.mxu2 }
 0x47b   : > { %v2075_v2 = vpop.f32.mrf.mxu0  ;;  %v2095_v3 = vpop.f32.mrf.mxu1  ;;  %v2045_v57 = vadd.f32 %v2022_v0, %v1992_v34 }
 0x47c   : > { %v2042_v1 = vpop.f32.mrf.mxu3 }
 0x47d   : > { %v2046_v61 = vadd.f32 %v2042_v1, %v1993_v35  ;;  %v2098_v15 = vadd.f32 %v2075_v2, %v2045_v57 }
 0x47f   : > { %v2099_v17 = vadd.f32 %v2095_v3, %v2046_v61 }
 0x483   : > { %v2128_v4 = vpop.f32.mrf.mxu2  ;;  %v2175_v6 = vpop.f32.mrf.mxu0 }
 0x484   : > { %v2148_v5 = vpop.f32.mrf.mxu3  ;;  %v2195_v7 = vpop.f32.mrf.mxu1  ;;  %v2198_v13 = vadd.f32 %v2175_v6, %v1990_v10  ;;  %v4101_v21 = vadd.f32 %v2128_v4, %v2098_v15 }
 0x485   : > { %v2199_v33 = vadd.f32 %v2195_v7, %v1990_v10  ;;  %v4103_v22 = vadd.f32 %v2148_v5, %v2099_v17 }
 0x486   : > { %v2747_v23 = vsel %vm435_vm0, %v4101_v21, 0.0 }
 0x487   : > { %v2748_v47 = vsel %vm435_vm0, %v4103_v22, 0.0 }
 0x488   : > { %v2749_v25 = vadd.f32 %v2748_v47, %v2747_v23 }
 0x48a   : > { %2750 = vadd.xlane.f32.xlu0 %v2749_v25 }
 0x48b   : > { %v2275_v18 = vpop.f32.mrf.mxu0 }
 0x48c   : > { %v2228_v8 = vpop.f32.mrf.mxu2  ;;  %v2248_v9 = vpop.f32.mrf.mxu3 }
 0x48d   : > { %v2295_v19 = vpop.f32.mrf.mxu1  ;;  %v2251_v36 = vadd.f32 %v2228_v8, %v2198_v13  ;;  %v2252_v49 = vadd.f32 %v2248_v9, %v2199_v33 }
 0x48f   : > { %v2298_v62 = vadd.f32 %v2275_v18, %v2251_v36  ;;  %v2299_v14 = vadd.f32 %v2295_v19, %v2252_v49  ;;  %v2915_v19 = vld [vmem:[%s4249_s7 + $0x8] sm:$0xff] }
 0x493   : > { %v2375_v29 = vpop.f32.mrf.mxu0 }
 0x494   : > { %v2328_v16 = vpop.f32.mrf.mxu2  ;;  %v2398_v31 = vadd.f32 %v2375_v29, %v1990_v10 }
 0x495   : > { %v2348_v20 = vpop.f32.mrf.mxu3  ;;  %v4109_v48 = vadd.f32 %v2328_v16, %v2298_v62  ;;  %v2395_v32 = vpop.f32.mrf.mxu1 }
 0x496   : > { %v4111_v24 = vadd.f32 %v2348_v20, %v2299_v14  ;;  %v2399_v37 = vadd.f32 %v2395_v32, %v1990_v10 }
 0x497   : > { %v2753_v26 = vsel %vm435_vm0, %v4109_v48, 0.0 }
 0x498   : > { %v2754_v27 = vsel %vm435_vm0, %v4111_v24, 0.0 }
 0x499   : > { %v2755_v28 = vadd.f32 %v2754_v27, %v2753_v26 }
 0x49b   : > { %2756 = vadd.xlane.f32.xlu0 %v2755_v28 }
 0x49c   : > { %v2422_v30 = vpop.f32.mrf.mxu2 }
 0x49d   : > { %v2445_v38 = vadd.f32 %v2422_v30, %v2398_v31  ;;  %v2442_v39 = vpop.f32.mrf.mxu3 }
 0x49e   : > { %v2446_v41 = vadd.f32 %v2442_v39, %v2399_v37 }
 0x4a8   : > { %v2475_v40 = vpop.f32.mrf.mxu0 }
 0x4a9   : > { %v2498_v42 = vadd.f32 %v2475_v40, %v2445_v38 }
 0x4af   : > { %v2495_v44 = vpop.f32.mrf.mxu1 }
 0x4b0   : > { %v2499_v45 = vadd.f32 %v2495_v44, %v2446_v41  ;;  %v2575_v56 = vpop.f32.mrf.mxu0 }
 0x4b1   : > { %v2598_v63 = vadd.f32 %v2575_v56, %v1990_v10 }
 0x4b7   : > { %v2595_v59 = vpop.f32.mrf.mxu1 }
 0x4b8   : > { %v2599_v0 = vadd.f32 %v2595_v59, %v1990_v10  ;;  %v2830_v10 = vld [vmem:[%s4249_s7] sm:$0xff] }
 0x4ca   : > { %v2669_v3 = vpop.f32.mrf.mxu0 }
 0x4d0   : > { %v2528_v43 = vpop.f32.mrf.mxu2 }
 0x4d1   : > { %v2551_v46 = vadd.f32 %v2528_v43, %v2498_v42  ;;  %v2689_v5 = vpop.f32.mrf.mxu1 }
 0x4d3   : > { %v2759_v53 = vsel %vm435_vm0, %v2551_v46, 0.0 }
 0x4d7   : > { %v2548_v51 = vpop.f32.mrf.mxu3 }
 0x4d8   : > { %v2552_v52 = vadd.f32 %v2548_v51, %v2499_v45  ;;  %v2622_v60 = vpop.f32.mrf.mxu2 }
 0x4d9   : > { %v2645_v2 = vadd.f32 %v2622_v60, %v2598_v63 }
 0x4da   : > { %v2760_v54 = vsel %vm435_vm0, %v2552_v52, 0.0 }
 0x4db   : > { %v2761_v55 = vadd.f32 %v2760_v54, %v2759_v53  ;;  %v2692_v7 = vadd.f32 %v2669_v3, %v2645_v2  ;;  %v412_v53 = vld [vmem:[%s4251_s9] sm:$0xff]  ;;  %v413_v54 = vld [vmem:[%s4251_s9 + $0x8] sm:$0xff] }
 0x4dd   : > { %2762 = vadd.xlane.f32.xlu0 %v2761_v55 }
 0x4df   : > { %v2642_v1 = vpop.f32.mrf.mxu3 }
 0x4e0   : > { %v2646_v4 = vadd.f32 %v2642_v1, %v2599_v0 }
 0x4e2   : > { %v2693_v8 = vadd.f32 %v2689_v5, %v2646_v4 }
 0x4f2   : > { %v2722_v6 = vpop.f32.mrf.mxu2 }
 0x4f3   : > { %v2745_v9 = vadd.f32 %v2722_v6, %v2692_v7 }
 0x4f5   : > { %v2765_v34 = vsel %vm435_vm0, %v2745_v9, 0.0 }
 0x4f9   : > { %v2742_v13 = vpop.f32.mrf.mxu3 }
 0x4fa   : > { %v2746_v33 = vadd.f32 %v2742_v13, %v2693_v8 }
 0x4fc   : > { %v2766_v35 = vsel %vm435_vm0, %v2746_v33, 0.0 }
 0x4fd   : > { %v2767_v18 = vadd.f32 %v2766_v35, %v2765_v34  ;;  %v2751_v36 = vpop.xlane.xlu0 %2750 }
 0x4ff   : > { %2768 = vadd.xlane.f32.xlu2 %v2767_v18 }
 0x50e   : > { %v2757_v49 = vpop.xlane.xlu0 %2756 }
 0x50f   : > { %v2758_v61 = vadd.f32 %v2757_v49, %v2751_v36 }
 0x517   : > { %2834 = vperm.xlu2 %3491, %v2830_v10  }
 0x51f   : > { %2923 = vperm.xlu2 %3491, %v2915_v19  }
 0x527   : > { %3088 = vperm.xlu2 %3491, %v2830_v10  }
 0x550   : > { %v2763_v57 = vpop.xlane.xlu0 %2762 }
 0x551   : > { %v2764_v62 = vadd.f32 %v2763_v57, %v2758_v61 }
 0x572   : > { %v2769_v14 = vpop.xlane.xlu2 %2768 }
 0x573   : > { %v2770_v15 = vadd.f32 %v2769_v14, %v2764_v62 }
 0x575   : > { %v2771_v17 = vmul.f32 0.0009765625, %v2770_v15  ;;  %v2828_v15 = vld [vmem:[%s4248_s6] sm:$0xff] }
 0x577   : > { %v4127_v16 = vsub.f32 %v2551_v46, %v2771_v17  ;;  %v4129_v20 = vsub.f32 %v2552_v52, %v2771_v17  ;;  %v2772_v23 = vsub.f32 %v4101_v21, %v2771_v17  ;;  %v2773_v47 = vsub.f32 %v4103_v22, %v2771_v17 }
 0x578   : > { %v2774_v25 = vsub.f32 %v4109_v48, %v2771_v17  ;;  %v2775_v26 = vsub.f32 %v4111_v24, %v2771_v17  ;;  %v2778_v41 = vsub.f32 %v2745_v9, %v2771_v17  ;;  %v2779_v42 = vsub.f32 %v2746_v33, %v2771_v17 }
 0x579   : > { %v2796_v27 = vmul.f32 %v4127_v16, %v4127_v16  ;;  %v2797_v28 = vmul.f32 %v4129_v20, %v4129_v20  ;;  %v2780_v29 = vmul.f32 %v2772_v23, %v2772_v23  ;;  %v2781_v30 = vmul.f32 %v2773_v47, %v2773_v47 }
 0x57a   : > { %v2788_v38 = vmul.f32 %v2774_v25, %v2774_v25  ;;  %v2789_v24 = vmul.f32 %v2775_v26, %v2775_v26  ;;  %v2804_v44 = vmul.f32 %v2778_v41, %v2778_v41  ;;  %v2805_v45 = vmul.f32 %v2779_v42, %v2779_v42 }
 0x57b   : > { %v2798_v31 = vsel %vm435_vm0, %v2796_v27, 0.0  ;;  %v2799_v32 = vsel %vm435_vm0, %v2797_v28, 0.0  ;;  %v2782_v21 = vsel %vm435_vm0, %v2780_v29, 0.0  ;;  %v2783_v22 = vsel %vm435_vm0, %v2781_v30, 0.0  ;;  %v2835_v27 = vpop.permute.xlu2 %2834 }
 0x57c   : > { %v2800_v37 = vadd.f32 %v2799_v32, %v2798_v31  ;;  %v2784_v48 = vadd.f32 %v2783_v22, %v2782_v21  ;;  %v2790_v39 = vsel %vm435_vm0, %v2788_v38, 0.0  ;;  %v2791_v40 = vsel %vm435_vm0, %v2789_v24, 0.0 }
 0x57d   : > { %v2792_v43 = vadd.f32 %v2791_v40, %v2790_v39  ;;  %v2806_v46 = vsel %vm435_vm0, %v2804_v44, 0.0  ;;  %v2807_v51 = vsel %vm435_vm0, %v2805_v45, 0.0 }
 0x57e   : > { %2801 = vadd.xlane.f32.xlu1 %v2800_v37  ;;  %2785 = vadd.xlane.f32.xlu0 %v2784_v48  ;;  %v2808_v52 = vadd.f32 %v2807_v51, %v2806_v46 }
 0x586   : > { %2793 = vadd.xlane.f32.xlu0 %v2792_v43 }
 0x58e   : > { %2809 = vadd.xlane.f32.xlu0 %v2808_v52 }
 0x597   : > { %416 = vperm.xlu1 %3490, %v412_v53  }
 0x59f   : > { %2839 = vperm.xlu1 %3490, %v2915_v19  }
 0x5a2   : > { %421 = vperm.xlu0 %3492, %v413_v54   ;;  %v2924_v54 = vpop.permute.xlu2 %2923 }
 0x5a7   : > { %2918 = vperm.xlu1 %3490, %v2830_v10  }
 0x5aa   : > { %3008 = vperm.xlu0 %3492, %v2915_v19  }
 0x5af   : > { %3003 = vperm.xlu1 %3490, %v2830_v10  }
 0x5b7   : > { %3093 = vperm.xlu1 %3490, %v2915_v19  }
 0x5f1   : > { %v2786_v55 = vpop.xlane.xlu0 %2785  ;;  %v2802_v60 = vpop.xlane.xlu1 %2801 }
 0x5f9   : > { %v2794_v56 = vpop.xlane.xlu0 %2793 }
 0x5fa   : > { %v2795_v59 = vadd.f32 %v2794_v56, %v2786_v55 }
 0x5fc   : > { %v2803_v63 = vadd.f32 %v2802_v60, %v2795_v59 }
 0x601   : > { %v2810_v0 = vpop.xlane.xlu0 %2809 }
 0x602   : > { %v2811_v1 = vadd.f32 %v2810_v0, %v2803_v63 }
 0x604   : > { %v2812_v2 = vmul.f32 0.0009765625, %v2811_v1 }
 0x606   : > { %v2813_v3 = vadd.f32 1e-05, %v2812_v2 }
 0x608   : > { %3499 = vrsqrt.f32 %v2813_v3  ;;  %vm2820_vm10 = vweird.f32 %v2813_v3 }
 0x60e   : > { %v3500_v4 = vpop.eup %3499 }
 0x60f   : > { %v2815_v5 = vmul.f32 %v3500_v4, %v2813_v3  ;;  %vm2821_vm9 = vweird.f32 %v3500_v4 }
 0x610   : > { %vm2822_vm11 = vmor %vm2820_vm10, %vm2821_vm9 }
 0x611   : > { %v2816_v6 = vmul.f32 %v3500_v4, %v2815_v5 }
 0x613   : > { %v2817_v7 = vmul.f32 0.5, %v2816_v6  ;;  %v3089_v6 = vpop.permute.xlu2 %3088 }
 0x614   : > { %v422_v38 = vpop.permute.xlu0 %421 }
 0x615   : > { %v2818_v8 = vsub.f32 1.5, %v2817_v7  ;;  %v484_v43 = vadd.f32 %v3928_v12, %v422_v38 }
 0x617   : > { %v2819_v9 = vmul.f32 %v3500_v4, %v2818_v8 }
 0x619   : > { %v2823_v13 = vsel %vm2822_vm11, %v3500_v4, %v2819_v9 }
 0x61a   : > { %v2824_v33 = vmul.f32 %v2823_v13, %v2772_v23  ;;  %v2825_v34 = vmul.f32 %v2823_v13, %v2773_v47  ;;  %v2908_v35 = vmul.f32 %v2823_v13, %v2774_v25  ;;  %v2909_v18 = vmul.f32 %v2823_v13, %v2775_v26  ;;  %v2829_v47 = vld [vmem:[%s4248_s6 + $0x8] sm:$0xff]  ;;  %v417_v25 = vpop.permute.xlu1 %416 }
 0x61b   : > { %v2993_v10 = vmul.f32 %v2823_v13, %v4127_v16  ;;  %v2994_v19 = vmul.f32 %v2823_v13, %v4129_v20  ;;  %v3078_v36 = vmul.f32 %v2823_v13, %v2778_v41  ;;  %v3079_v49 = vmul.f32 %v2823_v13, %v2779_v42 }
 0x61c   : > { %v2826_v57 = vmax.f32 %v2824_v33, 0.0  ;;  %v2827_v61 = vmax.f32 %v2825_v34, 0.0  ;;  %v2910_v62 = vmax.f32 %v2908_v35, 0.0  ;;  %v2911_v14 = vmax.f32 %v2909_v18, 0.0  ;;  %v3009_v7 = vpop.permute.xlu0 %3008 }
 0x61d   : > { %v2995_v17 = vmax.f32 %v2993_v10, 0.0  ;;  %v2996_v23 = vmax.f32 %v2994_v19, 0.0  ;;  %v3080_v16 = vmax.f32 %v3078_v36, 0.0  ;;  %v3081_v20 = vmax.f32 %v3079_v49, 0.0 }
 0x61e   : > { %3373 = vmatpush.msk.msra.mxu0 %vm435_vm0, %v2826_v57  ;;  %3376 = vmatpush.msk.msra.mxu1 %vm435_vm0, %v2827_v61  ;;  %v458_v30 = vadd.f32 %v3922_v50, %v417_v25  ;;  %v481_v31 = vadd.f32 %v3924_v58, %v417_v25  ;;  %v461_v42 = vadd.f32 %v3926_v11, %v422_v38 }
 0x61f   : > { %3379 = vmatpush.msk.msra.mxu2 %vm435_vm0, %v2910_v62  ;;  %3382 = vmatpush.msk.msra.mxu3 %vm435_vm0, %v2911_v14 }
 0x620   : > { %3374 = vmatmul.msk.f32.vlgmr.msra.gmra.mxu0 %vm428_vm5, %v2828_v15  ;;  %3377 = vmatmul.msk.f32.vlgmr.msra.gmra.mxu1 %vm428_vm5, %v2828_v15 }
 0x621   : > { %3380 = vmatmul.msk.f32.vlgmr.msra.gmra.mxu2 %vm428_vm5, %v2828_v15  ;;  %3383 = vmatmul.msk.f32.vlgmr.msra.gmra.mxu3 %vm428_vm5, %v2828_v15 }
 0x622   : > { %3389 = vmatpush.msk.msrb.mxu0 %vm435_vm0, %v2995_v17  ;;  %3392 = vmatpush.msk.msrb.mxu1 %vm435_vm0, %v2996_v23  ;;  %v2840_v26 = vpop.permute.xlu1 %2839 }
 0x623   : > { %3399 = vmatpush.msk.msrb.mxu2 %vm435_vm0, %v3080_v16  ;;  %3402 = vmatpush.msk.msrb.mxu3 %vm435_vm0, %v3081_v20 }
 0x628   : > { %3375 = vmatmul.msk.f32.gmra.mxu0 %vm428_vm5, %v2829_v47  ;;  %3378 = vmatmul.msk.f32.gmra.mxu1 %vm428_vm5, %v2829_v47 }
 0x629   : > { %3381 = vmatmul.msk.f32.gmra.mxu2 %vm428_vm5, %v2829_v47  ;;  %3384 = vmatmul.msk.f32.gmra.mxu3 %vm428_vm5, %v2829_v47 }
 0x62a   : > { %v2919_v48 = vpop.permute.xlu1 %2918 }
 0x630   : > { %3390 = vmatmul.msk.f32.vlgmr.msrb.gmra.mxu0 %vm428_vm5, %v2828_v15  ;;  %3393 = vmatmul.msk.f32.vlgmr.msrb.gmra.mxu1 %vm428_vm5, %v2828_v15 }
 0x631   : > { %3400 = vmatmul.msk.f32.vlgmr.msrb.gmra.mxu2 %vm428_vm5, %v2828_v15  ;;  %3403 = vmatmul.msk.f32.vlgmr.msrb.gmra.mxu3 %vm428_vm5, %v2828_v15 }
 0x632   : > { %v3004_v55 = vpop.permute.xlu1 %3003 }
 0x638   : > { %3391 = vmatmul.msk.f32.gmra.mxu0 %vm428_vm5, %v2829_v47  ;;  %3394 = vmatmul.msk.f32.gmra.mxu1 %vm428_vm5, %v2829_v47 }
 0x639   : > { %3401 = vmatmul.msk.f32.gmra.mxu2 %vm428_vm5, %v2829_v47  ;;  %3404 = vmatmul.msk.f32.gmra.mxu3 %vm428_vm5, %v2829_v47 }
 0x63a   : > { %v3094_v61 = vpop.permute.xlu1 %3093 }
 0x69d   : > { %v2871_v28 = vpop.f32.mrf.mxu0  ;;  %v2894_v29 = vpop.f32.mrf.mxu1 }
 0x69e   : > { %v2872_v32 = vadd.f32 %v2871_v28, %v2835_v27  ;;  %v2895_v21 = vadd.f32 %v2894_v29, %v2835_v27 }
 0x6a0   : > { %v2900_v22 = vadd.f32 %v2872_v32, %v458_v30  ;;  %v2901_v37 = vadd.f32 %v2895_v21, %v481_v31 }
 0x6a2   : > { %2904 = vst [vmem:[%s4188_s28] sm:$0xff] %v2900_v22 }
 0x6a3   : > { %2905 = vst [vmem:[%s4188_s28 + $0x8] sm:$0xff] %v2901_v37 }
 0x6a4   : > { %v2955_v24 = vpop.f32.mrf.mxu2  ;;  %v2978_v39 = vpop.f32.mrf.mxu3 }
 0x6a5   : > { %v2956_v40 = vadd.f32 %v2955_v24, %v2919_v48  ;;  %v2979_v50 = vadd.f32 %v2978_v39, %v2919_v48  ;;  %v2874_v58 = vpop.f32.mrf.mxu0  ;;  %v2897_v41 = vpop.f32.mrf.mxu1 }
 0x6a6   : > { %v2875_v44 = vadd.f32 %v2874_v58, %v2840_v26  ;;  %v2898_v45 = vadd.f32 %v2897_v41, %v2840_v26 }
 0x6a7   : > { %v2984_v46 = vadd.f32 %v2956_v40, %v458_v30  ;;  %v2985_v51 = vadd.f32 %v2979_v50, %v481_v31 }
 0x6a8   : > { %v2902_v52 = vadd.f32 %v2875_v44, %v461_v42  ;;  %v2903_v53 = vadd.f32 %v2898_v45, %v484_v43 }
 0x6a9   : > { %3385 = vst [vmem:[%s4188_s28 + $0x20] sm:$0xff] %v2984_v46 }
 0x6aa   : > { %3386 = vst [vmem:[%s4188_s28 + $0x28] sm:$0xff] %v2985_v51 }
 0x6ab   : > { %2906 = vst [vmem:[%s4188_s28 + $0x10] sm:$0xff] %v2902_v52 }
 0x6ac   : > { %2907 = vst [vmem:[%s4188_s28 + $0x18] sm:$0xff] %v2903_v53  ;;  %v2958_v56 = vpop.f32.mrf.mxu2  ;;  %v2981_v59 = vpop.f32.mrf.mxu3 }
 0x6ad   : > { %v2959_v11 = vadd.f32 %v2958_v56, %v2924_v54  ;;  %v2982_v12 = vadd.f32 %v2981_v59, %v2924_v54  ;;  %v3040_v60 = vpop.f32.mrf.mxu0  ;;  %v3063_v63 = vpop.f32.mrf.mxu1 }
 0x6ae   : > { %v3041_v0 = vadd.f32 %v3040_v60, %v3004_v55  ;;  %v3064_v1 = vadd.f32 %v3063_v63, %v3004_v55 }
 0x6af   : > { %v2986_v2 = vadd.f32 %v2959_v11, %v461_v42  ;;  %v2987_v3 = vadd.f32 %v2982_v12, %v484_v43 }
 0x6b0   : > { %v3069_v4 = vadd.f32 %v3041_v0, %v458_v30  ;;  %v3070_v5 = vadd.f32 %v3064_v1, %v481_v31 }
 0x6b1   : > { %3387 = vst [vmem:[%s4188_s28 + $0x30] sm:$0xff] %v2986_v2 }
 0x6b2   : > { %3388 = vst [vmem:[%s4188_s28 + $0x38] sm:$0xff] %v2987_v3 }
 0x6b3   : > { %3395 = vst [vmem:[%s4188_s28 + $0x40] sm:$0xff] %v3069_v4 }
 0x6b4   : > { %3396 = vst [vmem:[%s4188_s28 + $0x48] sm:$0xff] %v3070_v5  ;;  %v3125_v8 = vpop.f32.mrf.mxu2  ;;  %v3148_v9 = vpop.f32.mrf.mxu3 }
 0x6b5   : > { %v3126_v13 = vadd.f32 %v3125_v8, %v3089_v6  ;;  %v3149_v33 = vadd.f32 %v3148_v9, %v3089_v6  ;;  %v3043_v34 = vpop.f32.mrf.mxu0  ;;  %v3066_v35 = vpop.f32.mrf.mxu1 }
 0x6b6   : > { %v3044_v18 = vadd.f32 %v3043_v34, %v3009_v7  ;;  %v3067_v10 = vadd.f32 %v3066_v35, %v3009_v7 }
 0x6b7   : > { %v3154_v19 = vadd.f32 %v3126_v13, %v458_v30  ;;  %v3155_v36 = vadd.f32 %v3149_v33, %v481_v31 }
 0x6b8   : > { %v3071_v49 = vadd.f32 %v3044_v18, %v461_v42  ;;  %v3072_v57 = vadd.f32 %v3067_v10, %v484_v43 }
 0x6b9   : > { %3405 = vst [vmem:[%s4188_s28 + $0x60] sm:$0xff] %v3154_v19 }
 0x6ba   : > { %3406 = vst [vmem:[%s4188_s28 + $0x68] sm:$0xff] %v3155_v36 }
 0x6bb   : > { %3397 = vst [vmem:[%s4188_s28 + $0x50] sm:$0xff] %v3071_v49 }
 0x6bc   : > { %3398 = vst [vmem:[%s4188_s28 + $0x58] sm:$0xff] %v3072_v57  ;;  %v3128_v62 = vpop.f32.mrf.mxu2  ;;  %v3151_v14 = vpop.f32.mrf.mxu3 }
 0x6bd   : > { %v3129_v15 = vadd.f32 %v3128_v62, %v3094_v61  ;;  %v3152_v17 = vadd.f32 %v3151_v14, %v3094_v61 }
 0x6bf   : > { %v3156_v23 = vadd.f32 %v3129_v15, %v461_v42  ;;  %v3157_v16 = vadd.f32 %v3152_v17, %v484_v43 }
 0x6c1   : > { %3407 = vst [vmem:[%s4188_s28 + $0x70] sm:$0xff] %v3156_v23 }
 0x6c2   : > { %3408 = vst [vmem:[%s4188_s28 + $0x78] sm:$0xff] %v3157_v16 }
 0x6c3   : > { %3618 = shalt.err (!%p3615_p9)
}
 0x6c4   : > { %s3670_s23 = smov 256   ;;  %s3671_s11 = smov 16  }
 0x6c5   : > { %3426 = dma.vmem_to_hbm [thread:$0]  (%p3796_p4), %s3177_s20, 2048, %s3179_s18, %s3164_s27, %s3670_s23, %s3670_s23, %s3671_s11  }
 0x6c6 PF: > { %s3193_s28 = sand.u32 1, %s3649_s13   ;;  %p4269_p10 = scmp.ge.s32.totalorder %s3661_s16, 2 }
 0x6c7   : > { %s3194_s29 = scalar_lea.sflag [#allocation4], %s3193_s28 }
 0x6c8   : > { %p3440_p13 = pnand %p4269_p10, %p3800_p6 }
 0x6ca   : > { %p3441_p11 = pneg %p3440_p13 }
 0x6cc   : > { %3644 = dma.done.wait (%p3441_p11), %s3194_s29, 2048  }
 0x6cd   : > { %3646 = vsyncadd (%p3441_p11), %s3194_s29, 4294965248  ;;  %s4270_s16 = sld [smem:[#allocation13_spill]]  ;;  %s4273_s13 = smov %s3653_s14 }
 0x6ce   : > { %s4271_s30 = sld [smem:[#allocation12_spill]] }
 0x6cf   : > { %s4272_s15 = sld [smem:[#allocation14_spill]] }
 0x6d3   : > { %p24_p0 = scmp.ge.s32.totalorder %s4270_s16, 4  }
 0x6d4   : > { %s4274_s14 = smov %s4271_s30 }
 0x6d5   :  { %26 = sbr.rel (!%p24_p0) target bundleno = 9 (0x9), region = 139 }
 0x6da   :  { %3200 = vsyncpa [#allocation3], 1 }
 0x6db   :  { %3202 = vsyncpa [#allocation3 + $0x1], 1 }
 0x6dc   :  { %3203 = vsyncpa [#allocation6], 1 }
 0x6dd   :  { %3204 = vsyncpa [#allocation4], 1 }
 0x6de   :  { %3206 = vsyncpa [#allocation4 + $0x1], 1 }

</bundles_post_ra>
